<compile_context>
chip_gen: v5e
topology: v5e:2x2
jax: 0.10.0
libtpu: 0.0.40
codegen_flags: <defaults>
</compile_context>

<pallas_src>
import functools
import math

import jax
import jax.numpy as jnp
from jax.experimental import pallas as pl
from jax.experimental.pallas import tpu as pltpu


def _round_up(x, m):
    return (x + m - 1) // m * m


def _gelu_tanh(x):
    return 0.5 * x * (1.0 + jnp.tanh(0.7978845608028654 * (x + 0.044715 * x * x * x)))


# ------------------------- tiled matmul (generic) ---------------------------

def _matmul_kernel(x_ref, w_ref, b_ref, o_ref, acc_ref, *, act):
    @pl.when(pl.program_id(2) == 0)
    def _():
        acc_ref[...] = jnp.zeros_like(acc_ref)

    acc_ref[...] += jnp.dot(x_ref[...], w_ref[...],
                            preferred_element_type=jnp.float32)

    @pl.when(pl.program_id(2) == pl.num_programs(2) - 1)
    def _():
        y = acc_ref[...] + b_ref[...]
        if act == "relu":
            y = jnp.maximum(y, 0.0)
        elif act == "gelu":
            y = _gelu_tanh(y)
        o_ref[...] = y.astype(o_ref.dtype)


def linear(x, w, *, bias=None, act="none", out_dtype=jnp.float32,
           tm_cap=512, tk_cap=512, tn_cap=512):
    """Tiled bf16 matmul, f32 accumulation, fused bias/activation, selectable
    output dtype.  Pads M/K/N to tile multiples only when needed (zeros ->
    exact), stores lane-dense, slices back at the end."""
    M, K = x.shape
    K2, N = w.shape
    assert K == K2

    tm = min(tm_cap, _round_up(M, 16))   # bf16 second-minor granularity
    tk = min(tk_cap, _round_up(K, 128))
    tn = min(tn_cap, _round_up(N, 128))
    Mp, Kp, Np = _round_up(M, tm), _round_up(K, tk), _round_up(N, tn)

    xp = x.astype(jnp.bfloat16)
    if (Mp, Kp) != (M, K):
        xp = jnp.pad(xp, ((0, Mp - M), (0, Kp - K)))
    wp = w if w.dtype == jnp.bfloat16 else w.astype(jnp.bfloat16)
    if (Kp, Np) != (K, N):
        wp = jnp.pad(wp, ((0, Kp - K), (0, Np - N)))
    if bias is None:
        bp = jnp.zeros((1, Np), jnp.float32)
    else:
        bp = bias.astype(jnp.float32).reshape(1, N)
        if Np != N:
            bp = jnp.pad(bp, ((0, 0), (0, Np - N)))

    out = pl.pallas_call(
        functools.partial(_matmul_kernel, act=act),
        out_shape=jax.ShapeDtypeStruct((Mp, Np), out_dtype),
        grid=(Mp // tm, Np // tn, Kp // tk),
        in_specs=[
            pl.BlockSpec((tm, tk), lambda i, j, k: (i, k)),
            pl.BlockSpec((tk, tn), lambda i, j, k: (k, j)),
            pl.BlockSpec((1, tn), lambda i, j, k: (0, j)),
        ],
        out_specs=pl.BlockSpec((tm, tn), lambda i, j, k: (i, j)),
        scratch_shapes=[pltpu.VMEM((tm, tn), jnp.float32)],
        compiler_params=pltpu.CompilerParams(
            dimension_semantics=("parallel", "parallel", "arbitrary")),
    )(xp, wp, bp)
    if (Mp, Np) != (M, N):
        out = out[:M, :N]
    return out


# --------------------- fully fused encoder block -----------------------------

def _encoder_block_kernel(x_ref, ln1g_ref, ln1b_ref, wqkv_ref, bqkv_ref,
                          wo_ref, bo_ref, ln2g_ref, ln2b_ref,
                          w1_ref, b1_ref, w2_ref, b2_ref, o_ref,
                          *, nb_head, scale):
    """One batch element per grid step.  QKV never leaves VMEM."""
    x = x_ref[0]                                            # (S, E) f32
    E = x.shape[-1]
    Dh = E // nb_head

    # LN1 + fused QKV projection (single N=3E matmul)
    mu = jnp.mean(x, axis=-1, keepdims=True)
    var = jnp.mean((x - mu) ** 2, axis=-1, keepdims=True)
    h = (x - mu) * jax.lax.rsqrt(var + 1e-5) * ln1g_ref[...] + ln1b_ref[...]
    qkv = jnp.dot(h.astype(jnp.bfloat16), wqkv_ref[...],
                  preferred_element_type=jnp.float32) + bqkv_ref[...]   # (S,3E)
    qkv_bf = qkv.astype(jnp.bfloat16)

    # per-head attention (tiny S x S scores), single fused out-projection
    heads = []
    for hh in range(nb_head):                               # small static unroll
        q = qkv_bf[:, hh * Dh:(hh + 1) * Dh]
        k = qkv_bf[:, E + hh * Dh: E + (hh + 1) * Dh]
        v = qkv_bf[:, 2 * E + hh * Dh: 2 * E + (hh + 1) * Dh]
        s = jax.lax.dot_general(q, k, (((1,), (1,)), ((), ())),
                                preferred_element_type=jnp.float32) * scale
        m = jnp.max(s, axis=-1, keepdims=True)
        p = jnp.exp(s - m)
        p = p / jnp.sum(p, axis=-1, keepdims=True)          # exact softmax
        heads.append(jnp.dot(p.astype(jnp.bfloat16), v,
                             preferred_element_type=jnp.float32))
    attn = jnp.concatenate(heads, axis=-1)                  # (S, E)
    proj = jnp.dot(attn.astype(jnp.bfloat16), wo_ref[...],
                   preferred_element_type=jnp.float32) + bo_ref[...]
    x1 = x + proj                                           # residual 1

    # LN2 + GELU-MLP + residual
    mu2 = jnp.mean(x1, axis=-1, keepdims=True)
    var2 = jnp.mean((x1 - mu2) ** 2, axis=-1, keepdims=True)
    hn = (x1 - mu2) * jax.lax.rsqrt(var2 + 1e-5) * ln2g_ref[...] + ln2b_ref[...]
    h1 = jnp.dot(hn.astype(jnp.bfloat16), w1_ref[...],
                 preferred_element_type=jnp.float32) + b1_ref[...]
    h1 = _gelu_tanh(h1)
    y = jnp.dot(h1.astype(jnp.bfloat16), w2_ref[...],
                preferred_element_type=jnp.float32) + b2_ref[...]
    o_ref[0] = x1 + y                                       # residual 2


def encoder_block(blk, x, nb_head):
    # TODO(synk): EncoderBlock source not provided; standard pre-norm ViT block
    # (MHSA + GELU-MLP with residuals) assumed; dropout -> identity (eval).
    B, S, E = x.shape
    Dh = E // nb_head

    weights = [blk["ln1_g"], blk["ln1_b"], blk["wqkv"], blk["bqkv"],
               blk["wo"], blk["bo"], blk["ln2_g"], blk["ln2_b"],
               blk["w1"], blk["b1"], blk["w2"], blk["b2"]]

    in_specs = [pl.BlockSpec((1, S, E), lambda b: (b, 0, 0))]
    in_specs += [pl.BlockSpec(a.shape, lambda b: (0, 0)) for a in weights]

    return pl.pallas_call(
        functools.partial(_encoder_block_kernel, nb_head=nb_head,
                          scale=1.0 / math.sqrt(Dh)),
        out_shape=jax.ShapeDtypeStruct((B, S, E), jnp.float32),
        grid=(B,),
        in_specs=in_specs,
        out_specs=pl.BlockSpec((1, S, E), lambda b: (b, 0, 0)),
        compiler_params=pltpu.CompilerParams(dimension_semantics=("parallel",)),
    )(x, *weights)


# ----------------------- fused decoder_lin (2 tiny GEMMs) -------------------

def _decoder_lin_kernel(x_ref, w1_ref, b1_ref, w2_ref, b2_ref, o_ref):
    h = jnp.dot(x_ref[...].astype(jnp.bfloat16), w1_ref[...],
                preferred_element_type=jnp.float32) + b1_ref[...]
    h = jnp.maximum(h, 0.0)
    y = jnp.dot(h.astype(jnp.bfloat16), w2_ref[...],
                preferred_element_type=jnp.float32) + b2_ref[...]
    o_ref[...] = jnp.maximum(y, 0.0)


def decoder_lin(x, params):
    B = x.shape[0]
    N = params["dec_w2"].shape[1]
    return pl.pallas_call(
        _decoder_lin_kernel,
        out_shape=jax.ShapeDtypeStruct((B, N), jnp.float32),
    )(x, params["dec_w1"], params["dec_b1"], params["dec_w2"], params["dec_b2"])


# ----------------------------- decoder convs --------------------------------

def conv_transpose_nhwc(x, wmat, bias, *, cout, k, stride, padding, out_pad,
                        relu, out_dtype):
    """ConvTranspose2d (+ pre-folded eval-BN + optional ReLU), NHWC.

    Formulated as x_flat (B*H*W, Cin) @ W (Cin, Cout*k*k) in Pallas followed by
    a col2im overlap-add (tiny XLA glue) -- no zero-dilated im2col, so only the
    useful MACs are performed and no multi-MB f32 intermediate hits HBM.
    """
    B, H, W, Cin = x.shape
    y = linear(x.reshape(B * H * W, Cin), wmat, out_dtype=out_dtype)
    y = y.reshape(B, H, W, cout, k, k)

    Hf = (H - 1) * stride + k
    Wf = (W - 1) * stride + k
    full = jnp.zeros((B, Hf, Wf, cout), jnp.float32)
    for ky in range(k):
        for kx in range(k):
            full = full.at[:, ky: ky + (H - 1) * stride + 1: stride,
                              kx: kx + (W - 1) * stride + 1: stride, :].add(
                y[:, :, :, :, ky, kx].astype(jnp.float32))

    Ho = (H - 1) * stride - 2 * padding + k + out_pad
    Wo = (W - 1) * stride - 2 * padding + k + out_pad
    out = full[:, padding:padding + Ho, padding:padding + Wo, :] + bias
    if relu:
        out = jnp.maximum(out, 0.0)
    return out                                              # NHWC


# ------------------------------- forward ------------------------------------

def vit_forward(params, x, *, patch_size, nb_head):
    B, C, H, W = x.shape
    E = params["pos_emb"].shape[-1]
    nh, nw = H // patch_size, W // patch_size

    # InputLayer: patch-embedding (matmul over unfolded patches) + CLS + pos-emb
    patches = x.reshape(B, C, nh, patch_size, nw, patch_size)
    patches = patches.transpose(0, 2, 4, 1, 3, 5).reshape(
        B * nh * nw, C * patch_size * patch_size)
    emb = linear(patches, params["patch_w"],
                 bias=params["patch_b"]).reshape(B, nh * nw, E)
    cls = jnp.broadcast_to(params["cls_token"], (B, 1, E))
    tok = jnp.concatenate([cls, emb], axis=1) + params["pos_emb"]

    # Transformer encoder: one fused pallas_call per block
    for blk in params["blocks"]:
        tok = encoder_block(blk, tok, nb_head)

    # CLS -> fused decoder_lin -> unflatten -> ConvTranspose decoder (NHWC)
    cls_out = tok[:, 0]                                      # (B, 256)
    feat = decoder_lin(cls_out, params)                      # (B, 288)
    feat = feat.reshape(B, 32, 3, 3).transpose(0, 2, 3, 1)   # nn.Unflatten -> NHWC

    y = conv_transpose_nhwc(feat, params["ct1_wm"], params["ct1_b"], cout=16,
                            k=10, stride=2, padding=0, out_pad=0, relu=True,
                            out_dtype=jnp.bfloat16)
    y = conv_transpose_nhwc(y, params["ct2_wm"], params["ct2_b"], cout=8,
                            k=7, stride=2, padding=1, out_pad=1, relu=True,
                            out_dtype=jnp.bfloat16)
    y = conv_transpose_nhwc(y, params["ct3_wm"], params["ct3_b"], cout=3,
                            k=3, stride=2, padding=1, out_pad=1, relu=False,
                            out_dtype=jnp.float32)
    return y.transpose(0, 3, 1, 2)                           # NCHW once, at the end


# ----------------------------- parameter init -------------------------------

def init_params(key, *, in_channels, embed_dim, patch_size, image_size_h,
                image_size_w, num_blocks, nb_head, hidden_dim):
    """Synthetic deterministic weights, pre-cast (bf16) / pre-reshaped /
    pre-folded so the forward pass does no per-step weight preprocessing."""
    n_patches = (image_size_h // patch_size) * (image_size_w // patch_size)
    seq = n_patches + 1
    keys = iter(jax.random.split(key, 128))

    def w(shape, s=0.02):
        return jax.random.normal(next(keys), shape, jnp.float32) * s

    z = lambda shape: jnp.zeros(shape, jnp.float32)
    one = lambda shape: jnp.ones(shape, jnp.float32)
    bf = lambda a: a.astype(jnp.bfloat16)

    F = _round_up(max(hidden_dim, 1), 128)           # MLP hidden padded (exact)
    bn_s = 1.0 / math.sqrt(1.0 + 1e-5)               # eval-BN default stats

    def conv_prep(cin, cout, k, fold_bn):
        # PyTorch ConvTranspose2d weight (Cin,Cout,k,k) -> (Cin, Cout*k*k)
        wt = w((cin, cout, k, k))
        bt = z((cout,))
        s = bn_s if fold_bn else 1.0
        return bf(wt.reshape(cin, cout * k * k) * s), bt * s

    ct1_wm, ct1_b = conv_prep(32, 16, 10, True)
    ct2_wm, ct2_b = conv_prep(16, 8, 7, True)
    ct3_wm, ct3_b = conv_prep(8, 3, 3, False)

    params = dict(
        patch_w=bf(w((in_channels * patch_size * patch_size, embed_dim))),
        patch_b=z((embed_dim,)),
        cls_token=w((1, 1, embed_dim)),
        pos_emb=w((1, seq, embed_dim)),
        blocks=[],
        # decoder_lin: Linear(256,128) ReLU, Linear(128, 3*3*32) ReLU (fused)
        dec_w1=bf(w((256, 128))), dec_b1=z((1, 128)),
        dec_w2=bf(w((128, 3 * 3 * 32))), dec_b2=z((1, 3 * 3 * 32)),
        ct1_wm=ct1_wm, ct1_b=ct1_b,
        ct2_wm=ct2_wm, ct2_b=ct2_b,
        ct3_wm=ct3_wm, ct3_b=ct3_b,
    )
    for _ in range(num_blocks):
        w1 = jnp.pad(w((embed_dim, hidden_dim)), ((0, 0), (0, F - hidden_dim)))
        w2 = jnp.pad(w((hidden_dim, embed_dim)), ((0, F - hidden_dim), (0, 0)))
        params["blocks"].append(dict(
            ln1_g=one((1, embed_dim)), ln1_b=z((1, embed_dim)),
            # fused QKV weight (E, 3E): [Wq | Wk | Wv]
            wqkv=bf(jnp.concatenate(
                [w((embed_dim, embed_dim)) for _ in range(3)], axis=1)),
            bqkv=z((1, 3 * embed_dim)),
            wo=bf(w((embed_dim, embed_dim))), bo=z((1, embed_dim)),
            ln2_g=one((1, embed_dim)), ln2_b=z((1, embed_dim)),
            w1=bf(w1), b1=z((1, F)),
            w2=bf(w2), b2=z((1, embed_dim)),
        ))
    return params


# --------------------------------- main --------------------------------------

if __name__ == "__main__":
    # small config consistent with the module (embed_dim is fixed to 256 by
    # decoder_lin's Linear(256,128); latent_dim / num_classes unused in forward)
    in_channels = 3
    embed_dim = 256
    patch_size = 8
    image_h = image_w = 16
    num_blocks = 2
    nb_head = 4
    hidden_dim = 64
    batch = 2

    key = jax.random.PRNGKey(0)
    pkey, xkey = jax.random.split(key)
    params = init_params(
        pkey, in_channels=in_channels, embed_dim=embed_dim, patch_size=patch_size,
        image_size_h=image_h, image_size_w=image_w, num_blocks=num_blocks,
        nb_head=nb_head, hidden_dim=hidden_dim)

    x = jax.random.normal(xkey, (batch, in_channels, image_h, image_w), jnp.float32)

    fwd = jax.jit(functools.partial(vit_forward, patch_size=patch_size,
                                    nb_head=nb_head))
    out = fwd(params, x)
    out = jax.block_until_ready(out)

    assert out.shape == (batch, 3, 64, 64), out.shape
    assert bool(jnp.all(jnp.isfinite(out)))
    print("KERNEL_OK")
</pallas_src>

<mosaic_0001>
module attributes {stable_mosaic.version = 11 : i64} {
  func.func @_matmul_kernel(%arg0: i32, %arg1: i32, %arg2: i32, %arg3: memref<16x256xbf16, #tpu.memory_space<vmem>>, %arg4: memref<256x256xbf16, #tpu.memory_space<vmem>>, %arg5: memref<1x256xf32, #tpu.memory_space<vmem>>, %arg6: memref<16x256xf32, #tpu.memory_space<vmem>>, %arg7: memref<16x256xf32, #tpu.memory_space<vmem>>) attributes {dimension_semantics = [#tpu.dimension_semantics<parallel>, #tpu.dimension_semantics<parallel>, #tpu.dimension_semantics<arbitrary>], iteration_bounds = array<i64: 1, 1, 1>, scalar_prefetch = 0 : i64, scratch_operands = 1 : i64, tpu.core_type = #tpu.core_type<tc>, window_params = [{transform_indices = @transform_0, window_bounds = array<i64: 16, 256>}, {transform_indices = @transform_1, window_bounds = array<i64: 256, 256>}, {transform_indices = @transform_2, window_bounds = array<i64: 1, 256>}, {transform_indices = @transform_3, window_bounds = array<i64: 16, 256>}]} {
    %c0_i32 = arith.constant 0 : i32
    %0 = arith.cmpi eq, %arg2, %c0_i32 : i32
    %1 = arith.extui %0 : i1 to i32
    %c0_i32_0 = arith.constant 0 : i32
    %2 = arith.cmpi ne, %1, %c0_i32_0 : i32
    scf.if %2 {
      %cst_10 = arith.constant 0.000000e+00 : f32
      %12 = vector.broadcast %cst_10 : f32 to vector<16x256xf32>
      %c0_11 = arith.constant 0 : index
      %c0_12 = arith.constant 0 : index
      %13 = vector.load %arg7[%c0_11, %c0_12] : memref<16x256xf32, #tpu.memory_space<vmem>>, vector<16x256xf32>
      tpu.vector_store %arg7[%c0_11, %c0_12], %12 {strides = array<i32>} : memref<16x256xf32, #tpu.memory_space<vmem>>, vector<16x256xf32>,
    } else {
    }
    %c0 = arith.constant 0 : index
    %c0_1 = arith.constant 0 : index
    %3 = vector.load %arg7[%c0, %c0_1] : memref<16x256xf32, #tpu.memory_space<vmem>>, vector<16x256xf32>
    %c0_2 = arith.constant 0 : index
    %c0_3 = arith.constant 0 : index
    %4 = vector.load %arg3[%c0_2, %c0_3] : memref<16x256xbf16, #tpu.memory_space<vmem>>, vector<16x256xbf16>
    %c0_4 = arith.constant 0 : index
    %c0_5 = arith.constant 0 : index
    %5 = vector.load %arg4[%c0_4, %c0_5] : memref<256x256xbf16, #tpu.memory_space<vmem>>, vector<256x256xbf16>
    %cst = arith.constant dense<0.000000e+00> : vector<16x256xf32>
    %6 = tpu.matmul %4, %5, %cst {dimension_numbers = #tpu.dot_dimension_numbers<[1], [0], [0], [1], [0, 0, 1, 1], [], []>} : vector<16x256xbf16>, vector<256x256xbf16>, vector<16x256xf32> -> vector<16x256xf32>
    %7 = arith.addf %3, %6 : vector<16x256xf32>
    %c0_6 = arith.constant 0 : index
    %c0_7 = arith.constant 0 : index
    %8 = vector.load %arg7[%c0_6, %c0_7] : memref<16x256xf32, #tpu.memory_space<vmem>>, vector<16x256xf32>
    tpu.vector_store %arg7[%c0_6, %c0_7], %7 {strides = array<i32>} : memref<16x256xf32, #tpu.memory_space<vmem>>, vector<16x256xf32>,
    %c0_i32_8 = arith.constant 0 : i32
    %9 = arith.cmpi eq, %arg2, %c0_i32_8 : i32
    %10 = arith.extui %9 : i1 to i32
    %c0_i32_9 = arith.constant 0 : i32
    %11 = arith.cmpi ne, %10, %c0_i32_9 : i32
    scf.if %11 {
      %c0_10 = arith.constant 0 : index
      %c0_11 = arith.constant 0 : index
      %12 = vector.load %arg7[%c0_10, %c0_11] : memref<16x256xf32, #tpu.memory_space<vmem>>, vector<16x256xf32>
      %c0_12 = arith.constant 0 : index
      %c0_13 = arith.constant 0 : index
      %13 = vector.load %arg5[%c0_12, %c0_13] : memref<1x256xf32, #tpu.memory_space<vmem>>, vector<1x256xf32>
      %14 = vector.broadcast %13 : vector<1x256xf32> to vector<16x256xf32>
      %15 = arith.addf %12, %14 : vector<16x256xf32>
      %c0_14 = arith.constant 0 : index
      %c0_15 = arith.constant 0 : index
      %16 = vector.load %arg6[%c0_14, %c0_15] : memref<16x256xf32, #tpu.memory_space<vmem>>, vector<16x256xf32>
      tpu.vector_store %arg6[%c0_14, %c0_15], %15 {strides = array<i32>} : memref<16x256xf32, #tpu.memory_space<vmem>>, vector<16x256xf32>,
    } else {
    }
    return
  }
  func.func @transform_0(%arg0: i32, %arg1: i32, %arg2: i32) -> (i32, i32) {
    %c0_i32 = arith.constant 0 : i32
    return %arg0, %arg2 : i32, i32
  }
  func.func @transform_1(%arg0: i32, %arg1: i32, %arg2: i32) -> (i32, i32) {
    %c0_i32 = arith.constant 0 : i32
    return %arg2, %arg1 : i32, i32
  }
  func.func @transform_2(%arg0: i32, %arg1: i32, %arg2: i32) -> (i32, i32) {
    %c0_i32 = arith.constant 0 : i32
    %c0_i32_0 = arith.constant 0 : i32
    return %c0_i32, %arg1 : i32, i32
  }
  func.func @transform_3(%arg0: i32, %arg1: i32, %arg2: i32) -> (i32, i32) {
    %c0_i32 = arith.constant 0 : i32
    return %arg0, %arg1 : i32, i32
  }
}

module attributes {stable_mosaic.version = 11 : i64} {
  func.func @_decoder_lin_kernel(%arg0: memref<2x256xf32, #tpu.memory_space<vmem>>, %arg1: memref<256x128xbf16, #tpu.memory_space<vmem>>, %arg2: memref<1x128xf32, #tpu.memory_space<vmem>>, %arg3: memref<128x288xbf16, #tpu.memory_space<vmem>>, %arg4: memref<1x288xf32, #tpu.memory_space<vmem>>, %arg5: memref<2x288xf32, #tpu.memory_space<vmem>>) attributes {dimension_semantics = [], scalar_prefetch = 0 : i64, scratch_operands = 0 : i64, tpu.core_type = #tpu.core_type<tc>} {
    %c0 = arith.constant 0 : index
    %c0_0 = arith.constant 0 : index
    %0 = vector.load %arg0[%c0, %c0_0] : memref<2x256xf32, #tpu.memory_space<vmem>>, vector<2x256xf32>
    %1 = arith.truncf %0 : vector<2x256xf32> to vector<2x256xbf16>
    %c0_1 = arith.constant 0 : index
    %c0_2 = arith.constant 0 : index
    %2 = vector.load %arg1[%c0_1, %c0_2] : memref<256x128xbf16, #tpu.memory_space<vmem>>, vector<256x128xbf16>
    %cst = arith.constant dense<0.000000e+00> : vector<2x128xf32>
    %3 = tpu.matmul %1, %2, %cst {dimension_numbers = #tpu.dot_dimension_numbers<[1], [0], [0], [1], [0, 0, 1, 1], [], []>} : vector<2x256xbf16>, vector<256x128xbf16>, vector<2x128xf32> -> vector<2x128xf32>
    %c0_3 = arith.constant 0 : index
    %c0_4 = arith.constant 0 : index
    %4 = vector.load %arg2[%c0_3, %c0_4] : memref<1x128xf32, #tpu.memory_space<vmem>>, vector<1x128xf32>
    %5 = vector.broadcast %4 : vector<1x128xf32> to vector<2x128xf32>
    %6 = arith.addf %3, %5 : vector<2x128xf32>
    %cst_5 = arith.constant 0.000000e+00 : f32
    %7 = vector.broadcast %cst_5 : f32 to vector<2x128xf32>
    %8 = arith.maximumf %6, %7 : vector<2x128xf32>
    %9 = arith.truncf %8 : vector<2x128xf32> to vector<2x128xbf16>
    %c0_6 = arith.constant 0 : index
    %c0_7 = arith.constant 0 : index
    %10 = vector.load %arg3[%c0_6, %c0_7] : memref<128x288xbf16, #tpu.memory_space<vmem>>, vector<128x288xbf16>
    %cst_8 = arith.constant dense<0.000000e+00> : vector<2x288xf32>
    %11 = tpu.matmul %9, %10, %cst_8 {dimension_numbers = #tpu.dot_dimension_numbers<[1], [0], [0], [1], [0, 0, 1, 1], [], []>} : vector<2x128xbf16>, vector<128x288xbf16>, vector<2x288xf32> -> vector<2x288xf32>
    %c0_9 = arith.constant 0 : index
    %c0_10 = arith.constant 0 : index
    %12 = vector.load %arg4[%c0_9, %c0_10] : memref<1x288xf32, #tpu.memory_space<vmem>>, vector<1x288xf32>
    %13 = vector.broadcast %12 : vector<1x288xf32> to vector<2x288xf32>
    %14 = arith.addf %11, %13 : vector<2x288xf32>
    %cst_11 = arith.constant 0.000000e+00 : f32
    %15 = vector.broadcast %cst_11 : f32 to vector<2x288xf32>
    %16 = arith.maximumf %14, %15 : vector<2x288xf32>
    %c0_12 = arith.constant 0 : index
    %c0_13 = arith.constant 0 : index
    %17 = vector.load %arg5[%c0_12, %c0_13] : memref<2x288xf32, #tpu.memory_space<vmem>>, vector<2x288xf32>
    tpu.vector_store %arg5[%c0_12, %c0_13], %16 {strides = array<i32>} : memref<2x288xf32, #tpu.memory_space<vmem>>, vector<2x288xf32>,
    return
  }
}

module attributes {stable_mosaic.version = 11 : i64} {
  func.func @_encoder_block_kernel(%arg0: i32, %arg1: memref<1x5x256xf32, #tpu.memory_space<vmem>>, %arg2: memref<1x256xf32, #tpu.memory_space<vmem>>, %arg3: memref<1x256xf32, #tpu.memory_space<vmem>>, %arg4: memref<256x768xbf16, #tpu.memory_space<vmem>>, %arg5: memref<1x768xf32, #tpu.memory_space<vmem>>, %arg6: memref<256x256xbf16, #tpu.memory_space<vmem>>, %arg7: memref<1x256xf32, #tpu.memory_space<vmem>>, %arg8: memref<1x256xf32, #tpu.memory_space<vmem>>, %arg9: memref<1x256xf32, #tpu.memory_space<vmem>>, %arg10: memref<256x128xbf16, #tpu.memory_space<vmem>>, %arg11: memref<1x128xf32, #tpu.memory_space<vmem>>, %arg12: memref<128x256xbf16, #tpu.memory_space<vmem>>, %arg13: memref<1x256xf32, #tpu.memory_space<vmem>>, %arg14: memref<1x5x256xf32, #tpu.memory_space<vmem>>) attributes {dimension_semantics = [#tpu.dimension_semantics<parallel>], iteration_bounds = array<i64: 2>, scalar_prefetch = 0 : i64, scratch_operands = 0 : i64, tpu.core_type = #tpu.core_type<tc>, window_params = [{transform_indices = @transform_0, window_bounds = array<i64: 1, 5, 256>}, {pipeline_mode = #tpu.pipeline_mode<synchronous>, transform_indices = @transform_1, window_bounds = array<i64: 1, 256>}, {pipeline_mode = #tpu.pipeline_mode<synchronous>, transform_indices = @transform_2, window_bounds = array<i64: 1, 256>}, {pipeline_mode = #tpu.pipeline_mode<synchronous>, transform_indices = @transform_3, window_bounds = array<i64: 256, 768>}, {pipeline_mode = #tpu.pipeline_mode<synchronous>, transform_indices = @transform_4, window_bounds = array<i64: 1, 768>}, {pipeline_mode = #tpu.pipeline_mode<synchronous>, transform_indices = @transform_5, window_bounds = array<i64: 256, 256>}, {pipeline_mode = #tpu.pipeline_mode<synchronous>, transform_indices = @transform_6, window_bounds = array<i64: 1, 256>}, {pipeline_mode = #tpu.pipeline_mode<synchronous>, transform_indices = @transform_7, window_bounds = array<i64: 1, 256>}, {pipeline_mode = #tpu.pipeline_mode<synchronous>, transform_indices = @transform_8, window_bounds = array<i64: 1, 256>}, {pipeline_mode = #tpu.pipeline_mode<synchronous>, transform_indices = @transform_9, window_bounds = array<i64: 256, 128>}, {pipeline_mode = #tpu.pipeline_mode<synchronous>, transform_indices = @transform_10, window_bounds = array<i64: 1, 128>}, {pipeline_mode = #tpu.pipeline_mode<synchronous>, transform_indices = @transform_11, window_bounds = array<i64: 128, 256>}, {pipeline_mode = #tpu.pipeline_mode<synchronous>, transform_indices = @transform_12, window_bounds = array<i64: 1, 256>}, {transform_indices = @transform_13, window_bounds = array<i64: 1, 5, 256>}]} {
    %c0 = arith.constant 0 : index
    %c0_0 = arith.constant 0 : index
    %c0_1 = arith.constant 0 : index
    %0 = vector.load %arg1[%c0, %c0_0, %c0_1] : memref<1x5x256xf32, #tpu.memory_space<vmem>>, vector<1x5x256xf32>
    %1 = vector.shape_cast %0 : vector<1x5x256xf32> to vector<5x256xf32>
    %cst = arith.constant dense<0.000000e+00> : vector<5xf32>
    %2 = vector.multi_reduction <add>, %1, %cst [1] : vector<5x256xf32> to vector<5xf32>
    %3 = vector.shape_cast %2 : vector<5xf32> to vector<5x1xf32>
    %cst_2 = arith.constant 2.560000e+02 : f32
    %4 = vector.broadcast %cst_2 : f32 to vector<5x1xf32>
    %5 = arith.divf %3, %4 : vector<5x1xf32>
    %6 = vector.broadcast %5 : vector<5x1xf32> to vector<5x256xf32>
    %7 = arith.subf %1, %6 : vector<5x256xf32>
    %8 = arith.mulf %7, %7 : vector<5x256xf32>
    %cst_3 = arith.constant dense<0.000000e+00> : vector<5xf32>
    %9 = vector.multi_reduction <add>, %8, %cst_3 [1] : vector<5x256xf32> to vector<5xf32>
    %10 = vector.shape_cast %9 : vector<5xf32> to vector<5x1xf32>
    %cst_4 = arith.constant 2.560000e+02 : f32
    %11 = vector.broadcast %cst_4 : f32 to vector<5x1xf32>
    %12 = arith.divf %10, %11 : vector<5x1xf32>
    %13 = vector.broadcast %5 : vector<5x1xf32> to vector<5x256xf32>
    %14 = arith.subf %1, %13 : vector<5x256xf32>
    %cst_5 = arith.constant 9.99999974E-6 : f32
    %15 = vector.broadcast %cst_5 : f32 to vector<5x1xf32>
    %16 = arith.addf %12, %15 : vector<5x1xf32>
    %17 = math.rsqrt %16 : vector<5x1xf32>
    %18 = vector.broadcast %17 : vector<5x1xf32> to vector<5x256xf32>
    %19 = arith.mulf %14, %18 : vector<5x256xf32>
    %c0_6 = arith.constant 0 : index
    %c0_7 = arith.constant 0 : index
    %20 = vector.load %arg2[%c0_6, %c0_7] : memref<1x256xf32, #tpu.memory_space<vmem>>, vector<1x256xf32>
    %21 = vector.broadcast %20 : vector<1x256xf32> to vector<5x256xf32>
    %22 = arith.mulf %19, %21 : vector<5x256xf32>
    %c0_8 = arith.constant 0 : index
    %c0_9 = arith.constant 0 : index
    %23 = vector.load %arg3[%c0_8, %c0_9] : memref<1x256xf32, #tpu.memory_space<vmem>>, vector<1x256xf32>
    %24 = vector.broadcast %23 : vector<1x256xf32> to vector<5x256xf32>
    %25 = arith.addf %22, %24 : vector<5x256xf32>
    %26 = arith.truncf %25 : vector<5x256xf32> to vector<5x256xbf16>
    %c0_10 = arith.constant 0 : index
    %c0_11 = arith.constant 0 : index
    %27 = vector.load %arg4[%c0_10, %c0_11] : memref<256x768xbf16, #tpu.memory_space<vmem>>, vector<256x768xbf16>
    %cst_12 = arith.constant dense<0.000000e+00> : vector<5x768xf32>
    %28 = tpu.matmul %26, %27, %cst_12 {dimension_numbers = #tpu.dot_dimension_numbers<[1], [0], [0], [1], [0, 0, 1, 1], [], []>} : vector<5x256xbf16>, vector<256x768xbf16>, vector<5x768xf32> -> vector<5x768xf32>
    %c0_13 = arith.constant 0 : index
    %c0_14 = arith.constant 0 : index
    %29 = vector.load %arg5[%c0_13, %c0_14] : memref<1x768xf32, #tpu.memory_space<vmem>>, vector<1x768xf32>
    %30 = vector.broadcast %29 : vector<1x768xf32> to vector<5x768xf32>
    %31 = arith.addf %28, %30 : vector<5x768xf32>
    %32 = arith.truncf %31 : vector<5x768xf32> to vector<5x768xbf16>
    %33 = vector.extract_strided_slice %32 {offsets = [0, 0], sizes = [5, 64], strides = [1, 1]} : vector<5x768xbf16> to vector<5x64xbf16>
    %34 = vector.extract_strided_slice %32 {offsets = [0, 256], sizes = [5, 64], strides = [1, 1]} : vector<5x768xbf16> to vector<5x64xbf16>
    %35 = vector.extract_strided_slice %32 {offsets = [0, 512], sizes = [5, 64], strides = [1, 1]} : vector<5x768xbf16> to vector<5x64xbf16>
    %cst_15 = arith.constant dense<0.000000e+00> : vector<5x5xf32>
    %36 = tpu.matmul %33, %34, %cst_15 {dimension_numbers = #tpu.dot_dimension_numbers<[1], [1], [0], [0], [0, 0, 1, 0], [], []>} : vector<5x64xbf16>, vector<5x64xbf16>, vector<5x5xf32> -> vector<5x5xf32>
    %cst_16 = arith.constant 1.250000e-01 : f32
    %37 = vector.broadcast %cst_16 : f32 to vector<5x5xf32>
    %38 = arith.mulf %36, %37 : vector<5x5xf32>
    %cst_17 = arith.constant dense<0xFF800000> : vector<5xf32>
    %39 = vector.multi_reduction <maximumf>, %38, %cst_17 [1] : vector<5x5xf32> to vector<5xf32>
    %40 = vector.shape_cast %39 : vector<5xf32> to vector<5x1xf32>
    %41 = vector.broadcast %40 : vector<5x1xf32> to vector<5x5xf32>
    %42 = arith.subf %38, %41 : vector<5x5xf32>
    %43 = math.exp %42 : vector<5x5xf32>
    %cst_18 = arith.constant dense<0.000000e+00> : vector<5xf32>
    %44 = vector.multi_reduction <add>, %43, %cst_18 [1] : vector<5x5xf32> to vector<5xf32>
    %45 = vector.shape_cast %44 : vector<5xf32> to vector<5x1xf32>
    %46 = vector.broadcast %45 : vector<5x1xf32> to vector<5x5xf32>
    %47 = arith.divf %43, %46 : vector<5x5xf32>
    %48 = arith.truncf %47 : vector<5x5xf32> to vector<5x5xbf16>
    %cst_19 = arith.constant dense<0.000000e+00> : vector<5x64xf32>
    %49 = tpu.matmul %48, %35, %cst_19 {dimension_numbers = #tpu.dot_dimension_numbers<[1], [0], [0], [1], [0, 0, 1, 1], [], []>} : vector<5x5xbf16>, vector<5x64xbf16>, vector<5x64xf32> -> vector<5x64xf32>
    %50 = vector.extract_strided_slice %32 {offsets = [0, 64], sizes = [5, 64], strides = [1, 1]} : vector<5x768xbf16> to vector<5x64xbf16>
    %51 = vector.extract_strided_slice %32 {offsets = [0, 320], sizes = [5, 64], strides = [1, 1]} : vector<5x768xbf16> to vector<5x64xbf16>
    %52 = vector.extract_strided_slice %32 {offsets = [0, 576], sizes = [5, 64], strides = [1, 1]} : vector<5x768xbf16> to vector<5x64xbf16>
    %cst_20 = arith.constant dense<0.000000e+00> : vector<5x5xf32>
    %53 = tpu.matmul %50, %51, %cst_20 {dimension_numbers = #tpu.dot_dimension_numbers<[1], [1], [0], [0], [0, 0, 1, 0], [], []>} : vector<5x64xbf16>, vector<5x64xbf16>, vector<5x5xf32> -> vector<5x5xf32>
    %cst_21 = arith.constant 1.250000e-01 : f32
    %54 = vector.broadcast %cst_21 : f32 to vector<5x5xf32>
    %55 = arith.mulf %53, %54 : vector<5x5xf32>
    %cst_22 = arith.constant dense<0xFF800000> : vector<5xf32>
    %56 = vector.multi_reduction <maximumf>, %55, %cst_22 [1] : vector<5x5xf32> to vector<5xf32>
    %57 = vector.shape_cast %56 : vector<5xf32> to vector<5x1xf32>
    %58 = vector.broadcast %57 : vector<5x1xf32> to vector<5x5xf32>
    %59 = arith.subf %55, %58 : vector<5x5xf32>
    %60 = math.exp %59 : vector<5x5xf32>
    %cst_23 = arith.constant dense<0.000000e+00> : vector<5xf32>
    %61 = vector.multi_reduction <add>, %60, %cst_23 [1] : vector<5x5xf32> to vector<5xf32>
    %62 = vector.shape_cast %61 : vector<5xf32> to vector<5x1xf32>
    %63 = vector.broadcast %62 : vector<5x1xf32> to vector<5x5xf32>
    %64 = arith.divf %60, %63 : vector<5x5xf32>
    %65 = arith.truncf %64 : vector<5x5xf32> to vector<5x5xbf16>
    %cst_24 = arith.constant dense<0.000000e+00> : vector<5x64xf32>
    %66 = tpu.matmul %65, %52, %cst_24 {dimension_numbers = #tpu.dot_dimension_numbers<[1], [0], [0], [1], [0, 0, 1, 1], [], []>} : vector<5x5xbf16>, vector<5x64xbf16>, vector<5x64xf32> -> vector<5x64xf32>
    %67 = vector.extract_strided_slice %32 {offsets = [0, 128], sizes = [5, 64], strides = [1, 1]} : vector<5x768xbf16> to vector<5x64xbf16>
    %68 = vector.extract_strided_slice %32 {offsets = [0, 384], sizes = [5, 64], strides = [1, 1]} : vector<5x768xbf16> to vector<5x64xbf16>
    %69 = vector.extract_strided_slice %32 {offsets = [0, 640], sizes = [5, 64], strides = [1, 1]} : vector<5x768xbf16> to vector<5x64xbf16>
    %cst_25 = arith.constant dense<0.000000e+00> : vector<5x5xf32>
    %70 = tpu.matmul %67, %68, %cst_25 {dimension_numbers = #tpu.dot_dimension_numbers<[1], [1], [0], [0], [0, 0, 1, 0], [], []>} : vector<5x64xbf16>, vector<5x64xbf16>, vector<5x5xf32> -> vector<5x5xf32>
    %cst_26 = arith.constant 1.250000e-01 : f32
    %71 = vector.broadcast %cst_26 : f32 to vector<5x5xf32>
    %72 = arith.mulf %70, %71 : vector<5x5xf32>
    %cst_27 = arith.constant dense<0xFF800000> : vector<5xf32>
    %73 = vector.multi_reduction <maximumf>, %72, %cst_27 [1] : vector<5x5xf32> to vector<5xf32>
    %74 = vector.shape_cast %73 : vector<5xf32> to vector<5x1xf32>
    %75 = vector.broadcast %74 : vector<5x1xf32> to vector<5x5xf32>
    %76 = arith.subf %72, %75 : vector<5x5xf32>
    %77 = math.exp %76 : vector<5x5xf32>
    %cst_28 = arith.constant dense<0.000000e+00> : vector<5xf32>
    %78 = vector.multi_reduction <add>, %77, %cst_28 [1] : vector<5x5xf32> to vector<5xf32>
    %79 = vector.shape_cast %78 : vector<5xf32> to vector<5x1xf32>
    %80 = vector.broadcast %79 : vector<5x1xf32> to vector<5x5xf32>
    %81 = arith.divf %77, %80 : vector<5x5xf32>
    %82 = arith.truncf %81 : vector<5x5xf32> to vector<5x5xbf16>
    %cst_29 = arith.constant dense<0.000000e+00> : vector<5x64xf32>
    %83 = tpu.matmul %82, %69, %cst_29 {dimension_numbers = #tpu.dot_dimension_numbers<[1], [0], [0], [1], [0, 0, 1, 1], [], []>} : vector<5x5xbf16>, vector<5x64xbf16>, vector<5x64xf32> -> vector<5x64xf32>
    %84 = vector.extract_strided_slice %32 {offsets = [0, 192], sizes = [5, 64], strides = [1, 1]} : vector<5x768xbf16> to vector<5x64xbf16>
    %85 = vector.extract_strided_slice %32 {offsets = [0, 448], sizes = [5, 64], strides = [1, 1]} : vector<5x768xbf16> to vector<5x64xbf16>
    %86 = vector.extract_strided_slice %32 {offsets = [0, 704], sizes = [5, 64], strides = [1, 1]} : vector<5x768xbf16> to vector<5x64xbf16>
    %cst_30 = arith.constant dense<0.000000e+00> : vector<5x5xf32>
    %87 = tpu.matmul %84, %85, %cst_30 {dimension_numbers = #tpu.dot_dimension_numbers<[1], [1], [0], [0], [0, 0, 1, 0], [], []>} : vector<5x64xbf16>, vector<5x64xbf16>, vector<5x5xf32> -> vector<5x5xf32>
    %cst_31 = arith.constant 1.250000e-01 : f32
    %88 = vector.broadcast %cst_31 : f32 to vector<5x5xf32>
    %89 = arith.mulf %87, %88 : vector<5x5xf32>
    %cst_32 = arith.constant dense<0xFF800000> : vector<5xf32>
    %90 = vector.multi_reduction <maximumf>, %89, %cst_32 [1] : vector<5x5xf32> to vector<5xf32>
    %91 = vector.shape_cast %90 : vector<5xf32> to vector<5x1xf32>
    %92 = vector.broadcast %91 : vector<5x1xf32> to vector<5x5xf32>
    %93 = arith.subf %89, %92 : vector<5x5xf32>
    %94 = math.exp %93 : vector<5x5xf32>
    %cst_33 = arith.constant dense<0.000000e+00> : vector<5xf32>
    %95 = vector.multi_reduction <add>, %94, %cst_33 [1] : vector<5x5xf32> to vector<5xf32>
    %96 = vector.shape_cast %95 : vector<5xf32> to vector<5x1xf32>
    %97 = vector.broadcast %96 : vector<5x1xf32> to vector<5x5xf32>
    %98 = arith.divf %94, %97 : vector<5x5xf32>
    %99 = arith.truncf %98 : vector<5x5xf32> to vector<5x5xbf16>
    %cst_34 = arith.constant dense<0.000000e+00> : vector<5x64xf32>
    %100 = tpu.matmul %99, %86, %cst_34 {dimension_numbers = #tpu.dot_dimension_numbers<[1], [0], [0], [1], [0, 0, 1, 1], [], []>} : vector<5x5xbf16>, vector<5x64xbf16>, vector<5x64xf32> -> vector<5x64xf32>
    %101 = tpu.concatenate %49, %66, %83, %100 in 1 : vector<5x64xf32>, vector<5x64xf32>, vector<5x64xf32>, vector<5x64xf32> -> vector<5x256xf32>
    %102 = arith.truncf %101 : vector<5x256xf32> to vector<5x256xbf16>
    %c0_35 = arith.constant 0 : index
    %c0_36 = arith.constant 0 : index
    %103 = vector.load %arg6[%c0_35, %c0_36] : memref<256x256xbf16, #tpu.memory_space<vmem>>, vector<256x256xbf16>
    %cst_37 = arith.constant dense<0.000000e+00> : vector<5x256xf32>
    %104 = tpu.matmul %102, %103, %cst_37 {dimension_numbers = #tpu.dot_dimension_numbers<[1], [0], [0], [1], [0, 0, 1, 1], [], []>} : vector<5x256xbf16>, vector<256x256xbf16>, vector<5x256xf32> -> vector<5x256xf32>
    %c0_38 = arith.constant 0 : index
    %c0_39 = arith.constant 0 : index
    %105 = vector.load %arg7[%c0_38, %c0_39] : memref<1x256xf32, #tpu.memory_space<vmem>>, vector<1x256xf32>
    %106 = vector.broadcast %105 : vector<1x256xf32> to vector<5x256xf32>
    %107 = arith.addf %104, %106 : vector<5x256xf32>
    %108 = arith.addf %1, %107 : vector<5x256xf32>
    %cst_40 = arith.constant dense<0.000000e+00> : vector<5xf32>
    %109 = vector.multi_reduction <add>, %108, %cst_40 [1] : vector<5x256xf32> to vector<5xf32>
    %110 = vector.shape_cast %109 : vector<5xf32> to vector<5x1xf32>
    %cst_41 = arith.constant 2.560000e+02 : f32
    %111 = vector.broadcast %cst_41 : f32 to vector<5x1xf32>
    %112 = arith.divf %110, %111 : vector<5x1xf32>
    %113 = vector.broadcast %112 : vector<5x1xf32> to vector<5x256xf32>
    %114 = arith.subf %108, %113 : vector<5x256xf32>
    %115 = arith.mulf %114, %114 : vector<5x256xf32>
    %cst_42 = arith.constant dense<0.000000e+00> : vector<5xf32>
    %116 = vector.multi_reduction <add>, %115, %cst_42 [1] : vector<5x256xf32> to vector<5xf32>
    %117 = vector.shape_cast %116 : vector<5xf32> to vector<5x1xf32>
    %cst_43 = arith.constant 2.560000e+02 : f32
    %118 = vector.broadcast %cst_43 : f32 to vector<5x1xf32>
    %119 = arith.divf %117, %118 : vector<5x1xf32>
    %120 = vector.broadcast %112 : vector<5x1xf32> to vector<5x256xf32>
    %121 = arith.subf %108, %120 : vector<5x256xf32>
    %cst_44 = arith.constant 9.99999974E-6 : f32
    %122 = vector.broadcast %cst_44 : f32 to vector<5x1xf32>
    %123 = arith.addf %119, %122 : vector<5x1xf32>
    %124 = math.rsqrt %123 : vector<5x1xf32>
    %125 = vector.broadcast %124 : vector<5x1xf32> to vector<5x256xf32>
    %126 = arith.mulf %121, %125 : vector<5x256xf32>
    %c0_45 = arith.constant 0 : index
    %c0_46 = arith.constant 0 : index
    %127 = vector.load %arg8[%c0_45, %c0_46] : memref<1x256xf32, #tpu.memory_space<vmem>>, vector<1x256xf32>
    %128 = vector.broadcast %127 : vector<1x256xf32> to vector<5x256xf32>
    %129 = arith.mulf %126, %128 : vector<5x256xf32>
    %c0_47 = arith.constant 0 : index
    %c0_48 = arith.constant 0 : index
    %130 = vector.load %arg9[%c0_47, %c0_48] : memref<1x256xf32, #tpu.memory_space<vmem>>, vector<1x256xf32>
    %131 = vector.broadcast %130 : vector<1x256xf32> to vector<5x256xf32>
    %132 = arith.addf %129, %131 : vector<5x256xf32>
    %133 = arith.truncf %132 : vector<5x256xf32> to vector<5x256xbf16>
    %c0_49 = arith.constant 0 : index
    %c0_50 = arith.constant 0 : index
    %134 = vector.load %arg10[%c0_49, %c0_50] : memref<256x128xbf16, #tpu.memory_space<vmem>>, vector<256x128xbf16>
    %cst_51 = arith.constant dense<0.000000e+00> : vector<5x128xf32>
    %135 = tpu.matmul %133, %134, %cst_51 {dimension_numbers = #tpu.dot_dimension_numbers<[1], [0], [0], [1], [0, 0, 1, 1], [], []>} : vector<5x256xbf16>, vector<256x128xbf16>, vector<5x128xf32> -> vector<5x128xf32>
    %c0_52 = arith.constant 0 : index
    %c0_53 = arith.constant 0 : index
    %136 = vector.load %arg11[%c0_52, %c0_53] : memref<1x128xf32, #tpu.memory_space<vmem>>, vector<1x128xf32>
    %137 = vector.broadcast %136 : vector<1x128xf32> to vector<5x128xf32>
    %138 = arith.addf %135, %137 : vector<5x128xf32>
    %cst_54 = arith.constant 5.000000e-01 : f32
    %139 = vector.broadcast %cst_54 : f32 to vector<5x128xf32>
    %140 = arith.mulf %139, %138 : vector<5x128xf32>
    %cst_55 = arith.constant 4.471500e-02 : f32
    %141 = vector.broadcast %cst_55 : f32 to vector<5x128xf32>
    %142 = arith.mulf %141, %138 : vector<5x128xf32>
    %143 = arith.mulf %142, %138 : vector<5x128xf32>
    %144 = arith.mulf %143, %138 : vector<5x128xf32>
    %145 = arith.addf %138, %144 : vector<5x128xf32>
    %cst_56 = arith.constant 0.797884583 : f32
    %146 = vector.broadcast %cst_56 : f32 to vector<5x128xf32>
    %147 = arith.mulf %146, %145 : vector<5x128xf32>
    %148 = math.tanh %147 : vector<5x128xf32>
    %cst_57 = arith.constant 1.000000e+00 : f32
    %149 = vector.broadcast %cst_57 : f32 to vector<5x128xf32>
    %150 = arith.addf %149, %148 : vector<5x128xf32>
    %151 = arith.mulf %140, %150 : vector<5x128xf32>
    %152 = arith.truncf %151 : vector<5x128xf32> to vector<5x128xbf16>
    %c0_58 = arith.constant 0 : index
    %c0_59 = arith.constant 0 : index
    %153 = vector.load %arg12[%c0_58, %c0_59] : memref<128x256xbf16, #tpu.memory_space<vmem>>, vector<128x256xbf16>
    %cst_60 = arith.constant dense<0.000000e+00> : vector<5x256xf32>
    %154 = tpu.matmul %152, %153, %cst_60 {dimension_numbers = #tpu.dot_dimension_numbers<[1], [0], [0], [1], [0, 0, 1, 1], [], []>} : vector<5x128xbf16>, vector<128x256xbf16>, vector<5x256xf32> -> vector<5x256xf32>
    %c0_61 = arith.constant 0 : index
    %c0_62 = arith.constant 0 : index
    %155 = vector.load %arg13[%c0_61, %c0_62] : memref<1x256xf32, #tpu.memory_space<vmem>>, vector<1x256xf32>
    %156 = vector.broadcast %155 : vector<1x256xf32> to vector<5x256xf32>
    %157 = arith.addf %154, %156 : vector<5x256xf32>
    %158 = arith.addf %108, %157 : vector<5x256xf32>
    %c0_63 = arith.constant 0 : index
    %c0_64 = arith.constant 0 : index
    %c0_65 = arith.constant 0 : index
    %159 = vector.load %arg14[%c0_63, %c0_64, %c0_65] : memref<1x5x256xf32, #tpu.memory_space<vmem>>, vector<1x5x256xf32>
    %160 = vector.shape_cast %159 : vector<1x5x256xf32> to vector<5x256xf32>
    %161 = vector.shape_cast %158 : vector<5x256xf32> to vector<1x5x256xf32>
    tpu.vector_store %arg14[%c0_63, %c0_64, %c0_65], %161 {strides = array<i32>} : memref<1x5x256xf32, #tpu.memory_space<vmem>>, vector<1x5x256xf32>,
    return
  }
  func.func @transform_0(%arg0: i32) -> (i32, i32, i32) {
    %c0_i32 = arith.constant 0 : i32
    %c0_i32_0 = arith.constant 0 : i32
    %c0_i32_1 = arith.constant 0 : i32
    return %arg0, %c0_i32, %c0_i32_0 : i32, i32, i32
  }
  func.func @transform_1(%arg0: i32) -> (i32, i32) {
    %c0_i32 = arith.constant 0 : i32
    %c0_i32_0 = arith.constant 0 : i32
    %c0_i32_1 = arith.constant 0 : i32
    return %c0_i32, %c0_i32_0 : i32, i32
  }
  func.func @transform_2(%arg0: i32) -> (i32, i32) {
    %c0_i32 = arith.constant 0 : i32
    %c0_i32_0 = arith.constant 0 : i32
    %c0_i32_1 = arith.constant 0 : i32
    return %c0_i32, %c0_i32_0 : i32, i32
  }
  func.func @transform_3(%arg0: i32) -> (i32, i32) {
    %c0_i32 = arith.constant 0 : i32
    %c0_i32_0 = arith.constant 0 : i32
    %c0_i32_1 = arith.constant 0 : i32
    return %c0_i32, %c0_i32_0 : i32, i32
  }
  func.func @transform_4(%arg0: i32) -> (i32, i32) {
    %c0_i32 = arith.constant 0 : i32
    %c0_i32_0 = arith.constant 0 : i32
    %c0_i32_1 = arith.constant 0 : i32
    return %c0_i32, %c0_i32_0 : i32, i32
  }
  func.func @transform_5(%arg0: i32) -> (i32, i32) {
    %c0_i32 = arith.constant 0 : i32
    %c0_i32_0 = arith.constant 0 : i32
    %c0_i32_1 = arith.constant 0 : i32
    return %c0_i32, %c0_i32_0 : i32, i32
  }
  func.func @transform_6(%arg0: i32) -> (i32, i32) {
    %c0_i32 = arith.constant 0 : i32
    %c0_i32_0 = arith.constant 0 : i32
    %c0_i32_1 = arith.constant 0 : i32
    return %c0_i32, %c0_i32_0 : i32, i32
  }
  func.func @transform_7(%arg0: i32) -> (i32, i32) {
    %c0_i32 = arith.constant 0 : i32
    %c0_i32_0 = arith.constant 0 : i32
    %c0_i32_1 = arith.constant 0 : i32
    return %c0_i32, %c0_i32_0 : i32, i32
  }
  func.func @transform_8(%arg0: i32) -> (i32, i32) {
    %c0_i32 = arith.constant 0 : i32
    %c0_i32_0 = arith.constant 0 : i32
    %c0_i32_1 = arith.constant 0 : i32
    return %c0_i32, %c0_i32_0 : i32, i32
  }
  func.func @transform_9(%arg0: i32) -> (i32, i32) {
    %c0_i32 = arith.constant 0 : i32
    %c0_i32_0 = arith.constant 0 : i32
    %c0_i32_1 = arith.constant 0 : i32
    return %c0_i32, %c0_i32_0 : i32, i32
  }
  func.func @transform_10(%arg0: i32) -> (i32, i32) {
    %c0_i32 = arith.constant 0 : i32
    %c0_i32_0 = arith.constant 0 : i32
    %c0_i32_1 = arith.constant 0 : i32
    return %c0_i32, %c0_i32_0 : i32, i32
  }
  func.func @transform_11(%arg0: i32) -> (i32, i32) {
    %c0_i32 = arith.constant 0 : i32
    %c0_i32_0 = arith.constant 0 : i32
    %c0_i32_1 = arith.constant 0 : i32
    return %c0_i32, %c0_i32_0 : i32, i32
  }
  func.func @transform_12(%arg0: i32) -> (i32, i32) {
    %c0_i32 = arith.constant 0 : i32
    %c0_i32_0 = arith.constant 0 : i32
    %c0_i32_1 = arith.constant 0 : i32
    return %c0_i32, %c0_i32_0 : i32, i32
  }
  func.func @transform_13(%arg0: i32) -> (i32, i32, i32) {
    %c0_i32 = arith.constant 0 : i32
    %c0_i32_0 = arith.constant 0 : i32
    %c0_i32_1 = arith.constant 0 : i32
    return %arg0, %c0_i32, %c0_i32_0 : i32, i32, i32
  }
}

module attributes {stable_mosaic.version = 11 : i64} {
  func.func @_matmul_kernel(%arg0: i32, %arg1: i32, %arg2: i32, %arg3: memref<32x128xbf16, #tpu.memory_space<vmem>>, %arg4: memref<128x512xbf16, #tpu.memory_space<vmem>>, %arg5: memref<1x512xf32, #tpu.memory_space<vmem>>, %arg6: memref<32x512xbf16, #tpu.memory_space<vmem>>, %arg7: memref<32x512xf32, #tpu.memory_space<vmem>>) attributes {dimension_semantics = [#tpu.dimension_semantics<parallel>, #tpu.dimension_semantics<parallel>, #tpu.dimension_semantics<arbitrary>], iteration_bounds = array<i64: 1, 4, 1>, scalar_prefetch = 0 : i64, scratch_operands = 1 : i64, tpu.core_type = #tpu.core_type<tc>, window_params = [{transform_indices = @transform_0, window_bounds = array<i64: 32, 128>}, {transform_indices = @transform_1, window_bounds = array<i64: 128, 512>}, {transform_indices = @transform_2, window_bounds = array<i64: 1, 512>}, {transform_indices = @transform_3, window_bounds = array<i64: 32, 512>}]} {
    %c0_i32 = arith.constant 0 : i32
    %0 = arith.cmpi eq, %arg2, %c0_i32 : i32
    %1 = arith.extui %0 : i1 to i32
    %c0_i32_0 = arith.constant 0 : i32
    %2 = arith.cmpi ne, %1, %c0_i32_0 : i32
    scf.if %2 {
      %cst_10 = arith.constant 0.000000e+00 : f32
      %12 = vector.broadcast %cst_10 : f32 to vector<32x512xf32>
      %c0_11 = arith.constant 0 : index
      %c0_12 = arith.constant 0 : index
      %13 = vector.load %arg7[%c0_11, %c0_12] : memref<32x512xf32, #tpu.memory_space<vmem>>, vector<32x512xf32>
      tpu.vector_store %arg7[%c0_11, %c0_12], %12 {strides = array<i32>} : memref<32x512xf32, #tpu.memory_space<vmem>>, vector<32x512xf32>,
    } else {
    }
    %c0 = arith.constant 0 : index
    %c0_1 = arith.constant 0 : index
    %3 = vector.load %arg7[%c0, %c0_1] : memref<32x512xf32, #tpu.memory_space<vmem>>, vector<32x512xf32>
    %c0_2 = arith.constant 0 : index
    %c0_3 = arith.constant 0 : index
    %4 = vector.load %arg3[%c0_2, %c0_3] : memref<32x128xbf16, #tpu.memory_space<vmem>>, vector<32x128xbf16>
    %c0_4 = arith.constant 0 : index
    %c0_5 = arith.constant 0 : index
    %5 = vector.load %arg4[%c0_4, %c0_5] : memref<128x512xbf16, #tpu.memory_space<vmem>>, vector<128x512xbf16>
    %cst = arith.constant dense<0.000000e+00> : vector<32x512xf32>
    %6 = tpu.matmul %4, %5, %cst {dimension_numbers = #tpu.dot_dimension_numbers<[1], [0], [0], [1], [0, 0, 1, 1], [], []>} : vector<32x128xbf16>, vector<128x512xbf16>, vector<32x512xf32> -> vector<32x512xf32>
    %7 = arith.addf %3, %6 : vector<32x512xf32>
    %c0_6 = arith.constant 0 : index
    %c0_7 = arith.constant 0 : index
    %8 = vector.load %arg7[%c0_6, %c0_7] : memref<32x512xf32, #tpu.memory_space<vmem>>, vector<32x512xf32>
    tpu.vector_store %arg7[%c0_6, %c0_7], %7 {strides = array<i32>} : memref<32x512xf32, #tpu.memory_space<vmem>>, vector<32x512xf32>,
    %c0_i32_8 = arith.constant 0 : i32
    %9 = arith.cmpi eq, %arg2, %c0_i32_8 : i32
    %10 = arith.extui %9 : i1 to i32
    %c0_i32_9 = arith.constant 0 : i32
    %11 = arith.cmpi ne, %10, %c0_i32_9 : i32
    scf.if %11 {
      %c0_10 = arith.constant 0 : index
      %c0_11 = arith.constant 0 : index
      %12 = vector.load %arg7[%c0_10, %c0_11] : memref<32x512xf32, #tpu.memory_space<vmem>>, vector<32x512xf32>
      %c0_12 = arith.constant 0 : index
      %c0_13 = arith.constant 0 : index
      %13 = vector.load %arg5[%c0_12, %c0_13] : memref<1x512xf32, #tpu.memory_space<vmem>>, vector<1x512xf32>
      %14 = vector.broadcast %13 : vector<1x512xf32> to vector<32x512xf32>
      %15 = arith.addf %12, %14 : vector<32x512xf32>
      %16 = arith.truncf %15 : vector<32x512xf32> to vector<32x512xbf16>
      %c0_14 = arith.constant 0 : index
      %c0_15 = arith.constant 0 : index
      %17 = vector.load %arg6[%c0_14, %c0_15] : memref<32x512xbf16, #tpu.memory_space<vmem>>, vector<32x512xbf16>
      tpu.vector_store %arg6[%c0_14, %c0_15], %16 {strides = array<i32>} : memref<32x512xbf16, #tpu.memory_space<vmem>>, vector<32x512xbf16>,
    } else {
    }
    return
  }
  func.func @transform_0(%arg0: i32, %arg1: i32, %arg2: i32) -> (i32, i32) {
    %c0_i32 = arith.constant 0 : i32
    return %arg0, %arg2 : i32, i32
  }
  func.func @transform_1(%arg0: i32, %arg1: i32, %arg2: i32) -> (i32, i32) {
    %c0_i32 = arith.constant 0 : i32
    return %arg2, %arg1 : i32, i32
  }
  func.func @transform_2(%arg0: i32, %arg1: i32, %arg2: i32) -> (i32, i32) {
    %c0_i32 = arith.constant 0 : i32
    %c0_i32_0 = arith.constant 0 : i32
    return %c0_i32, %arg1 : i32, i32
  }
  func.func @transform_3(%arg0: i32, %arg1: i32, %arg2: i32) -> (i32, i32) {
    %c0_i32 = arith.constant 0 : i32
    return %arg0, %arg1 : i32, i32
  }
}

module attributes {stable_mosaic.version = 11 : i64} {
  func.func @_matmul_kernel(%arg0: i32, %arg1: i32, %arg2: i32, %arg3: memref<400x128xbf16, #tpu.memory_space<vmem>>, %arg4: memref<128x512xbf16, #tpu.memory_space<vmem>>, %arg5: memref<1x512xf32, #tpu.memory_space<vmem>>, %arg6: memref<400x512xbf16, #tpu.memory_space<vmem>>, %arg7: memref<400x512xf32, #tpu.memory_space<vmem>>) attributes {dimension_semantics = [#tpu.dimension_semantics<parallel>, #tpu.dimension_semantics<parallel>, #tpu.dimension_semantics<arbitrary>], iteration_bounds = array<i64: 1, 1, 1>, scalar_prefetch = 0 : i64, scratch_operands = 1 : i64, tpu.core_type = #tpu.core_type<tc>, window_params = [{transform_indices = @transform_0, window_bounds = array<i64: 400, 128>}, {transform_indices = @transform_1, window_bounds = array<i64: 128, 512>}, {transform_indices = @transform_2, window_bounds = array<i64: 1, 512>}, {transform_indices = @transform_3, window_bounds = array<i64: 400, 512>}]} {
    %c0_i32 = arith.constant 0 : i32
    %0 = arith.cmpi eq, %arg2, %c0_i32 : i32
    %1 = arith.extui %0 : i1 to i32
    %c0_i32_0 = arith.constant 0 : i32
    %2 = arith.cmpi ne, %1, %c0_i32_0 : i32
    scf.if %2 {
      %cst_10 = arith.constant 0.000000e+00 : f32
      %12 = vector.broadcast %cst_10 : f32 to vector<400x512xf32>
      %c0_11 = arith.constant 0 : index
      %c0_12 = arith.constant 0 : index
      %13 = vector.load %arg7[%c0_11, %c0_12] : memref<400x512xf32, #tpu.memory_space<vmem>>, vector<400x512xf32>
      tpu.vector_store %arg7[%c0_11, %c0_12], %12 {strides = array<i32>} : memref<400x512xf32, #tpu.memory_space<vmem>>, vector<400x512xf32>,
    } else {
    }
    %c0 = arith.constant 0 : index
    %c0_1 = arith.constant 0 : index
    %3 = vector.load %arg7[%c0, %c0_1] : memref<400x512xf32, #tpu.memory_space<vmem>>, vector<400x512xf32>
    %c0_2 = arith.constant 0 : index
    %c0_3 = arith.constant 0 : index
    %4 = vector.load %arg3[%c0_2, %c0_3] : memref<400x128xbf16, #tpu.memory_space<vmem>>, vector<400x128xbf16>
    %c0_4 = arith.constant 0 : index
    %c0_5 = arith.constant 0 : index
    %5 = vector.load %arg4[%c0_4, %c0_5] : memref<128x512xbf16, #tpu.memory_space<vmem>>, vector<128x512xbf16>
    %cst = arith.constant dense<0.000000e+00> : vector<400x512xf32>
    %6 = tpu.matmul %4, %5, %cst {dimension_numbers = #tpu.dot_dimension_numbers<[1], [0], [0], [1], [0, 0, 1, 1], [], []>} : vector<400x128xbf16>, vector<128x512xbf16>, vector<400x512xf32> -> vector<400x512xf32>
    %7 = arith.addf %3, %6 : vector<400x512xf32>
    %c0_6 = arith.constant 0 : index
    %c0_7 = arith.constant 0 : index
    %8 = vector.load %arg7[%c0_6, %c0_7] : memref<400x512xf32, #tpu.memory_space<vmem>>, vector<400x512xf32>
    tpu.vector_store %arg7[%c0_6, %c0_7], %7 {strides = array<i32>} : memref<400x512xf32, #tpu.memory_space<vmem>>, vector<400x512xf32>,
    %c0_i32_8 = arith.constant 0 : i32
    %9 = arith.cmpi eq, %arg2, %c0_i32_8 : i32
    %10 = arith.extui %9 : i1 to i32
    %c0_i32_9 = arith.constant 0 : i32
    %11 = arith.cmpi ne, %10, %c0_i32_9 : i32
    scf.if %11 {
      %c0_10 = arith.constant 0 : index
      %c0_11 = arith.constant 0 : index
      %12 = vector.load %arg7[%c0_10, %c0_11] : memref<400x512xf32, #tpu.memory_space<vmem>>, vector<400x512xf32>
      %c0_12 = arith.constant 0 : index
      %c0_13 = arith.constant 0 : index
      %13 = vector.load %arg5[%c0_12, %c0_13] : memref<1x512xf32, #tpu.memory_space<vmem>>, vector<1x512xf32>
      %14 = vector.broadcast %13 : vector<1x512xf32> to vector<400x512xf32>
      %15 = arith.addf %12, %14 : vector<400x512xf32>
      %16 = arith.truncf %15 : vector<400x512xf32> to vector<400x512xbf16>
      %c0_14 = arith.constant 0 : index
      %c0_15 = arith.constant 0 : index
      %17 = vector.load %arg6[%c0_14, %c0_15] : memref<400x512xbf16, #tpu.memory_space<vmem>>, vector<400x512xbf16>
      tpu.vector_store %arg6[%c0_14, %c0_15], %16 {strides = array<i32>} : memref<400x512xbf16, #tpu.memory_space<vmem>>, vector<400x512xbf16>,
    } else {
    }
    return
  }
  func.func @transform_0(%arg0: i32, %arg1: i32, %arg2: i32) -> (i32, i32) {
    %c0_i32 = arith.constant 0 : i32
    return %arg0, %arg2 : i32, i32
  }
  func.func @transform_1(%arg0: i32, %arg1: i32, %arg2: i32) -> (i32, i32) {
    %c0_i32 = arith.constant 0 : i32
    return %arg2, %arg1 : i32, i32
  }
  func.func @transform_2(%arg0: i32, %arg1: i32, %arg2: i32) -> (i32, i32) {
    %c0_i32 = arith.constant 0 : i32
    %c0_i32_0 = arith.constant 0 : i32
    return %c0_i32, %arg1 : i32, i32
  }
  func.func @transform_3(%arg0: i32, %arg1: i32, %arg2: i32) -> (i32, i32) {
    %c0_i32 = arith.constant 0 : i32
    return %arg0, %arg1 : i32, i32
  }
}

module attributes {stable_mosaic.version = 11 : i64} {
  func.func @_matmul_kernel(%arg0: i32, %arg1: i32, %arg2: i32, %arg3: memref<512x128xbf16, #tpu.memory_space<vmem>>, %arg4: memref<128x128xbf16, #tpu.memory_space<vmem>>, %arg5: memref<1x128xf32, #tpu.memory_space<vmem>>, %arg6: memref<512x128xf32, #tpu.memory_space<vmem>>, %arg7: memref<512x128xf32, #tpu.memory_space<vmem>>) attributes {dimension_semantics = [#tpu.dimension_semantics<parallel>, #tpu.dimension_semantics<parallel>, #tpu.dimension_semantics<arbitrary>], iteration_bounds = array<i64: 4, 1, 1>, scalar_prefetch = 0 : i64, scratch_operands = 1 : i64, tpu.core_type = #tpu.core_type<tc>, window_params = [{transform_indices = @transform_0, window_bounds = array<i64: 512, 128>}, {transform_indices = @transform_1, window_bounds = array<i64: 128, 128>}, {transform_indices = @transform_2, window_bounds = array<i64: 1, 128>}, {transform_indices = @transform_3, window_bounds = array<i64: 512, 128>}]} {
    %c0_i32 = arith.constant 0 : i32
    %0 = arith.cmpi eq, %arg2, %c0_i32 : i32
    %1 = arith.extui %0 : i1 to i32
    %c0_i32_0 = arith.constant 0 : i32
    %2 = arith.cmpi ne, %1, %c0_i32_0 : i32
    scf.if %2 {
      %cst_10 = arith.constant 0.000000e+00 : f32
      %12 = vector.broadcast %cst_10 : f32 to vector<512x128xf32>
      %c0_11 = arith.constant 0 : index
      %c0_12 = arith.constant 0 : index
      %13 = vector.load %arg7[%c0_11, %c0_12] : memref<512x128xf32, #tpu.memory_space<vmem>>, vector<512x128xf32>
      tpu.vector_store %arg7[%c0_11, %c0_12], %12 {strides = array<i32>} : memref<512x128xf32, #tpu.memory_space<vmem>>, vector<512x128xf32>,
    } else {
    }
    %c0 = arith.constant 0 : index
    %c0_1 = arith.constant 0 : index
    %3 = vector.load %arg7[%c0, %c0_1] : memref<512x128xf32, #tpu.memory_space<vmem>>, vector<512x128xf32>
    %c0_2 = arith.constant 0 : index
    %c0_3 = arith.constant 0 : index
    %4 = vector.load %arg3[%c0_2, %c0_3] : memref<512x128xbf16, #tpu.memory_space<vmem>>, vector<512x128xbf16>
    %c0_4 = arith.constant 0 : index
    %c0_5 = arith.constant 0 : index
    %5 = vector.load %arg4[%c0_4, %c0_5] : memref<128x128xbf16, #tpu.memory_space<vmem>>, vector<128x128xbf16>
    %cst = arith.constant dense<0.000000e+00> : vector<512x128xf32>
    %6 = tpu.matmul %4, %5, %cst {dimension_numbers = #tpu.dot_dimension_numbers<[1], [0], [0], [1], [0, 0, 1, 1], [], []>} : vector<512x128xbf16>, vector<128x128xbf16>, vector<512x128xf32> -> vector<512x128xf32>
    %7 = arith.addf %3, %6 : vector<512x128xf32>
    %c0_6 = arith.constant 0 : index
    %c0_7 = arith.constant 0 : index
    %8 = vector.load %arg7[%c0_6, %c0_7] : memref<512x128xf32, #tpu.memory_space<vmem>>, vector<512x128xf32>
    tpu.vector_store %arg7[%c0_6, %c0_7], %7 {strides = array<i32>} : memref<512x128xf32, #tpu.memory_space<vmem>>, vector<512x128xf32>,
    %c0_i32_8 = arith.constant 0 : i32
    %9 = arith.cmpi eq, %arg2, %c0_i32_8 : i32
    %10 = arith.extui %9 : i1 to i32
    %c0_i32_9 = arith.constant 0 : i32
    %11 = arith.cmpi ne, %10, %c0_i32_9 : i32
    scf.if %11 {
      %c0_10 = arith.constant 0 : index
      %c0_11 = arith.constant 0 : index
      %12 = vector.load %arg7[%c0_10, %c0_11] : memref<512x128xf32, #tpu.memory_space<vmem>>, vector<512x128xf32>
      %c0_12 = arith.constant 0 : index
      %c0_13 = arith.constant 0 : index
      %13 = vector.load %arg5[%c0_12, %c0_13] : memref<1x128xf32, #tpu.memory_space<vmem>>, vector<1x128xf32>
      %14 = vector.broadcast %13 : vector<1x128xf32> to vector<512x128xf32>
      %15 = arith.addf %12, %14 : vector<512x128xf32>
      %c0_14 = arith.constant 0 : index
      %c0_15 = arith.constant 0 : index
      %16 = vector.load %arg6[%c0_14, %c0_15] : memref<512x128xf32, #tpu.memory_space<vmem>>, vector<512x128xf32>
      tpu.vector_store %arg6[%c0_14, %c0_15], %15 {strides = array<i32>} : memref<512x128xf32, #tpu.memory_space<vmem>>, vector<512x128xf32>,
    } else {
    }
    return
  }
  func.func @transform_0(%arg0: i32, %arg1: i32, %arg2: i32) -> (i32, i32) {
    %c0_i32 = arith.constant 0 : i32
    return %arg0, %arg2 : i32, i32
  }
  func.func @transform_1(%arg0: i32, %arg1: i32, %arg2: i32) -> (i32, i32) {
    %c0_i32 = arith.constant 0 : i32
    return %arg2, %arg1 : i32, i32
  }
  func.func @transform_2(%arg0: i32, %arg1: i32, %arg2: i32) -> (i32, i32) {
    %c0_i32 = arith.constant 0 : i32
    %c0_i32_0 = arith.constant 0 : i32
    return %c0_i32, %arg1 : i32, i32
  }
  func.func @transform_3(%arg0: i32, %arg1: i32, %arg2: i32) -> (i32, i32) {
    %c0_i32 = arith.constant 0 : i32
    return %arg0, %arg1 : i32, i32
  }
}

</mosaic_0001>

<bundles_post_ra>
// kernel: vit_forward.7
= control target key start
LH: loop header
LB: loop body
LE: loop exit
PB: predicated region body
PF: predicated region fallthrough
CT: control target
= control target key end

     0   :  { %8 = vsyncpa [#allocation4], 0  ;;  %s531_s15 = smov [#allocation3]   ;;  %s771_s0 = inlined_call_operand.vmem [shape: bf16[16,256], index: 0, kind: input, shape index: {}]   ;;  %s772_s1 = inlined_call_operand.vmem [shape: bf16[256,256], index: 1, kind: input, shape index: {}]   ;;  %s773_s2 = inlined_call_operand.hbm [shape: f32[1,256], index: 2, kind: input, shape index: {}]   ;;  %s774_s3 = inlined_call_operand.vmem [shape: f32[16,256], index: 3, kind: output, shape index: {}]  }
   0x1   :  { %s18_s14 = sshll.u32 %s773_s2, 4  ;;  %s20_s16 = sshll.u32 %s531_s15, 4  ;;  %s19_s14 = int_to_ptr.hbm [resolvable:$true] %s18_s14  ;;  %s21_s16 = int_to_ptr.vmem [resolvable:$true] %s20_s16 }
   0x2   :  { %23 = dma.hbm_to_vmem [thread:$0]  %s19_s14, 32, %s21_s16, [#allocation4]  }
   0x3   :  { %529 = dma.done.wait [#allocation4], 32  }
   0x4   :  { %530 = vsyncadd [#allocation4], 4294967264  ;;  %v400_v0 = vld [vmem:[%s772_s1 + $0x70] sm:$0xf]  ;;  %v487_v1 = vld [vmem:[%s772_s1 + $0x74] sm:$0xf0] }
   0x5   :  { %v464_v2 = vld [vmem:[%s772_s1 + $0xf0] sm:$0xf]  ;;  %v401_v3 = vor.u32 %v487_v1, %v400_v0  ;;  %v503_v4 = vld [vmem:[%s772_s1 + $0xf4] sm:$0xf0]  ;;  %v486_v5 = vld [vmem:[%s772_s1 + $0x74] sm:$0xf] }
   0x6   :  { %v402_v6 = vld [vmem:[%s772_s1 + $0x78] sm:$0xf0]  ;;  %v465_v7 = vor.u32 %v503_v4, %v464_v2  ;;  %v502_v9 = vld [vmem:[%s772_s1 + $0xf4] sm:$0xf]  ;;  %v392_v11 = vld [vmem:[%s772_s1 + $0x60] sm:$0xf] }
   0x7   :  { %v405_v8 = vor.u32 %v486_v5, %v402_v6  ;;  %v466_v10 = vld [vmem:[%s772_s1 + $0xf8] sm:$0xf0]  ;;  %244 = vmatpush.bf16.msra.mxu0 %v401_v3  ;;  %v485_v13 = vld [vmem:[%s772_s1 + $0x64] sm:$0xf0]  ;;  %v456_v14 = vld [vmem:[%s772_s1 + $0xe0] sm:$0xf] }
   0x8   :  { %v469_v12 = vor.u32 %v502_v9, %v466_v10  ;;  %v501_v15 = vld [vmem:[%s772_s1 + $0xe4] sm:$0xf0]  ;;  %258 = vmatpush.bf16.msra.mxu1 %v465_v7  ;;  %v393_v16 = vor.u32 %v485_v13, %v392_v11  ;;  %v484_v18 = vld [vmem:[%s772_s1 + $0x64] sm:$0xf]  ;;  %v394_v19 = vld [vmem:[%s772_s1 + $0x68] sm:$0xf0] }
   0x9   :  { %272 = vmatpush.bf16.msra.mxu2 %v405_v8  ;;  %v457_v17 = vor.u32 %v501_v15, %v456_v14  ;;  %v500_v20 = vld [vmem:[%s772_s1 + $0xe4] sm:$0xf]  ;;  %v397_v21 = vor.u32 %v484_v18, %v394_v19  ;;  %v458_v22 = vld [vmem:[%s772_s1 + $0xe8] sm:$0xf0]  ;;  %v384_v23 = vld [vmem:[%s772_s1 + $0x50] sm:$0xf] }
   0xa   :  { %286 = vmatpush.bf16.msra.mxu3 %v469_v12  ;;  %v483_v24 = vld [vmem:[%s772_s1 + $0x54] sm:$0xf0]  ;;  %v461_v25 = vor.u32 %v500_v20, %v458_v22  ;;  %v448_v26 = vld [vmem:[%s772_s1 + $0xd0] sm:$0xf]  ;;  %v482_v28 = vld [vmem:[%s772_s1 + $0x54] sm:$0xf] }
   0xb   :  { %v499_v27 = vld [vmem:[%s772_s1 + $0xd4] sm:$0xf0]  ;;  %245 = vmatpush.bf16.msra.mxu0 %v393_v16  ;;  %v385_v29 = vor.u32 %v483_v24, %v384_v23  ;;  %v386_v30 = vld [vmem:[%s772_s1 + $0x58] sm:$0xf0]  ;;  %v498_v31 = vld [vmem:[%s772_s1 + $0xd4] sm:$0xf] }
   0xc   :  { %v450_v32 = vld [vmem:[%s772_s1 + $0xd8] sm:$0xf0]  ;;  %259 = vmatpush.bf16.msra.mxu1 %v457_v17  ;;  %v449_v33 = vor.u32 %v499_v27, %v448_v26  ;;  %v389_v34 = vor.u32 %v482_v28, %v386_v30  ;;  %v376_v35 = vld [vmem:[%s772_s1 + $0x40] sm:$0xf]  ;;  %v481_v36 = vld [vmem:[%s772_s1 + $0x44] sm:$0xf0] }
   0xd   :  { %273 = vmatpush.bf16.msra.mxu2 %v397_v21  ;;  %v440_v37 = vld [vmem:[%s772_s1 + $0xc0] sm:$0xf]  ;;  %v453_v38 = vor.u32 %v498_v31, %v450_v32  ;;  %v497_v39 = vld [vmem:[%s772_s1 + $0xc4] sm:$0xf0]  ;;  %v480_v40 = vld [vmem:[%s772_s1 + $0x44] sm:$0xf]  ;;  %v377_v44 = vor.u32 %v481_v36, %v376_v35 }
   0xe   :  { %287 = vmatpush.bf16.msra.mxu3 %v461_v25  ;;  %v378_v41 = vld [vmem:[%s772_s1 + $0x48] sm:$0xf0]  ;;  %v496_v42 = vld [vmem:[%s772_s1 + $0xc4] sm:$0xf]  ;;  %v441_v45 = vor.u32 %v497_v39, %v440_v37  ;;  %v368_v47 = vld [vmem:[%s772_s1 + $0x30] sm:$0xf] }
   0xf   :  { %v442_v43 = vld [vmem:[%s772_s1 + $0xc8] sm:$0xf0]  ;;  %246 = vmatpush.bf16.msra.mxu0 %v385_v29  ;;  %v381_v46 = vor.u32 %v480_v40, %v378_v41  ;;  %v479_v48 = vld [vmem:[%s772_s1 + $0x34] sm:$0xf0]  ;;  %v432_v49 = vld [vmem:[%s772_s1 + $0xb0] sm:$0xf] }
  0x10   :  { %260 = vmatpush.bf16.msra.mxu1 %v449_v33  ;;  %v445_v50 = vor.u32 %v496_v42, %v442_v43  ;;  %v495_v51 = vld [vmem:[%s772_s1 + $0xb4] sm:$0xf0]  ;;  %v478_v52 = vld [vmem:[%s772_s1 + $0x34] sm:$0xf]  ;;  %v370_v53 = vld [vmem:[%s772_s1 + $0x38] sm:$0xf0]  ;;  %v369_v56 = vor.u32 %v479_v48, %v368_v47 }
  0x11   :  { %274 = vmatpush.bf16.msra.mxu2 %v389_v34  ;;  %v494_v54 = vld [vmem:[%s772_s1 + $0xb4] sm:$0xf]  ;;  %v434_v55 = vld [vmem:[%s772_s1 + $0xb8] sm:$0xf0]  ;;  %v433_v57 = vor.u32 %v495_v51, %v432_v49  ;;  %v373_v58 = vor.u32 %v478_v52, %v370_v53  ;;  %v360_v59 = vld [vmem:[%s772_s1 + $0x20] sm:$0xf] }
  0x12   :  { %288 = vmatpush.bf16.msra.mxu3 %v453_v38  ;;  %v477_v60 = vld [vmem:[%s772_s1 + $0x24] sm:$0xf0]  ;;  %v424_v61 = vld [vmem:[%s772_s1 + $0xa0] sm:$0xf]  ;;  %v437_v62 = vor.u32 %v494_v54, %v434_v55  ;;  %v476_v0 = vld [vmem:[%s772_s1 + $0x24] sm:$0xf] }
  0x13   :  { %247 = vmatpush.bf16.msra.mxu0 %v377_v44  ;;  %v493_v63 = vld [vmem:[%s772_s1 + $0xa4] sm:$0xf0]  ;;  %v362_v1 = vld [vmem:[%s772_s1 + $0x28] sm:$0xf0]  ;;  %v492_v2 = vld [vmem:[%s772_s1 + $0xa4] sm:$0xf]  ;;  %v361_v4 = vor.u32 %v477_v60, %v360_v59 }
  0x14   :  { %261 = vmatpush.bf16.msra.mxu1 %v441_v45  ;;  %v426_v3 = vld [vmem:[%s772_s1 + $0xa8] sm:$0xf0]  ;;  %v425_v5 = vor.u32 %v493_v63, %v424_v61  ;;  %v365_v6 = vor.u32 %v476_v0, %v362_v1  ;;  %v352_v7 = vld [vmem:[%s772_s1 + $0x10] sm:$0xf]  ;;  %v475_v8 = vld [vmem:[%s772_s1 + $0x14] sm:$0xf0] }
  0x15   :  { %275 = vmatpush.bf16.msra.mxu2 %v381_v46  ;;  %v416_v9 = vld [vmem:[%s772_s1 + $0x90] sm:$0xf]  ;;  %v429_v10 = vor.u32 %v492_v2, %v426_v3  ;;  %v491_v11 = vld [vmem:[%s772_s1 + $0x94] sm:$0xf0]  ;;  %v474_v12 = vld [vmem:[%s772_s1 + $0x14] sm:$0xf]  ;;  %v353_v16 = vor.u32 %v475_v8, %v352_v7 }
  0x16   :  { %289 = vmatpush.bf16.msra.mxu3 %v445_v50  ;;  %v354_v13 = vld [vmem:[%s772_s1 + $0x18] sm:$0xf0]  ;;  %v490_v14 = vld [vmem:[%s772_s1 + $0x94] sm:$0xf]  ;;  %v417_v17 = vor.u32 %v491_v11, %v416_v9  ;;  %v344_v19 = vld [vmem:[%s772_s1] sm:$0xf] }
  0x17   :  { %248 = vmatpush.bf16.msra.mxu0 %v369_v56  ;;  %v418_v15 = vld [vmem:[%s772_s1 + $0x98] sm:$0xf0]  ;;  %v357_v18 = vor.u32 %v474_v12, %v354_v13  ;;  %v473_v20 = vld [vmem:[%s772_s1 + $0x4] sm:$0xf0]  ;;  %v408_v21 = vld [vmem:[%s772_s1 + $0x80] sm:$0xf] }
  0x18   :  { %262 = vmatpush.bf16.msra.mxu1 %v433_v57  ;;  %v421_v22 = vor.u32 %v490_v14, %v418_v15  ;;  %v489_v23 = vld [vmem:[%s772_s1 + $0x84] sm:$0xf0]  ;;  %v472_v24 = vld [vmem:[%s772_s1 + $0x4] sm:$0xf]  ;;  %v346_v25 = vld [vmem:[%s772_s1 + $0x8] sm:$0xf0]  ;;  %v345_v28 = vor.u32 %v473_v20, %v344_v19 }
  0x19   :  { %276 = vmatpush.bf16.msra.mxu2 %v373_v58  ;;  %v488_v26 = vld [vmem:[%s772_s1 + $0x84] sm:$0xf]  ;;  %v410_v27 = vld [vmem:[%s772_s1 + $0x88] sm:$0xf0]  ;;  %v336_v29 = vld [vmem:[%s771_s0] sm:$0xf]  ;;  %v409_v31 = vor.u32 %v489_v23, %v408_v21  ;;  %v349_v32 = vor.u32 %v472_v24, %v346_v25 }
  0x1a   :  { %290 = vmatpush.bf16.msra.mxu3 %v437_v62  ;;  %v471_v30 = vld [vmem:[%s771_s0 + $0x4] sm:$0xf0]  ;;  %v470_v33 = vld [vmem:[%s771_s0 + $0x4] sm:$0xf]  ;;  %v338_v34 = vld [vmem:[%s771_s0 + $0x8] sm:$0xf0]  ;;  %v413_v35 = vor.u32 %v488_v26, %v410_v27 }
  0x1b   :  { %249 = vmatpush.bf16.msra.mxu0 %v361_v4  ;;  %v337_v36 = vor.u32 %v471_v30, %v336_v29  ;;  %v341_v37 = vor.u32 %v470_v33, %v338_v34  ;;  %v315_v38 = vld [vmem:[#allocation3] sm:$0x3] }
  0x1c   :  { %263 = vmatpush.bf16.msra.mxu1 %v425_v5  ;;  %v317_v40 = vperm.slane %v315_v38, 0  ;;  %v318_v45 = vperm.slane %v315_v38, 1 }
  0x1d   :  { %277 = vmatpush.bf16.msra.mxu2 %v365_v6 }
  0x1e   :  { %291 = vmatpush.bf16.msra.mxu3 %v429_v10 }
  0x1f   :  { %250 = vmatpush.bf16.msra.mxu0 %v353_v16 }
  0x20   :  { %264 = vmatpush.bf16.msra.mxu1 %v417_v17 }
  0x21   :  { %278 = vmatpush.bf16.msra.mxu2 %v357_v18 }
  0x22   :  { %292 = vmatpush.bf16.msra.mxu3 %v421_v22 }
  0x23   :  { %251 = vmatpush.bf16.msra.mxu0 %v345_v28 }
  0x24   :  { %265 = vmatpush.bf16.msra.mxu1 %v409_v31 }
  0x25   :  { %279 = vmatpush.bf16.msra.mxu2 %v349_v32 }
  0x26   :  { %293 = vmatpush.bf16.msra.mxu3 %v413_v35  ;;  %252 = vmatmul.bf16.vlgmr.msra.gmra.mxu0 %v337_v36 }
  0x27   :  { %266 = vmatmul.bf16.vlgmr.msra.gmra.mxu1 %v341_v37 }
  0x28   :  { %280 = vmatmul.bf16.vlgmr.msra.gmra.mxu2 %v337_v36 }
  0x29   :  { %294 = vmatmul.bf16.vlgmr.msra.gmra.mxu3 %v341_v37 }
  0xa3   :  { %v253_v39 = vpop.f32.mrf.mxu0 }
  0xa4   :  { %v267_v41 = vpop.f32.mrf.mxu1 }
  0xa5   :  { %v268_v42 = vadd.f32 %v267_v41, %v253_v39 }
  0xa7   :  { %v321_v43 = vadd.f32 %v317_v40, %v268_v42 }
  0xa9   :  { %325 = vst [vmem:[%s774_s3] sm:$0xff] %v321_v43 }
  0xab   :  { %v281_v44 = vpop.f32.mrf.mxu2  ;;  %v255_v47 = vpop.f32.mrf.mxu0 }
  0xac   :  { %v295_v46 = vpop.f32.mrf.mxu3  ;;  %v269_v49 = vpop.f32.mrf.mxu1 }
  0xad   :  { %v296_v48 = vadd.f32 %v295_v46, %v281_v44  ;;  %v270_v50 = vadd.f32 %v269_v49, %v255_v47 }
  0xaf   :  { %v322_v51 = vadd.f32 %v318_v45, %v296_v48  ;;  %v323_v52 = vadd.f32 %v317_v40, %v270_v50 }
  0xb1   :  { %326 = vst [vmem:[%s774_s3 + $0x8] sm:$0xff] %v322_v51 }
  0xb2   :  { %327 = vst [vmem:[%s774_s3 + $0x10] sm:$0xff] %v323_v52 }
  0xb3   :  { %v283_v53 = vpop.f32.mrf.mxu2 }
  0xb4   :  { %v297_v54 = vpop.f32.mrf.mxu3 }
  0xb5   :  { %v298_v55 = vadd.f32 %v297_v54, %v283_v53 }
  0xb7   :  { %v324_v56 = vadd.f32 %v318_v45, %v298_v55 }
  0xb9   :  { %328 = vst [vmem:[%s774_s3 + $0x18] sm:$0xff] %v324_v56 }
  0xba   :  { %333 = vsyncpa [#allocation4], 1 }

// kernel: vit_forward.10
= control target key start
LH: loop header
LB: loop body
LE: loop exit
PB: predicated region body
PF: predicated region fallthrough
CT: control target
= control target key end

     0   :  { %10 = vsyncpa [#allocation3], 0  ;;  %s939_s0 = inlined_call_operand.vmem [shape: f32[2,256], index: 0, kind: input, shape index: {}]   ;;  %s940_s1 = inlined_call_operand.hbm [shape: bf16[256,128], index: 1, kind: input, shape index: {}]   ;;  %s941_s2 = inlined_call_operand.hbm [shape: f32[1,128], index: 2, kind: input, shape index: {}]   ;;  %s942_s3 = inlined_call_operand.vmem [shape: bf16[128,288], index: 3, kind: input, shape index: {}]   ;;  %s943_s4 = inlined_call_operand.hbm [shape: f32[1,288], index: 4, kind: input, shape index: {}]   ;;  %s944_s5 = inlined_call_operand.vmem [shape: f32[2,288], index: 5, kind: output, shape index: {}]  }
   0x1   :  { %11 = vsyncpa [#allocation5], 0  ;;  %s32_s20 = sshll.u32 %s941_s2, 4  ;;  %s745_s21 = smov [#allocation4]   ;;  %s33_s20 = int_to_ptr.hbm [resolvable:$true] %s32_s20 }
   0x2   :  { %s34_s22 = sshll.u32 %s745_s21, 4  ;;  %s18_s25 = sshll.u32 %s940_s1, 4  ;;  %s35_s22 = int_to_ptr.vmem [resolvable:$true] %s34_s22  ;;  %s19_s25 = int_to_ptr.hbm [resolvable:$true] %s18_s25 }
   0x3   :  { %37 = dma.hbm_to_vmem [thread:$0]  %s33_s20, 16, %s35_s22, [#allocation5]  }
   0x4   :  { %s746_s26 = smov [#allocation2]   ;;  %s747_s28 = smov 64  }
   0x5   :  { %s20_s27 = sshll.u32 %s746_s26, 4  ;;  %s748_s29 = smov 4   ;;  %s21_s27 = int_to_ptr.vmem [resolvable:$true] %s20_s27 }
   0x6   :  { %26 = dma.hbm_to_vmem [thread:$0]  %s19_s25, 2048, %s21_s27, [#allocation3], %s747_s28, %s747_s28, %s748_s29  }
   0x7   :  { %s45_s2 = sshll.u32 %s943_s4, 4  ;;  %s749_s7 = smov [#allocation6]   ;;  %s46_s2 = int_to_ptr.hbm [resolvable:$true] %s45_s2 }
   0x8   :  { %s47_s8 = sshll.u32 %s749_s7, 4  ;;  %s48_s8 = int_to_ptr.vmem [resolvable:$true] %s47_s8 }
   0x9   :  { %50 = dma.hbm_to_vmem [thread:$0]  %s46_s2, 48, %s48_s8, [#allocation5]  }
   0xa   :  { %741 = dma.done.wait [#allocation3], 2048  }
   0xb   :  { %742 = vsyncadd [#allocation3], 4294965248 }
   0xc   :  { %743 = dma.done.wait [#allocation5], 64  }
   0xd   :  { %744 = vsyncadd [#allocation5], 4294967232  ;;  %v630_v0 = vld [vmem:[#allocation2 + $0x38] sm:$0xff]  ;;  %v629_v2 = vld [vmem:[#allocation2 + $0x30] sm:$0xff]  ;;  %vm447_vm0 = vcmask 1041408   ;;  %vm452_vm1 = vcmask 1043458  }
   0xe   :  { %v638_v1 = vld [vmem:[#allocation2 + $0x78] sm:$0xff]  ;;  %204 = vmatpush.bf16.msra.mxu0 %v630_v0  ;;  %v637_v3 = vld [vmem:[#allocation2 + $0x70] sm:$0xff]  ;;  %v628_v4 = vld [vmem:[#allocation2 + $0x28] sm:$0xff]  ;;  %vm454_vm3 = vcmask 259076   ;;  %vm449_vm4 = vcmask 1043456  }
   0xf   :  { %217 = vmatpush.bf16.msra.mxu1 %v638_v1  ;;  %v636_v5 = vld [vmem:[#allocation2 + $0x68] sm:$0xff]  ;;  %v63_v6 = vld [vmem:[%s939_s0] sm:$0xf]  ;;  %v613_v7 = vld [vmem:[%s942_s3 + $0xa8] sm:$0xf] }
  0x10   :  { %65 = vst [vmem:[#allocation1] ss:$4 sm:$0xff] %v63_v6  ;;  %v661_v8 = vld [vmem:[%s942_s3 + $0xb0] sm:$0xf0]  ;;  %v660_v9 = vld [vmem:[%s942_s3 + $0xac] sm:$0xf]  ;;  %vm453_vm2 = vmor %vm452_vm1, %vm447_vm0 }
  0x11   :  { %v614_v10 = vor.u32 %v661_v8, %v613_v7  ;;  %v615_v11 = vld [vmem:[%s942_s3 + $0xb4] sm:$0xf0]  ;;  %v601_v13 = vld [vmem:[%s942_s3 + $0x90] sm:$0xf]  ;;  %v658_v14 = vld [vmem:[%s942_s3 + $0x98] sm:$0xf0] }
  0x12   :  { %205 = vmatpush.bf16.msra.mxu0 %v629_v2  ;;  %v618_v12 = vor.u32 %v660_v9, %v615_v11  ;;  %v657_v15 = vld [vmem:[%s942_s3 + $0x94] sm:$0xf]  ;;  %v627_v16 = vld [vmem:[#allocation2 + $0x20] sm:$0xff]  ;;  %v602_v17 = vor.u32 %v658_v14, %v601_v13  ;;  %v603_v18 = vld [vmem:[%s942_s3 + $0x9c] sm:$0xf0] }
  0x13   :  { %218 = vmatpush.bf16.msra.mxu1 %v637_v3  ;;  %400 = vmatpush.bf16.msra.mxu2 %v614_v10  ;;  %v635_v19 = vld [vmem:[#allocation2 + $0x60] sm:$0xff]  ;;  %v589_v20 = vld [vmem:[%s942_s3 + $0x78] sm:$0xf]  ;;  %v655_v21 = vld [vmem:[%s942_s3 + $0x80] sm:$0xf0]  ;;  %v606_v22 = vor.u32 %v657_v15, %v603_v18 }
  0x14   :  { %413 = vmatpush.bf16.msra.mxu3 %v618_v12  ;;  %v654_v23 = vld [vmem:[%s942_s3 + $0x7c] sm:$0xf]  ;;  %v591_v24 = vld [vmem:[%s942_s3 + $0x84] sm:$0xf0]  ;;  %v626_v25 = vld [vmem:[#allocation2 + $0x18] sm:$0xff]  ;;  %v590_v26 = vor.u32 %v655_v21, %v589_v20 }
  0x15   :  { %v634_v27 = vld [vmem:[#allocation2 + $0x58] sm:$0xff]  ;;  %v652_v29 = vld [vmem:[%s942_s3 + $0x68] sm:$0xf0]  ;;  %v594_v30 = vor.u32 %v654_v23, %v591_v24  ;;  %v579_v32 = vld [vmem:[%s942_s3 + $0x6c] sm:$0xf0] }
  0x16   :  { %206 = vmatpush.bf16.msra.mxu0 %v628_v4  ;;  %v577_v28 = vld [vmem:[%s942_s3 + $0x60] sm:$0xf]  ;;  %v651_v31 = vld [vmem:[%s942_s3 + $0x64] sm:$0xf]  ;;  %v625_v33 = vld [vmem:[#allocation2 + $0x10] sm:$0xff] }
  0x17   :  { %219 = vmatpush.bf16.msra.mxu1 %v636_v5  ;;  %401 = vmatpush.bf16.msra.mxu2 %v602_v17  ;;  %v578_v34 = vor.u32 %v652_v29, %v577_v28  ;;  %v633_v35 = vld [vmem:[#allocation2 + $0x50] sm:$0xff]  ;;  %v565_v36 = vld [vmem:[%s942_s3 + $0x48] sm:$0xf]  ;;  %v649_v37 = vld [vmem:[%s942_s3 + $0x50] sm:$0xf0]  ;;  %v582_v38 = vor.u32 %v651_v31, %v579_v32 }
  0x18   :  { %414 = vmatpush.bf16.msra.mxu3 %v606_v22  ;;  %v648_v39 = vld [vmem:[%s942_s3 + $0x4c] sm:$0xf]  ;;  %v567_v40 = vld [vmem:[%s942_s3 + $0x54] sm:$0xf0]  ;;  %v624_v41 = vld [vmem:[#allocation2 + $0x8] sm:$0xff]  ;;  %v566_v42 = vor.u32 %v649_v37, %v565_v36 }
  0x19   :  { %v632_v43 = vld [vmem:[#allocation2 + $0x48] sm:$0xff]  ;;  %v646_v45 = vld [vmem:[%s942_s3 + $0x38] sm:$0xf0]  ;;  %v570_v47 = vor.u32 %v648_v39, %v567_v40  ;;  %v555_v50 = vld [vmem:[%s942_s3 + $0x3c] sm:$0xf0] }
  0x1a   :  { %207 = vmatpush.bf16.msra.mxu0 %v627_v16  ;;  %v553_v44 = vld [vmem:[%s942_s3 + $0x30] sm:$0xf]  ;;  %v662_v48 = vld [vmem:[%s942_s3 + $0xb8] sm:$0xf0]  ;;  %v645_v49 = vld [vmem:[%s942_s3 + $0x34] sm:$0xf] }
  0x1b   :  { %220 = vmatpush.bf16.msra.mxu1 %v635_v19  ;;  %402 = vmatpush.bf16.msra.mxu2 %v590_v26  ;;  %v621_v46 = vld [vmem:[%s942_s3 + $0xb0] sm:$0xf]  ;;  %v623_v51 = vld [vmem:[#allocation2] sm:$0xff]  ;;  %v554_v53 = vor.u32 %v646_v45, %v553_v44  ;;  %v66_v54 = vld.sshfl [vmem:[#allocation1] sm:$0xff pattern:$0x73625140]  ;;  %v558_v57 = vor.u32 %v645_v49, %v555_v50 }
  0x1c   :  { %415 = vmatpush.bf16.msra.mxu3 %v594_v30  ;;  %v631_v52 = vld [vmem:[#allocation2 + $0x40] sm:$0xff]  ;;  %v622_v56 = vor.u32 %v662_v48, %v621_v46  ;;  %v609_v58 = vld [vmem:[%s942_s3 + $0x98] sm:$0xf]  ;;  %v659_v59 = vld [vmem:[%s942_s3 + $0xa0] sm:$0xf0]  ;;  %v70_v60 = vpack.c.bf16 %v66_v54, %v66_v54 }
  0x1d   :  { %v67_v55 = vld.sshfl [vmem:[#allocation1 + $0x8] sm:$0xff pattern:$0x73625140]  ;;  %v610_v62 = vor.u32 %v659_v59, %v609_v58  ;;  %v597_v63 = vld [vmem:[%s942_s3 + $0x80] sm:$0xf]  ;;  %vm455_vm5 = vmor %vm454_vm3, %vm453_vm2 }
  0x1e   :  { %208 = vmatpush.bf16.msra.mxu0 %v626_v25  ;;  %v71_v61 = vpack.c.bf16 %v67_v55, %v67_v55  ;;  %v656_v0 = vld [vmem:[%s942_s3 + $0x88] sm:$0xf0]  ;;  %v585_v2 = vld [vmem:[%s942_s3 + $0x68] sm:$0xf]  ;;  %v653_v3 = vld [vmem:[%s942_s3 + $0x70] sm:$0xf0] }
  0x1f   :  { %221 = vmatpush.bf16.msra.mxu1 %v634_v27  ;;  %403 = vmatpush.bf16.msra.mxu2 %v578_v34  ;;  %v598_v1 = vor.u32 %v656_v0, %v597_v63  ;;  %v586_v4 = vor.u32 %v653_v3, %v585_v2  ;;  %v573_v5 = vld [vmem:[%s942_s3 + $0x50] sm:$0xf]  ;;  %v650_v6 = vld [vmem:[%s942_s3 + $0x58] sm:$0xf0]  ;;  %v561_v8 = vld [vmem:[%s942_s3 + $0x38] sm:$0xf] }
  0x20   :  { %416 = vmatpush.bf16.msra.mxu3 %v582_v38  ;;  %v574_v7 = vor.u32 %v650_v6, %v573_v5  ;;  %v647_v9 = vld [vmem:[%s942_s3 + $0x40] sm:$0xf0]  ;;  %v541_v11 = vld [vmem:[%s942_s3 + $0x18] sm:$0xf]  ;;  %v642_v13 = vld [vmem:[%s942_s3 + $0x1c] sm:$0xf] }
  0x21   :  { %v562_v10 = vor.u32 %v647_v9, %v561_v8  ;;  %v643_v12 = vld [vmem:[%s942_s3 + $0x20] sm:$0xf0]  ;;  %v543_v15 = vld [vmem:[%s942_s3 + $0x24] sm:$0xf0]  ;;  %v549_v16 = vld [vmem:[%s942_s3 + $0x20] sm:$0xf] }
  0x22   :  { %209 = vmatpush.bf16.msra.mxu0 %v625_v33  ;;  %v542_v14 = vor.u32 %v643_v12, %v541_v11  ;;  %v644_v17 = vld [vmem:[%s942_s3 + $0x28] sm:$0xf0]  ;;  %v546_v18 = vor.u32 %v642_v13, %v543_v15  ;;  %v529_v20 = vld [vmem:[%s942_s3] sm:$0xf]  ;;  %v639_v22 = vld [vmem:[%s942_s3 + $0x4] sm:$0xf] }
  0x23   :  { %222 = vmatpush.bf16.msra.mxu1 %v633_v35  ;;  %404 = vmatpush.bf16.msra.mxu2 %v566_v42  ;;  %v550_v19 = vor.u32 %v644_v17, %v549_v16  ;;  %v640_v21 = vld [vmem:[%s942_s3 + $0x8] sm:$0xf0]  ;;  %v531_v24 = vld [vmem:[%s942_s3 + $0xc] sm:$0xf0]  ;;  %v537_v25 = vld [vmem:[%s942_s3 + $0x8] sm:$0xf] }
  0x24   :  { %417 = vmatpush.bf16.msra.mxu3 %v570_v47  ;;  %v530_v23 = vor.u32 %v640_v21, %v529_v20  ;;  %v641_v26 = vld [vmem:[%s942_s3 + $0x10] sm:$0xf0]  ;;  %v534_v27 = vor.u32 %v639_v22, %v531_v24  ;;  %v668_v29 = vld [vmem:[#allocation4] ss:$0 sm:$0xff]  ;;  %v264_v38 = vld [vmem:[#allocation6] sm:$0x7] }
  0x25   :  { %v538_v28 = vor.u32 %v641_v26, %v537_v25  ;;  %v268_v39 = vperm.slane %v264_v38, 2  ;;  %v267_v42 = vperm.slane %v264_v38, 1 }
  0x26   :  { %210 = vmatpush.bf16.msra.mxu0 %v624_v41  ;;  %v266_v41 = vperm.slane %v264_v38, 0 }
  0x27   :  { %223 = vmatpush.bf16.msra.mxu1 %v632_v43  ;;  %405 = vmatpush.bf16.msra.mxu2 %v554_v53 }
  0x28   :  { %418 = vmatpush.bf16.msra.mxu3 %v558_v57 }
  0x2a   :  { %211 = vmatpush.bf16.msra.mxu0 %v623_v51 }
  0x2b   :  { %224 = vmatpush.bf16.msra.mxu1 %v631_v52  ;;  %406 = vmatpush.bf16.msra.mxu2 %v542_v14 }
  0x2c   :  { %419 = vmatpush.bf16.msra.mxu3 %v546_v18 }
  0x2d   :  { %212 = vmatmul.bf16.vlgmr.msra.gmra.mxu0 %v70_v60 }
  0x2e   :  { %426 = vmatpush.bf16.msrb.mxu0 %v622_v56  ;;  %225 = vmatmul.bf16.vlgmr.msra.gmra.mxu1 %v71_v61 }
  0x2f   :  { %407 = vmatpush.bf16.msra.mxu2 %v530_v23 }
  0x30   :  { %420 = vmatpush.bf16.msra.mxu3 %v534_v27 }
  0x32   :  { %427 = vmatpush.bf16.msrb.mxu0 %v610_v62 }
  0x36   :  { %428 = vmatpush.bf16.msrb.mxu0 %v598_v1 }
  0x3a   :  { %429 = vmatpush.bf16.msrb.mxu0 %v586_v4 }
  0x3e   :  { %430 = vmatpush.bf16.msrb.mxu0 %v574_v7 }
  0x42   :  { %431 = vmatpush.bf16.msrb.mxu0 %v562_v10 }
  0x46   :  { %432 = vmatpush.bf16.msrb.mxu0 %v550_v19 }
  0x4a   :  { %433 = vmatpush.bf16.msrb.mxu0 %v538_v28 }
  0xaa   :  { %v213_v30 = vpop.f32.mrf.mxu0 }
  0xab   :  { %v226_v31 = vpop.f32.mrf.mxu1  ;;  %v214_v32 = vadd.f32 %v668_v29, %v213_v30 }
  0xad   :  { %v227_v33 = vadd.f32 %v226_v31, %v214_v32 }
  0xaf   :  { %v230_v34 = vmax.f32 %v227_v33, 0.0 }
  0xb1   :  { %v231_v35 = vpack.c.bf16 %v230_v34, %v230_v34 }
  0xb2   :  { %v215_v36 = vpop.f32.mrf.mxu0 }
  0xb3   :  { %v228_v37 = vpop.f32.mrf.mxu1  ;;  %408 = vmatmul.bf16.vlgmr.msra.gmra.mxu2 %v231_v35  ;;  %421 = vmatmul.bf16.vlgmr.msra.gmra.mxu3 %v231_v35 }
  0xb4   :  { %434 = vmatmul.bf16.vlgmr.msrb.gmra.mxu0 %v231_v35 }
 0x131   :  { %v435_v40 = vpop.f32.mrf.mxu0 }
 0x132   :  { %v436_v43 = vadd.f32 %v435_v40, %v268_v39 }
 0x134   :  { %v441_v48 = vmax.f32 %v436_v43, 0.0 }
 0x136   :  { %v409_v44 = vpop.f32.mrf.mxu2  ;;  %v422_v45 = vpop.f32.mrf.mxu3  ;;  %v446_v53 = vrot.slane %v441_v48, 4 }
 0x137   :  { %v410_v46 = vadd.f32 %v409_v44, %v266_v41  ;;  %v423_v47 = vadd.f32 %v422_v45, %v267_v42 }
 0x139   :  { %v440_v49 = vmax.f32 %v423_v47, 0.0  ;;  %v437_v50 = vpop.f32.mrf.mxu0  ;;  %v439_v51 = vmax.f32 %v410_v46, 0.0 }
 0x13b   :  { %v445_v52 = vrot.slane %v440_v49, 6 }
 0x13d   :  { %v448_v54 = vsel %vm447_vm0, %v439_v51, %v445_v52 }
 0x13e   :  { %v450_v55 = vsel %vm449_vm4, %v448_v54, %v446_v53  ;;  %v411_v56 = vpop.f32.mrf.mxu2  ;;  %v424_v57 = vpop.f32.mrf.mxu3 }
 0x13f   :  { %456 = vst.msk [vmem:[%s944_s5] sm:$0x3f] %vm455_vm5, %v450_v55 }
 0x140   :  { %461 = vsyncpa [#allocation3], 1 }
 0x141   :  { %462 = vsyncpa [#allocation5], 1 }

// kernel: vit_forward.8
= control target key start
LH: loop header
LB: loop body
LE: loop exit
PB: predicated region body
PF: predicated region fallthrough
CT: control target
= control target key end

     0   :  { %s4270_s0 = inlined_call_operand.vmem [shape: f32[2,5,256], index: 0, kind: input, shape index: {}]   ;;  %s4271_s1 = inlined_call_operand.hbm [shape: f32[1,256], index: 1, kind: input, shape index: {}]   ;;  %s4272_s2 = inlined_call_operand.hbm [shape: f32[1,256], index: 2, kind: input, shape index: {}]   ;;  %s4273_s3 = inlined_call_operand.hbm [shape: bf16[256,768], index: 3, kind: input, shape index: {}]   ;;  %s4274_s4 = inlined_call_operand.hbm [shape: f32[1,768], index: 4, kind: input, shape index: {}]   ;;  %s4275_s5 = inlined_call_operand.hbm [shape: bf16[256,256], index: 5, kind: input, shape index: {}]   ;;  %s4276_s6 = inlined_call_operand.hbm [shape: f32[1,256], index: 6, kind: input, shape index: {}]   ;;  %s4277_s7 = inlined_call_operand.hbm [shape: f32[1,256], index: 7, kind: input, shape index: {}]   ;;  %s4278_s8 = inlined_call_operand.hbm [shape: f32[1,256], index: 8, kind: input, shape index: {}]   ;;  %s4279_s9 = inlined_call_operand.hbm [shape: bf16[256,128], index: 9, kind: input, shape index: {}]   ;;  %s4280_s10 = inlined_call_operand.hbm [shape: f32[1,128], index: 10, kind: input, shape index: {}]   ;;  %s4281_s11 = inlined_call_operand.hbm [shape: bf16[128,256], index: 11, kind: input, shape index: {}]   ;;  %s4282_s12 = inlined_call_operand.hbm [shape: f32[1,256], index: 12, kind: input, shape index: {}]   ;;  %s4283_s13 = inlined_call_operand.vmem [shape: f32[2,5,256], index: 13, kind: output, shape index: {}]  }
   0x1   :  { %4284 = sst [smem:[#allocation28_spill]] %s4271_s1 }
   0x2   :  { %4285 = sst [smem:[#allocation29_spill]] %s4272_s2 }
   0x3   :  { %4286 = sst [smem:[#allocation30_spill]] %s4273_s3 }
   0x4   :  { %4287 = sst [smem:[#allocation31_spill]] %s4274_s4 }
   0x5   :  { %18 = vsyncpa [#allocation3], 0 }
   0x6   :  { %19 = vsyncpa [#allocation5], 0 }
   0x7   :  { %20 = vsyncpa [#allocation8], 0 }
   0x8   :  { %21 = vsyncpa [#allocation11], 0 }
   0x9   :  { %22 = vsyncpa [#allocation14], 0 }
   0xa   :  { %23 = vsyncpa [#allocation17], 0 }
   0xb   :  { %24 = vsyncpa [#allocation20], 0  ;;  %s4006_s25 = smov 0  }
   0xc LB: > { %s4288_s2 = sld [smem:[#allocation29_spill]]  ;;  %s4015_s29 = sadd.s32 4294967295, %s3913_s25   ;;  %s3913_s25 = sphi %s4006_s25, %s30_s25  }
   0xd   : > { %p2506_p0 = scmp.ge.s32.totalorder %s3913_s25, 1  ;;  %p339_p1 = scmp.lt.s32.totalorder %s3913_s25, 3 }
   0xe   : > { %p3434_p2 = scmp.eq.s32.totalorder %s4015_s29, 0  ;;  %s3915_s14 = smov [#allocation4]  }
   0xf   : > { %p4020_p3 = pnand %p2506_p0, %p339_p1  ;;  %s365_s15 = sshll.u32 %s3915_s14, 4  ;;  %s366_s15 = int_to_ptr.vmem [resolvable:$true] %s365_s15 }
  0x10   : > { %s4290_s4 = sld [smem:[#allocation31_spill]]  ;;  %s415_s21 = sshll.u32 %s4276_s6, 4  ;;  %s416_s21 = int_to_ptr.hbm [resolvable:$true] %s415_s21 }
  0x11   : > { %p3397_p4 = pneg %p4020_p3  ;;  %s3916_s23 = smov [#allocation7]  }
  0x12   : > { %s363_s28 = sshll.u32 %s4288_s2, 4  ;;  %s391_s24 = sshll.u32 %s3916_s23, 4  ;;  %s364_s28 = int_to_ptr.hbm [resolvable:$true] %s363_s28  ;;  %s392_s24 = int_to_ptr.vmem [resolvable:$true] %s391_s24 }
  0x13   : > { %p4034_p5 = pnand %p3434_p2, %p3397_p4  ;;  %s3917_s26 = smov [#allocation10]  }
  0x14   : > { %s417_s27 = sshll.u32 %s3917_s26, 4  ;;  %s439_s17 = sshll.u32 %s4278_s8, 4  ;;  %s418_s27 = int_to_ptr.vmem [resolvable:$true] %s417_s27  ;;  %s440_s17 = int_to_ptr.hbm [resolvable:$true] %s439_s17 }
  0x15   : > { %3403 = dma.hbm_to_vmem [thread:$0]  (!%p4034_p5), %s364_s28, 32, %s366_s15, [#allocation5]  }
  0x16   : > { %s389_s18 = sshll.u32 %s4290_s4, 4  ;;  %s465_s23 = sshll.u32 %s4280_s10, 4  ;;  %s390_s18 = int_to_ptr.hbm [resolvable:$true] %s389_s18  ;;  %s466_s23 = int_to_ptr.hbm [resolvable:$true] %s465_s23 }
  0x17   : > { %3409 = dma.hbm_to_vmem [thread:$0]  (!%p4034_p5), %s390_s18, 96, %s392_s24, [#allocation8]  }
  0x18   : > { %3415 = dma.hbm_to_vmem [thread:$0]  (!%p4034_p5), %s416_s21, 32, %s418_s27, [#allocation11]  }
  0x19   : > { %s3918_s2 = smov [#allocation13]   ;;  %s3919_s15 = smov [#allocation16]  }
  0x1a   : > { %s441_s28 = sshll.u32 %s3918_s2, 4  ;;  %s467_s18 = sshll.u32 %s3919_s15, 4  ;;  %s442_s28 = int_to_ptr.vmem [resolvable:$true] %s441_s28  ;;  %s468_s18 = int_to_ptr.vmem [resolvable:$true] %s467_s18 }
  0x1b   : > { %3421 = dma.hbm_to_vmem [thread:$0]  (!%p4034_p5), %s440_s17, 32, %s442_s28, [#allocation14]  }
  0x1c   : > { %s4292_s1 = sld [smem:[#allocation28_spill]]  ;;  %s3920_s2 = smov [#allocation2]  }
  0x1d   : > { %3427 = dma.hbm_to_vmem [thread:$0]  (!%p4034_p5), %s466_s23, 16, %s468_s18, [#allocation17]  }
  0x1e   : > { %s4293_s3 = sld [smem:[#allocation30_spill]]  ;;  %s353_s19 = sshll.u32 %s3920_s2, 4  ;;  %s354_s19 = int_to_ptr.vmem [resolvable:$true] %s353_s19 }
  0x1f   : > { %s3921_s17 = smov [#allocation6]   ;;  %s3922_s28 = smov 384  }
  0x20   : > { %s376_s20 = sshll.u32 %s3921_s17, 4  ;;  %s3923_s15 = smov 24   ;;  %s377_s20 = int_to_ptr.vmem [resolvable:$true] %s376_s20 }
  0x21   : > { %s400_s18 = sshll.u32 %s4275_s5, 4  ;;  %s3924_s26 = smov [#allocation9]   ;;  %s401_s18 = int_to_ptr.hbm [resolvable:$true] %s400_s18 }
  0x22   : > { %s351_s14 = sshll.u32 %s4292_s1, 4  ;;  %s402_s21 = sshll.u32 %s3924_s26, 4  ;;  %s352_s14 = int_to_ptr.hbm [resolvable:$true] %s351_s14  ;;  %s403_s21 = int_to_ptr.vmem [resolvable:$true] %s402_s21 }
  0x23   : > { %3400 = dma.hbm_to_vmem [thread:$0]  (!%p4034_p5), %s352_s14, 32, %s354_s19, [#allocation3]  }
  0x24   : > { %s374_s16 = sshll.u32 %s4293_s3, 4  ;;  %s427_s14 = sshll.u32 %s4277_s7, 4  ;;  %s375_s16 = int_to_ptr.hbm [resolvable:$true] %s374_s16  ;;  %s428_s14 = int_to_ptr.hbm [resolvable:$true] %s427_s14 }
  0x25   : > { %3406 = dma.hbm_to_vmem [thread:$0]  (!%p4034_p5), %s375_s16, 12288, %s377_s20, [#allocation5], %s3922_s28, %s3922_s28, %s3923_s15  }
  0x26   : > { %s3925_s19 = smov 128   ;;  %s3926_s17 = smov 8  }
  0x27   : > { %3412 = dma.hbm_to_vmem [thread:$0]  (!%p4034_p5), %s401_s18, 4096, %s403_s21, [#allocation8], %s3925_s19, %s3925_s19, %s3926_s17  }
  0x28   : > { %s3927_s16 = smov [#allocation12]   ;;  %s450_s24 = sshll.u32 %s4279_s9, 4  ;;  %s451_s24 = int_to_ptr.hbm [resolvable:$true] %s450_s24 }
  0x29   : > { %s429_s20 = sshll.u32 %s3927_s16, 4  ;;  %s3928_s23 = smov [#allocation15]   ;;  %s430_s20 = int_to_ptr.vmem [resolvable:$true] %s429_s20 }
  0x2a   : > { %3418 = dma.hbm_to_vmem [thread:$0]  (!%p4034_p5), %s428_s14, 32, %s430_s20, [#allocation11]  }
  0x2b   : > { %s452_s26 = sshll.u32 %s3928_s23, 4  ;;  %s476_s18 = sshll.u32 %s4281_s11, 4  ;;  %s453_s26 = int_to_ptr.vmem [resolvable:$true] %s452_s26  ;;  %s477_s18 = int_to_ptr.hbm [resolvable:$true] %s476_s18 }
  0x2c   : > { %s3929_s21 = smov 64   ;;  %s3930_s1 = smov 4  }
  0x2d   : > { %3424 = dma.hbm_to_vmem [thread:$0]  (!%p4034_p5), %s451_s24, 2048, %s453_s26, [#allocation14], %s3929_s21, %s3929_s21, %s3930_s1  }
  0x2e   : > { %s3931_s16 = smov [#allocation18]   ;;  %s491_s4 = sshll.u32 %s4282_s12, 4  ;;  %s492_s4 = int_to_ptr.hbm [resolvable:$true] %s491_s4 }
  0x2f   : > { %s478_s28 = sshll.u32 %s3931_s16, 4  ;;  %s3932_s14 = smov [#allocation19]   ;;  %s479_s28 = int_to_ptr.vmem [resolvable:$true] %s478_s28 }
  0x30   : > { %3430 = dma.hbm_to_vmem [thread:$0]  (!%p4034_p5), %s477_s18, 2048, %s479_s28, [#allocation17], %s3925_s19, %s3925_s19, %s3926_s17  }
  0x31   : > { %s493_s20 = sshll.u32 %s3932_s14, 4  ;;  %514 = sbr.rel (%p4020_p3) target bundleno = 2024 (0x7e8), region = 72  ;;  %s494_s20 = int_to_ptr.vmem [resolvable:$true] %s493_s20 }
  0x32   : > { %3433 = dma.hbm_to_vmem [thread:$0]  (!%p4034_p5), %s492_s4, 32, %s494_s20, [#allocation20]  }
  0x36   : > { %3884 = dma.done.wait (%p3434_p2), [#allocation3], 32  }
  0x37   : > { %3886 = vsyncadd (%p3434_p2), [#allocation3], 4294967264 }
  0x38   : > { %3888 = dma.done.wait (%p3434_p2), [#allocation5], 12320  }
  0x39   : > { %3890 = vsyncadd (%p3434_p2), [#allocation5], 4294954976 }
  0x3a   : > { %3892 = dma.done.wait (%p3434_p2), [#allocation8], 4192  }
  0x3b   : > { %3894 = vsyncadd (%p3434_p2), [#allocation8], 4294963104 }
  0x3c   : > { %3896 = dma.done.wait (%p3434_p2), [#allocation11], 64  }
  0x3d   : > { %3898 = vsyncadd (%p3434_p2), [#allocation11], 4294967232 }
  0x3e   : > { %3900 = dma.done.wait (%p3434_p2), [#allocation14], 2080  }
  0x3f   : > { %3902 = vsyncadd (%p3434_p2), [#allocation14], 4294965216 }
  0x40   : > { %3904 = dma.done.wait (%p3434_p2), [#allocation17], 2064  }
  0x41   : > { %3906 = vsyncadd (%p3434_p2), [#allocation17], 4294965232 }
  0x42   : > { %3908 = dma.done.wait (%p3434_p2), [#allocation20], 32  }
  0x43   : > { %3910 = vsyncadd (%p3434_p2), [#allocation20], 4294967264  ;;  %p614_p6 = scmp.lt.s32.totalorder %s4015_s29, 1  ;;  %vm627_vm0 = vcmask 1044480   ;;  %v3933_v5 = vmov 256.0   ;;  %vm1431_vm5 = vcmask 523264  }
  0x44   : > { %3493 = vrcp.f32 %v3933_v5  ;;  %v2707_v9 = vld [vmem:[#allocation6 + $0x150] sm:$0xf]  ;;  %v3234_v10 = vld [vmem:[#allocation6 + $0x164] sm:$0xf0]  ;;  %v3231_v14 = vld [vmem:[#allocation6 + $0x154] sm:$0xf] }
  0x45   : > { %s4295_s29 = smov (!%p614_p6, %s4015_s29), 1  ;;  %v2899_v11 = vld [vmem:[#allocation6 + $0x2d0] sm:$0xf]  ;;  %v2708_v12 = vor.u32 %v3234_v10, %v2707_v9  ;;  %v3282_v13 = vld [vmem:[#allocation6 + $0x2e4] sm:$0xf0]  ;;  %s3934_s22 = smov 64  }
  0x46   : > { %s3187_s1 = sshll.u32 %s4295_s29, 4  ;;  %v2709_v15 = vld [vmem:[#allocation6 + $0x168] sm:$0xf0]  ;;  %v2900_v16 = vor.u32 %v3282_v13, %v2899_v11  ;;  %v3279_v18 = vld [vmem:[#allocation6 + $0x2d4] sm:$0xf]  ;;  %vm1482_vm6 = vcmask 1041408  }
  0x47   : > { %s4129_s30 = scalar_lea.vmem %s4270_s0, %s3187_s1  ;;  %v2712_v17 = vor.u32 %v3231_v14, %v2709_v15  ;;  %v2901_v19 = vld [vmem:[#allocation6 + $0x2e8] sm:$0xf0]  ;;  %v2683_v20 = vld [vmem:[#allocation6 + $0x120] sm:$0xf]  ;;  %1272 = vmatpush.bf16.msra.mxu0 %v2708_v12  ;;  %v3228_v22 = vld [vmem:[#allocation6 + $0x134] sm:$0xf0]  ;;  %s623_s24 = scalar_lea.vmem %s4283_s13, %s3187_s1 }
  0x48   : > { %v4132_v0 = vld [vmem:[%s4129_s30] sm:$0x1f]  ;;  %v4135_v1 = vld [vmem:[%s4129_s30 + $0x8] sm:$0x1f]  ;;  %v2904_v21 = vor.u32 %v3279_v18, %v2901_v19  ;;  %v3276_v24 = vld [vmem:[#allocation6 + $0x2b4] sm:$0xf0]  ;;  %1285 = vmatpush.bf16.msra.mxu1 %v2900_v16  ;;  %v2684_v25 = vor.u32 %v3228_v22, %v2683_v20 }
  0x49   : > { %v628_v2 = vsel %vm627_vm0, %v4132_v0, 0.0  ;;  %v629_v3 = vsel %vm627_vm0, %v4135_v1, 0.0  ;;  %v2875_v23 = vld [vmem:[#allocation6 + $0x2a0] sm:$0xf]  ;;  %1298 = vmatpush.bf16.msra.mxu2 %v2712_v17  ;;  %v3225_v27 = vld [vmem:[#allocation6 + $0x124] sm:$0xf] }
  0x4a   : > { %v630_v4 = vadd.f32 %v629_v3, %v628_v2  ;;  %v4141_v6 = vpop.eup %3493  ;;  %v2876_v26 = vor.u32 %v3276_v24, %v2875_v23  ;;  %v2685_v28 = vld [vmem:[#allocation6 + $0x138] sm:$0xf0]  ;;  %v3273_v29 = vld [vmem:[#allocation6 + $0x2a4] sm:$0xf]  ;;  %1311 = vmatpush.bf16.msra.mxu3 %v2904_v21  ;;  %v2659_v32 = vld [vmem:[#allocation6 + $0xf0] sm:$0xf] }
  0x4b   : > { %v634_v7 = vmul.f32 256.0, %v4141_v6  ;;  %v2688_v30 = vor.u32 %v3225_v27, %v2685_v28  ;;  %v2877_v31 = vld [vmem:[#allocation6 + $0x2b8] sm:$0xf0]  ;;  %v3222_v33 = vld [vmem:[#allocation6 + $0x104] sm:$0xf0]  ;;  %1273 = vmatpush.bf16.msra.mxu0 %v2684_v25  ;;  %vm638_vm1 = vweird.f32 %v4141_v6  ;;  %vm1483_vm7 = vcmask 1042432  }
  0x4c   : > { %631 = vadd.xlane.f32.xlu0 %v630_v4  ;;  %v2880_v34 = vor.u32 %v3273_v29, %v2877_v31  ;;  %v2851_v35 = vld [vmem:[#allocation6 + $0x270] sm:$0xf]  ;;  %v3270_v36 = vld [vmem:[#allocation6 + $0x284] sm:$0xf0]  ;;  %v3219_v37 = vld [vmem:[#allocation6 + $0xf4] sm:$0xf]  ;;  %v2660_v38 = vor.u32 %v3222_v33, %v2659_v32  ;;  %1286 = vmatpush.bf16.msra.mxu1 %v2876_v26 }
  0x4d   : > { %v635_v8 = vsub.f32 1.0, %v634_v7  ;;  %v2661_v39 = vld [vmem:[#allocation6 + $0x108] sm:$0xf0]  ;;  %v3267_v40 = vld [vmem:[#allocation6 + $0x274] sm:$0xf]  ;;  %1299 = vmatpush.bf16.msra.mxu2 %v2688_v30  ;;  %v2852_v42 = vor.u32 %v3270_v36, %v2851_v35  ;;  %vm1452_vm8 = vcmask 36864  }
  0x4e   : > { %v2853_v41 = vld [vmem:[#allocation6 + $0x288] sm:$0xf0]  ;;  %v2664_v43 = vor.u32 %v3219_v37, %v2661_v39  ;;  %v2635_v44 = vld [vmem:[#allocation6 + $0xc0] sm:$0xf]  ;;  %v3216_v45 = vld [vmem:[#allocation6 + $0xd4] sm:$0xf0]  ;;  %1312 = vmatpush.bf16.msra.mxu3 %v2880_v34 }
  0x4f   : > { %v2827_v46 = vld [vmem:[#allocation6 + $0x240] sm:$0xf]  ;;  %v2856_v47 = vor.u32 %v3267_v40, %v2853_v41  ;;  %v3264_v48 = vld [vmem:[#allocation6 + $0x254] sm:$0xf0]  ;;  %v3213_v49 = vld [vmem:[#allocation6 + $0xc4] sm:$0xf]  ;;  %1274 = vmatpush.bf16.msra.mxu0 %v2660_v38  ;;  %v2636_v53 = vor.u32 %v3216_v45, %v2635_v44  ;;  %v636_v54 = vmul.f32 %v4141_v6, %v635_v8 }
  0x50   : > { %v2637_v50 = vld [vmem:[#allocation6 + $0xd8] sm:$0xf0]  ;;  %v3261_v51 = vld [vmem:[#allocation6 + $0x244] sm:$0xf]  ;;  %1287 = vmatpush.bf16.msra.mxu1 %v2852_v42  ;;  %v2828_v55 = vor.u32 %v3264_v48, %v2827_v46  ;;  %v2611_v57 = vld [vmem:[#allocation6 + $0x90] sm:$0xf] }
  0x51   : > { %v2829_v52 = vld [vmem:[#allocation6 + $0x258] sm:$0xf0]  ;;  %1300 = vmatpush.bf16.msra.mxu2 %v2664_v43  ;;  %v2640_v56 = vor.u32 %v3213_v49, %v2637_v50  ;;  %v3210_v58 = vld [vmem:[#allocation6 + $0xa4] sm:$0xf0]  ;;  %v2803_v59 = vld [vmem:[#allocation6 + $0x210] sm:$0xf]  ;;  %v637_v5 = vadd.f32 %v4141_v6, %v636_v54 }
  0x52   : > { %1313 = vmatpush.bf16.msra.mxu3 %v2856_v47  ;;  %v2832_v60 = vor.u32 %v3261_v51, %v2829_v52  ;;  %v3258_v61 = vld [vmem:[#allocation6 + $0x224] sm:$0xf0]  ;;  %v3207_v62 = vld [vmem:[#allocation6 + $0x94] sm:$0xf]  ;;  %v2613_v63 = vld [vmem:[#allocation6 + $0xa8] sm:$0xf0]  ;;  %v2612_v4 = vor.u32 %v3210_v58, %v2611_v57 }
  0x53   : > { %v3255_v2 = vld [vmem:[#allocation6 + $0x214] sm:$0xf]  ;;  %v2805_v3 = vld [vmem:[#allocation6 + $0x228] sm:$0xf0]  ;;  %1275 = vmatpush.bf16.msra.mxu0 %v2636_v53  ;;  %v2804_v7 = vor.u32 %v3258_v61, %v2803_v59  ;;  %v2616_v8 = vor.u32 %v3207_v62, %v2613_v63  ;;  %v2587_v9 = vld [vmem:[#allocation6 + $0x60] sm:$0xf]  ;;  %v4148_v19 = vsel %vm638_vm1, %v4141_v6, %v637_v5 }
  0x54   : > { %1288 = vmatpush.bf16.msra.mxu1 %v2828_v55  ;;  %v3204_v10 = vld [vmem:[#allocation6 + $0x74] sm:$0xf0]  ;;  %v2779_v11 = vld [vmem:[#allocation6 + $0x1e0] sm:$0xf]  ;;  %v2808_v12 = vor.u32 %v3255_v2, %v2805_v3  ;;  %v3201_v14 = vld [vmem:[#allocation6 + $0x64] sm:$0xf] }
  0x55   : > { %1301 = vmatpush.bf16.msra.mxu2 %v2640_v56  ;;  %v3252_v13 = vld [vmem:[#allocation6 + $0x1f4] sm:$0xf0]  ;;  %v2589_v15 = vld [vmem:[#allocation6 + $0x78] sm:$0xf0]  ;;  %v3249_v16 = vld [vmem:[#allocation6 + $0x1e4] sm:$0xf]  ;;  %v2588_v18 = vor.u32 %v3204_v10, %v2587_v9 }
  0x56   : > { %1314 = vmatpush.bf16.msra.mxu3 %v2832_v60  ;;  %v2781_v17 = vld [vmem:[#allocation6 + $0x1f8] sm:$0xf0]  ;;  %v2780_v20 = vor.u32 %v3252_v13, %v2779_v11  ;;  %v2592_v21 = vor.u32 %v3201_v14, %v2589_v15  ;;  %v2563_v22 = vld [vmem:[#allocation6 + $0x30] sm:$0xf]  ;;  %v3198_v23 = vld [vmem:[#allocation6 + $0x44] sm:$0xf0] }
  0x57   : > { %1276 = vmatpush.bf16.msra.mxu0 %v2612_v4  ;;  %v2755_v24 = vld [vmem:[#allocation6 + $0x1b0] sm:$0xf]  ;;  %v2784_v25 = vor.u32 %v3249_v16, %v2781_v17  ;;  %v3246_v26 = vld [vmem:[#allocation6 + $0x1c4] sm:$0xf0]  ;;  %v3195_v27 = vld [vmem:[#allocation6 + $0x34] sm:$0xf]  ;;  %v2564_v6 = vor.u32 %v3198_v23, %v2563_v22 }
  0x58   : > { %1289 = vmatpush.bf16.msra.mxu1 %v2804_v7  ;;  %v2565_v28 = vld [vmem:[#allocation6 + $0x48] sm:$0xf0]  ;;  %v3243_v30 = vld [vmem:[#allocation6 + $0x1b4] sm:$0xf]  ;;  %v2756_v33 = vor.u32 %v3246_v26, %v2755_v24  ;;  %v3192_v42 = vld [vmem:[#allocation6 + $0x14] sm:$0xf0] }
  0x59   : > { %1302 = vmatpush.bf16.msra.mxu2 %v2616_v8  ;;  %v2757_v31 = vld [vmem:[#allocation6 + $0x1c8] sm:$0xf0]  ;;  %v2568_v34 = vor.u32 %v3195_v27, %v2565_v28  ;;  %v2731_v43 = vld [vmem:[#allocation6 + $0x180] sm:$0xf]  ;;  %v3240_v45 = vld [vmem:[#allocation6 + $0x194] sm:$0xf0] }
  0x5a   : > { %1315 = vmatpush.bf16.msra.mxu3 %v2808_v12  ;;  %v2760_v37 = vor.u32 %v3243_v30, %v2757_v31  ;;  %v3189_v46 = vld [vmem:[#allocation6 + $0x4] sm:$0xf]  ;;  %v2541_v47 = vld [vmem:[#allocation6 + $0x18] sm:$0xf0]  ;;  %v2732_v48 = vor.u32 %v3240_v45, %v2731_v43  ;;  %v2715_v52 = vld [vmem:[#allocation6 + $0x158] sm:$0xf] }
  0x5b   : > { %1277 = vmatpush.bf16.msra.mxu0 %v2588_v18  ;;  %v2544_v49 = vor.u32 %v3189_v46, %v2541_v47  ;;  %v3237_v50 = vld [vmem:[#allocation6 + $0x184] sm:$0xf]  ;;  %v2733_v51 = vld [vmem:[#allocation6 + $0x198] sm:$0xf0]  ;;  %v3235_v54 = vld [vmem:[#allocation6 + $0x16c] sm:$0xf0] }
  0x5c   : > { %1290 = vmatpush.bf16.msra.mxu1 %v2780_v20  ;;  %v2736_v53 = vor.u32 %v3237_v50, %v2733_v51  ;;  %v2907_v55 = vld [vmem:[#allocation6 + $0x2d8] sm:$0xf]  ;;  %v3283_v56 = vld [vmem:[#allocation6 + $0x2ec] sm:$0xf0]  ;;  %v2716_v57 = vor.u32 %v3235_v54, %v2715_v52  ;;  %v3232_v59 = vld [vmem:[#allocation6 + $0x15c] sm:$0xf] }
  0x5d   : > { %1303 = vmatpush.bf16.msra.mxu2 %v2592_v21  ;;  %v2908_v58 = vor.u32 %v3283_v56, %v2907_v55  ;;  %v2717_v60 = vld [vmem:[#allocation6 + $0x170] sm:$0xf0]  ;;  %v3280_v61 = vld [vmem:[#allocation6 + $0x2dc] sm:$0xf]  ;;  %v2691_v2 = vld [vmem:[#allocation6 + $0x128] sm:$0xf] }
  0x5e   : > { %1316 = vmatpush.bf16.msra.mxu3 %v2784_v25  ;;  %v2720_v62 = vor.u32 %v3232_v59, %v2717_v60  ;;  %v2909_v63 = vld [vmem:[#allocation6 + $0x2f0] sm:$0xf0]  ;;  %v3229_v3 = vld [vmem:[#allocation6 + $0x13c] sm:$0xf0]  ;;  %v2883_v7 = vld [vmem:[#allocation6 + $0x2a8] sm:$0xf] }
  0x5f   : > { %1278 = vmatpush.bf16.msra.mxu0 %v2564_v6  ;;  %v2912_v4 = vor.u32 %v3280_v61, %v2909_v63  ;;  %v2692_v5 = vor.u32 %v3229_v3, %v2691_v2  ;;  %v3277_v8 = vld [vmem:[#allocation6 + $0x2bc] sm:$0xf0]  ;;  %v3226_v9 = vld [vmem:[#allocation6 + $0x12c] sm:$0xf]  ;;  %v2693_v11 = vld [vmem:[#allocation6 + $0x140] sm:$0xf0] }
  0x60   : > { %1291 = vmatpush.bf16.msra.mxu1 %v2756_v33  ;;  %v2884_v10 = vor.u32 %v3277_v8, %v2883_v7  ;;  %v3274_v12 = vld [vmem:[#allocation6 + $0x2ac] sm:$0xf]  ;;  %v2885_v13 = vld [vmem:[#allocation6 + $0x2c0] sm:$0xf0]  ;;  %v2696_v14 = vor.u32 %v3226_v9, %v2693_v11  ;;  %v2667_v16 = vld [vmem:[#allocation6 + $0xf8] sm:$0xf] }
  0x61   : > { %1304 = vmatpush.bf16.msra.mxu2 %v2568_v34  ;;  %v2888_v15 = vor.u32 %v3274_v12, %v2885_v13  ;;  %v3223_v17 = vld [vmem:[#allocation6 + $0x10c] sm:$0xf0]  ;;  %v2859_v18 = vld [vmem:[#allocation6 + $0x278] sm:$0xf]  ;;  %v3220_v22 = vld [vmem:[#allocation6 + $0xfc] sm:$0xf] }
  0x62   : > { %1317 = vmatpush.bf16.msra.mxu3 %v2760_v37  ;;  %v2668_v20 = vor.u32 %v3223_v17, %v2667_v16  ;;  %v3271_v21 = vld [vmem:[#allocation6 + $0x28c] sm:$0xf0]  ;;  %v2669_v23 = vld [vmem:[#allocation6 + $0x110] sm:$0xf0]  ;;  %v3268_v26 = vld [vmem:[#allocation6 + $0x27c] sm:$0xf] }
  0x63   : > { %v2860_v24 = vor.u32 %v3271_v21, %v2859_v18  ;;  %v2672_v25 = vor.u32 %v3220_v22, %v2669_v23  ;;  %v2861_v27 = vld [vmem:[#allocation6 + $0x290] sm:$0xf0]  ;;  %v3217_v30 = vld [vmem:[#allocation6 + $0xdc] sm:$0xf0]  ;;  %v2835_v31 = vld [vmem:[#allocation6 + $0x248] sm:$0xf] }
  0x64   : > { %1292 = vmatpush.bf16.msra.mxu1 %v2732_v48  ;;  %v2864_v28 = vor.u32 %v3268_v26, %v2861_v27  ;;  %v3265_v6 = vld [vmem:[#allocation6 + $0x25c] sm:$0xf0]  ;;  %v3214_v33 = vld [vmem:[#allocation6 + $0xcc] sm:$0xf]  ;;  %v2645_v34 = vld [vmem:[#allocation6 + $0xe0] sm:$0xf0] }
  0x65   : > { %1305 = vmatpush.bf16.msra.mxu2 %v2544_v49  ;;  %v2836_v37 = vor.u32 %v3265_v6, %v2835_v31  ;;  %v3208_v45 = vld [vmem:[#allocation6 + $0x9c] sm:$0xf]  ;;  %v2621_v46 = vld [vmem:[#allocation6 + $0xb0] sm:$0xf0]  ;;  %v2595_v52 = vld [vmem:[#allocation6 + $0x68] sm:$0xf] }
  0x66   : > { %1318 = vmatpush.bf16.msra.mxu3 %v2736_v53  ;;  %v2624_v48 = vor.u32 %v3208_v45, %v2621_v46  ;;  %v3256_v49 = vld [vmem:[#allocation6 + $0x21c] sm:$0xf]  ;;  %v2813_v50 = vld [vmem:[#allocation6 + $0x230] sm:$0xf0]  ;;  %v3205_v53 = vld [vmem:[#allocation6 + $0x7c] sm:$0xf0] }
  0x67   : > { %v2816_v51 = vor.u32 %v3256_v49, %v2813_v50  ;;  %v2787_v54 = vld [vmem:[#allocation6 + $0x1e8] sm:$0xf]  ;;  %v2596_v55 = vor.u32 %v3205_v53, %v2595_v52  ;;  %v3253_v56 = vld [vmem:[#allocation6 + $0x1fc] sm:$0xf0]  ;;  %v3250_v61 = vld [vmem:[#allocation6 + $0x1ec] sm:$0xf] }
  0x68   : > { %1337 = vmatpush.bf16.msrb.mxu1 %v2908_v58  ;;  %v2597_v58 = vld [vmem:[#allocation6 + $0x80] sm:$0xf0]  ;;  %v2788_v59 = vor.u32 %v3253_v56, %v2787_v54  ;;  %v2571_v2 = vld [vmem:[#allocation6 + $0x38] sm:$0xf]  ;;  %v3199_v3 = vld [vmem:[#allocation6 + $0x4c] sm:$0xf0] }
  0x69   : > { %1350 = vmatpush.bf16.msrb.mxu2 %v2720_v62  ;;  %v2789_v62 = vld [vmem:[#allocation6 + $0x200] sm:$0xf0]  ;;  %v3247_v7 = vld [vmem:[#allocation6 + $0x1cc] sm:$0xf0]  ;;  %v3196_v8 = vld [vmem:[#allocation6 + $0x3c] sm:$0xf] }
  0x6a   : > { %1363 = vmatpush.bf16.msrb.mxu3 %v2912_v4  ;;  %v2792_v63 = vor.u32 %v3250_v61, %v2789_v62  ;;  %v2763_v4 = vld [vmem:[#allocation6 + $0x1b8] sm:$0xf]  ;;  %v2573_v9 = vld [vmem:[#allocation6 + $0x50] sm:$0xf0]  ;;  %v3244_v12 = vld [vmem:[#allocation6 + $0x1bc] sm:$0xf] }
  0x6b   : > { %v2576_v11 = vor.u32 %v3196_v8, %v2573_v9  ;;  %v2765_v13 = vld [vmem:[#allocation6 + $0x1d0] sm:$0xf0]  ;;  %v3193_v16 = vld [vmem:[#allocation6 + $0x1c] sm:$0xf0]  ;;  %v2739_v17 = vld [vmem:[#allocation6 + $0x188] sm:$0xf] }
  0x6c   : > { %1338 = vmatpush.bf16.msrb.mxu1 %v2884_v10  ;;  %v2764_v10 = vor.u32 %v3247_v7, %v2763_v4  ;;  %v3190_v21 = vld [vmem:[#allocation6 + $0xc] sm:$0xf]  ;;  %v2549_v22 = vld [vmem:[#allocation6 + $0x20] sm:$0xf0]  ;;  %v2915_v49 = vld [vmem:[#allocation6 + $0x2e0] sm:$0xf] }
  0x6d   : > { %1351 = vmatpush.bf16.msrb.mxu2 %v2696_v14  ;;  %v2768_v14 = vor.u32 %v3244_v12, %v2765_v13  ;;  %v2741_v26 = vld [vmem:[#allocation6 + $0x1a0] sm:$0xf0]  ;;  %v3284_v50 = vld [vmem:[#allocation6 + $0x2f4] sm:$0xf0]  ;;  %v2725_v54 = vld [vmem:[#allocation6 + $0x178] sm:$0xf0] }
  0x6e   : > { %1364 = vmatpush.bf16.msrb.mxu3 %v2888_v15  ;;  %v2547_v15 = vld [vmem:[#allocation6 + $0x8] sm:$0xf]  ;;  %v2917_v56 = vld [vmem:[#allocation6 + $0x2f8] sm:$0xf0]  ;;  %v2701_v4 = vld [vmem:[#allocation6 + $0x148] sm:$0xf0] }
  0x6f   : > { %v2548_v18 = vor.u32 %v3193_v16, %v2547_v15  ;;  %v2893_v7 = vld [vmem:[#allocation6 + $0x2c8] sm:$0xf0]  ;;  %v3272_v15 = vld [vmem:[#allocation6 + $0x294] sm:$0xf0]  ;;  %v3221_v16 = vld [vmem:[#allocation6 + $0x104] sm:$0xf] }
  0x70   : > { %1339 = vmatpush.bf16.msrb.mxu1 %v2860_v24  ;;  %v2552_v24 = vor.u32 %v3190_v21, %v2549_v22  ;;  %vm1478_vm13 = vcmask 39936  }
  0x71   : > { %1352 = vmatpush.bf16.msrb.mxu2 %v2672_v25  ;;  %v3238_v25 = vld [vmem:[#allocation6 + $0x18c] sm:$0xf] }
  0x72   : > { %1365 = vmatpush.bf16.msrb.mxu3 %v2864_v28  ;;  %v2744_v28 = vor.u32 %v3238_v25, %v2741_v26 }
  0x74   : > { %1340 = vmatpush.bf16.msrb.mxu1 %v2836_v37 }
  0xbf   : > { %v632_v29 = vpop.xlane.xlu0 %631 }
  0xc0   : > { %v640_v32 = vmul.f32 %v4148_v19, %v632_v29  ;;  %v2643_v29 = vld [vmem:[#allocation6 + $0xc8] sm:$0xf] }
  0xc2   : > { %v4152_v35 = vsub.f32 %v4132_v0, %v640_v32  ;;  %v4155_v36 = vsub.f32 %v4135_v1, %v640_v32  ;;  %v2539_v1 = vld [vmem:[#allocation6] sm:$0xf]  ;;  %v2644_v32 = vor.u32 %v3217_v30, %v2643_v29 }
  0xc3   : > { %v2540_v44 = vor.u32 %v3192_v42, %v2539_v1  ;;  %v3211_v1 = vld [vmem:[#allocation6 + $0xac] sm:$0xf0]  ;;  %v2811_v42 = vld [vmem:[#allocation6 + $0x218] sm:$0xf] }
  0xc4   : > { %v643_v38 = vmul.f32 %v4152_v35, %v4152_v35  ;;  %v644_v39 = vmul.f32 %v4155_v36, %v4155_v36 }
  0xc5   : > { %1279 = vmatpush.bf16.msra.mxu0 %v2540_v44  ;;  %v3259_v44 = vld [vmem:[#allocation6 + $0x22c] sm:$0xf0] }
  0xc6   : > { %v645_v40 = vsel %vm627_vm0, %v643_v38, 0.0  ;;  %v646_v41 = vsel %vm627_vm0, %v644_v39, 0.0  ;;  %v2648_v38 = vor.u32 %v3214_v33, %v2645_v34  ;;  %v3262_v39 = vld [vmem:[#allocation6 + $0x24c] sm:$0xf]  ;;  %v2812_v47 = vor.u32 %v3259_v44, %v2811_v42  ;;  %v664_v34 = vld [vmem:[#allocation2] sm:$0x3] }
  0xc7   : > { %v647_v0 = vadd.f32 %v646_v41, %v645_v40  ;;  %v2837_v40 = vld [vmem:[#allocation6 + $0x260] sm:$0xf0] }
  0xc8   : > { %v2840_v41 = vor.u32 %v3262_v39, %v2837_v40  ;;  %1353 = vmatpush.bf16.msrb.mxu2 %v2648_v38  ;;  %1341 = vmatpush.bf16.msrb.mxu1 %v2812_v47  ;;  %v672_v38 = vld [vmem:[#allocation4] sm:$0x3]  ;;  %v666_v40 = vperm.slane %v664_v34, 0  ;;  %v2723_v47 = vld [vmem:[#allocation6 + $0x160] sm:$0xf] }
  0xc9   : > { %648 = vadd.xlane.f32.xlu0 %v647_v0  ;;  %1324 = vmatpush.bf16.msrb.mxu0 %v2716_v57  ;;  %v2619_v0 = vld [vmem:[#allocation6 + $0x98] sm:$0xf]  ;;  %v3202_v57 = vld [vmem:[#allocation6 + $0x6c] sm:$0xf]  ;;  %v675_v42 = vperm.slane %v672_v38, 1 }
  0xca   : > { %v2620_v43 = vor.u32 %v3211_v1, %v2619_v0  ;;  %1366 = vmatpush.bf16.msrb.mxu3 %v2840_v41  ;;  %v2600_v60 = vor.u32 %v3202_v57, %v2597_v58  ;;  %v667_v41 = vperm.slane %v664_v34, 1  ;;  %v674_v1 = vperm.slane %v672_v38, 0  ;;  %v2627_v34 = vld [vmem:[#allocation6 + $0xa0] sm:$0xf] }
  0xcc   : > { %1354 = vmatpush.bf16.msrb.mxu2 %v2624_v48  ;;  %1342 = vmatpush.bf16.msrb.mxu1 %v2788_v59  ;;  %v3236_v48 = vld [vmem:[#allocation6 + $0x174] sm:$0xf0] }
  0xcd   : > { %1325 = vmatpush.bf16.msrb.mxu0 %v2692_v5  ;;  %v2572_v5 = vor.u32 %v3199_v3, %v2571_v2  ;;  %v2724_v59 = vor.u32 %v3236_v48, %v2723_v47  ;;  %v3278_v2 = vld [vmem:[#allocation6 + $0x2c4] sm:$0xf0]  ;;  %v3227_v3 = vld [vmem:[#allocation6 + $0x134] sm:$0xf] }
  0xce   : > { %1367 = vmatpush.bf16.msrb.mxu3 %v2816_v51  ;;  %v3233_v51 = vld [vmem:[#allocation6 + $0x164] sm:$0xf]  ;;  %v2704_v12 = vor.u32 %v3227_v3, %v2701_v4  ;;  %v3206_v47 = vld [vmem:[#allocation6 + $0x84] sm:$0xf0]  ;;  %v2581_v3 = vld [vmem:[#allocation6 + $0x58] sm:$0xf0] }
  0xcf   : > { %v2728_v61 = vor.u32 %v3233_v51, %v2725_v54  ;;  %v3254_v51 = vld [vmem:[#allocation6 + $0x204] sm:$0xf0]  ;;  %v3251_v54 = vld [vmem:[#allocation6 + $0x1f4] sm:$0xf]  ;;  %v3245_v4 = vld [vmem:[#allocation6 + $0x1c4] sm:$0xf] }
  0xd0   : > { %1355 = vmatpush.bf16.msrb.mxu2 %v2600_v60  ;;  %1343 = vmatpush.bf16.msrb.mxu1 %v2764_v10  ;;  %v2699_v60 = vld [vmem:[#allocation6 + $0x130] sm:$0xf]  ;;  %v2675_v10 = vld [vmem:[#allocation6 + $0x100] sm:$0xf] }
  0xd1   : > { %1326 = vmatpush.bf16.msrb.mxu0 %v2668_v20  ;;  %v3241_v20 = vld [vmem:[#allocation6 + $0x19c] sm:$0xf0] }
  0xd2   : > { %1368 = vmatpush.bf16.msrb.mxu3 %v2792_v63  ;;  %v2740_v23 = vor.u32 %v3241_v20, %v2739_v17  ;;  %v2891_v63 = vld [vmem:[#allocation6 + $0x2b0] sm:$0xf]  ;;  %v2677_v17 = vld [vmem:[#allocation6 + $0x118] sm:$0xf0] }
  0xd3   : > { %v2892_v9 = vor.u32 %v3278_v2, %v2891_v63  ;;  %v2869_v20 = vld [vmem:[#allocation6 + $0x298] sm:$0xf0]  ;;  %v2680_v25 = vor.u32 %v3221_v16, %v2677_v17  ;;  %v3248_v63 = vld [vmem:[#allocation6 + $0x1d4] sm:$0xf0]  ;;  %v3197_v2 = vld [vmem:[#allocation6 + $0x44] sm:$0xf] }
  0xd4   : > { %1356 = vmatpush.bf16.msrb.mxu2 %v2576_v11  ;;  %1344 = vmatpush.bf16.msrb.mxu1 %v2740_v23  ;;  %v3224_v11 = vld [vmem:[#allocation6 + $0x114] sm:$0xf0]  ;;  %v2651_v23 = vld [vmem:[#allocation6 + $0xd0] sm:$0xf]  ;;  %v2557_v16 = vld [vmem:[#allocation6 + $0x28] sm:$0xf0] }
  0xd5   : > { %1327 = vmatpush.bf16.msrb.mxu0 %v2644_v32  ;;  %v2676_v21 = vor.u32 %v3224_v11, %v2675_v10  ;;  %v3194_v10 = vld [vmem:[#allocation6 + $0x24] sm:$0xf0]  ;;  %v2584_v11 = vor.u32 %v3197_v2, %v2581_v3  ;;  %v3239_v17 = vld [vmem:[#allocation6 + $0x194] sm:$0xf] }
  0xd6   : > { %1369 = vmatpush.bf16.msrb.mxu3 %v2768_v14  ;;  %v2867_v14 = vld [vmem:[#allocation6 + $0x280] sm:$0xf] }
  0xd7   : > { %v2868_v22 = vor.u32 %v3272_v15, %v2867_v14  ;;  %v3242_v14 = vld [vmem:[#allocation6 + $0x1a4] sm:$0xf0]  ;;  %v3191_v15 = vld [vmem:[#allocation6 + $0x14] sm:$0xf] }
  0xd8   : > { %1357 = vmatpush.bf16.msrb.mxu2 %v2552_v24  ;;  %v3218_v24 = vld [vmem:[#allocation6 + $0xe4] sm:$0xf0] }
  0xd9   : > { %1328 = vmatpush.bf16.msrb.mxu0 %v2620_v43 }
  0xda   : > { %1370 = vmatpush.bf16.msrb.mxu3 %v2744_v28  ;;  %v3266_v28 = vld [vmem:[#allocation6 + $0x264] sm:$0xf0] }
  0xdd   : > { %1329 = vmatpush.bf16.msrb.mxu0 %v2596_v55  ;;  %v3281_v55 = vld [vmem:[#allocation6 + $0x2e4] sm:$0xf] }
  0xde   : > { %v2920_v62 = vor.u32 %v3281_v55, %v2917_v56  ;;  %v2797_v55 = vld [vmem:[#allocation6 + $0x208] sm:$0xf0] }
  0xe1   : > { %1330 = vmatpush.bf16.msrb.mxu0 %v2572_v5  ;;  %v3275_v5 = vld [vmem:[#allocation6 + $0x2b4] sm:$0xf] }
  0xe2   : > { %v2896_v13 = vor.u32 %v3275_v5, %v2893_v7  ;;  %v2773_v5 = vld [vmem:[#allocation6 + $0x1d8] sm:$0xf0] }
  0xe5   : > { %1331 = vmatpush.bf16.msrb.mxu0 %v2548_v18  ;;  %v3269_v18 = vld [vmem:[#allocation6 + $0x284] sm:$0xf] }
  0xe6   : > { %v2872_v26 = vor.u32 %v3269_v18, %v2869_v20  ;;  %v2749_v18 = vld [vmem:[#allocation6 + $0x1a8] sm:$0xf0] }
 0x13c   : > { %v649_v27 = vpop.xlane.xlu0 %648 }
 0x13d   : > { %v650_v29 = vmul.f32 %v649_v27, %v4148_v19  ;;  %v2843_v27 = vld [vmem:[#allocation6 + $0x250] sm:$0xf] }
 0x13f   : > { %v651_v30 = vadd.f32 1e-05, %v650_v29  ;;  %v3215_v29 = vld [vmem:[#allocation6 + $0xd4] sm:$0xf] }
 0x141   : > { %3495 = vrsqrt.f32 %v651_v30  ;;  %vm658_vm3 = vweird.f32 %v651_v30 }
 0x147   : > { %v3496_v31 = vpop.eup %3495 }
 0x148   : > { %v653_v32 = vmul.f32 %v3496_v31, %v651_v30  ;;  %vm659_vm2 = vweird.f32 %v3496_v31  ;;  %v2653_v30 = vld [vmem:[#allocation6 + $0xe8] sm:$0xf0] }
 0x149   : > { %vm660_vm4 = vmor %vm658_vm3, %vm659_vm2  ;;  %v2656_v38 = vor.u32 %v3215_v29, %v2653_v30 }
 0x14a   : > { %v654_v6 = vmul.f32 %v3496_v31, %v653_v32  ;;  %v2845_v32 = vld [vmem:[#allocation6 + $0x268] sm:$0xf0] }
 0x14c   : > { %v655_v33 = vmul.f32 0.5, %v654_v6  ;;  %v2652_v6 = vor.u32 %v3218_v24, %v2651_v23  ;;  %v2752_v23 = vor.u32 %v3239_v17, %v2749_v18 }
 0x14e   : > { %v656_v37 = vsub.f32 1.5, %v655_v33  ;;  %v2844_v33 = vor.u32 %v3266_v28, %v2843_v27 }
 0x150   : > { %v657_v39 = vmul.f32 %v3496_v31, %v656_v37  ;;  %v3212_v37 = vld [vmem:[#allocation6 + $0xb4] sm:$0xf0] }
 0x152   : > { %v661_v0 = vsel %vm660_vm4, %v3496_v31, %v657_v39  ;;  %v3263_v31 = vld [vmem:[#allocation6 + $0x254] sm:$0xf] }
 0x153   : > { %v662_v43 = vmul.f32 %v661_v0, %v4152_v35  ;;  %v663_v44 = vmul.f32 %v661_v0, %v4155_v36  ;;  %v2916_v35 = vor.u32 %v3284_v50, %v2915_v49  ;;  %v3230_v36 = vld [vmem:[#allocation6 + $0x144] sm:$0xf0]  ;;  %v2848_v39 = vor.u32 %v3263_v31, %v2845_v32  ;;  %v3209_v0 = vld [vmem:[#allocation6 + $0xa4] sm:$0xf]  ;;  %v2795_v50 = vld [vmem:[#allocation6 + $0x1f0] sm:$0xf] }
 0x154   : > { %v2700_v8 = vor.u32 %v3230_v36, %v2699_v60  ;;  %v3200_v60 = vld [vmem:[#allocation6 + $0x54] sm:$0xf0] }
 0x155   : > { %v670_v45 = vmul.f32 %v666_v40, %v662_v43  ;;  %v671_v46 = vmul.f32 %v667_v41, %v663_v44  ;;  %v2819_v40 = vld [vmem:[#allocation6 + $0x220] sm:$0xf]  ;;  %v3260_v41 = vld [vmem:[#allocation6 + $0x234] sm:$0xf0]  ;;  %v2821_v43 = vld [vmem:[#allocation6 + $0x238] sm:$0xf0]  ;;  %v2628_v44 = vor.u32 %v3212_v37, %v2627_v34 }
 0x157   : > { %v678_v52 = vadd.f32 %v674_v1, %v670_v45  ;;  %v679_v53 = vadd.f32 %v675_v42, %v671_v46  ;;  %v2629_v1 = vld [vmem:[#allocation6 + $0xb8] sm:$0xf0]  ;;  %v3257_v42 = vld [vmem:[#allocation6 + $0x224] sm:$0xf]  ;;  %v2820_v45 = vor.u32 %v3260_v41, %v2819_v40  ;;  %v2603_v46 = vld [vmem:[#allocation6 + $0x70] sm:$0xf] }
 0x158   : > { %v2632_v48 = vor.u32 %v3209_v0, %v2629_v1  ;;  %v2824_v49 = vor.u32 %v3257_v42, %v2821_v43  ;;  %v2604_v56 = vor.u32 %v3206_v47, %v2603_v46 }
 0x159   : > { %v4166_v57 = vpack.c.bf16 %v678_v52, %v678_v52  ;;  %v4168_v58 = vpack.c.bf16 %v679_v53, %v679_v53  ;;  %v3203_v52 = vld [vmem:[#allocation6 + $0x74] sm:$0xf]  ;;  %v2605_v53 = vld [vmem:[#allocation6 + $0x88] sm:$0xf0] }
 0x15a   : > { %v2608_v36 = vor.u32 %v3203_v52, %v2605_v53 }
 0x15b   : > { %1280 = vmatmul.bf16.vlgmr.msra.gmra.mxu0 %v4166_v57  ;;  %1293 = vmatmul.bf16.vlgmr.msra.gmra.mxu1 %v4168_v58 }
 0x15c   : > { %1306 = vmatmul.bf16.vlgmr.msra.gmra.mxu2 %v4166_v57  ;;  %1319 = vmatmul.bf16.vlgmr.msra.gmra.mxu3 %v4168_v58 }
 0x15d   : > { %1376 = vmatpush.bf16.msra.mxu0 %v2724_v59  ;;  %1389 = vmatpush.bf16.msra.mxu1 %v2916_v35  ;;  %v2796_v59 = vor.u32 %v3254_v51, %v2795_v50  ;;  %v2579_v35 = vld [vmem:[#allocation6 + $0x40] sm:$0xf] }
 0x15e   : > { %1402 = vmatpush.bf16.msra.mxu2 %v2728_v61  ;;  %1415 = vmatpush.bf16.msra.mxu3 %v2920_v62  ;;  %v2800_v61 = vor.u32 %v3251_v54, %v2797_v55  ;;  %v2771_v62 = vld [vmem:[#allocation6 + $0x1c0] sm:$0xf]  ;;  %v2580_v7 = vor.u32 %v3200_v60, %v2579_v35 }
 0x161   : > { %1377 = vmatpush.bf16.msra.mxu0 %v2700_v8  ;;  %1390 = vmatpush.bf16.msra.mxu1 %v2892_v9  ;;  %v2772_v8 = vor.u32 %v3248_v63, %v2771_v62  ;;  %v2555_v9 = vld [vmem:[#allocation6 + $0x10] sm:$0xf] }
 0x162   : > { %1403 = vmatpush.bf16.msra.mxu2 %v2704_v12  ;;  %1416 = vmatpush.bf16.msra.mxu3 %v2896_v13  ;;  %v2776_v12 = vor.u32 %v3245_v4, %v2773_v5  ;;  %v2747_v13 = vld [vmem:[#allocation6 + $0x190] sm:$0xf]  ;;  %v2556_v20 = vor.u32 %v3194_v10, %v2555_v9  ;;  %v3935_v9 = vmov 65535  }
 0x163   : > { %v1484_v10 = vsel %vm1482_vm6, 4294967295, %v3935_v9 }
 0x165   : > { %1378 = vmatpush.bf16.msra.mxu0 %v2676_v21  ;;  %1391 = vmatpush.bf16.msra.mxu1 %v2868_v22  ;;  %v2748_v21 = vor.u32 %v3242_v14, %v2747_v13  ;;  %v2560_v22 = vor.u32 %v3191_v15, %v2557_v16  ;;  %v4189_v15 = vsel %vm1483_vm7, %v1484_v10, 0 }
 0x166   : > { %1404 = vmatpush.bf16.msra.mxu2 %v2680_v25  ;;  %1417 = vmatpush.bf16.msra.mxu3 %v2872_v26 }
 0x169   : > { %1379 = vmatpush.bf16.msra.mxu0 %v2652_v6  ;;  %1392 = vmatpush.bf16.msra.mxu1 %v2844_v33  ;;  %v778_v33 = vld [vmem:[#allocation7] sm:$0x3f] }
 0x16a   : > { %1405 = vmatpush.bf16.msra.mxu2 %v2656_v38  ;;  %1418 = vmatpush.bf16.msra.mxu3 %v2848_v39  ;;  %v782_v34 = vperm.slane %v778_v33, 2  ;;  %v781_v37 = vperm.slane %v778_v33, 1  ;;  %v783_v38 = vperm.slane %v778_v33, 3  ;;  %v780_v39 = vperm.slane %v778_v33, 0 }
 0x16b   : > { %1332 = vmatmul.bf16.vlgmr.msrb.gmra.mxu0 %v4166_v57  ;;  %1345 = vmatmul.bf16.vlgmr.msrb.gmra.mxu1 %v4168_v58  ;;  %v785_v63 = vperm.slane %v778_v33, 5 }
 0x16c   : > { %1358 = vmatmul.bf16.vlgmr.msrb.gmra.mxu2 %v4166_v57  ;;  %1371 = vmatmul.bf16.vlgmr.msrb.gmra.mxu3 %v4168_v58 }
 0x16d   : > { %1380 = vmatpush.bf16.msra.mxu0 %v2628_v44  ;;  %1393 = vmatpush.bf16.msra.mxu1 %v2820_v45 }
 0x16e   : > { %1406 = vmatpush.bf16.msra.mxu2 %v2632_v48  ;;  %1419 = vmatpush.bf16.msra.mxu3 %v2824_v49 }
 0x171   : > { %1381 = vmatpush.bf16.msra.mxu0 %v2604_v56  ;;  %1394 = vmatpush.bf16.msra.mxu1 %v2796_v59 }
 0x172   : > { %1407 = vmatpush.bf16.msra.mxu2 %v2608_v36  ;;  %1420 = vmatpush.bf16.msra.mxu3 %v2800_v61  ;;  %v784_v36 = vperm.slane %v778_v33, 4 }
 0x175   : > { %1382 = vmatpush.bf16.msra.mxu0 %v2580_v7  ;;  %1395 = vmatpush.bf16.msra.mxu1 %v2772_v8 }
 0x176   : > { %1408 = vmatpush.bf16.msra.mxu2 %v2584_v11  ;;  %1421 = vmatpush.bf16.msra.mxu3 %v2776_v12 }
 0x179   : > { %1383 = vmatpush.bf16.msra.mxu0 %v2556_v20  ;;  %1396 = vmatpush.bf16.msra.mxu1 %v2748_v21 }
 0x17a   : > { %1409 = vmatpush.bf16.msra.mxu2 %v2560_v22  ;;  %1422 = vmatpush.bf16.msra.mxu3 %v2752_v23 }
 0x17c   : > { %1384 = vmatmul.bf16.vlgmr.msra.gmra.mxu0 %v4166_v57  ;;  %1397 = vmatmul.bf16.vlgmr.msra.gmra.mxu1 %v4168_v58 }
 0x17d   : > { %1410 = vmatmul.bf16.vlgmr.msra.gmra.mxu2 %v4166_v57  ;;  %1423 = vmatmul.bf16.vlgmr.msra.gmra.mxu3 %v4168_v58 }
 0x1d8   : > { %v1281_v24 = vpop.f32.mrf.mxu0  ;;  %v1294_v25 = vpop.f32.mrf.mxu1 }
 0x1d9   : > { %v1282_v43 = vadd.f32 %v1281_v24, %v780_v39 }
 0x1db   : > { %v1295_v48 = vadd.f32 %v1294_v25, %v1282_v43 }
 0x1df   : > { %v1307_v26 = vpop.f32.mrf.mxu2  ;;  %v1320_v27 = vpop.f32.mrf.mxu3 }
 0x1e0   : > { %v1283_v28 = vpop.f32.mrf.mxu0  ;;  %v1296_v29 = vpop.f32.mrf.mxu1  ;;  %v1308_v0 = vadd.f32 %v1307_v26, %v781_v37 }
 0x1e2   : > { %v1321_v46 = vadd.f32 %v1320_v27, %v1308_v0 }
 0x1e4   : > { %v1428_v54 = vpack.c.bf16 %v1321_v46, %v1295_v48 }
 0x1e6   : > { %v1581_v61 = vunpack.c.h.b16 %v1428_v54  ;;  %v1503_v62 = vunpack.c.l.b16 %v1428_v54 }
 0x1e7   : > { %v1309_v30 = vpop.f32.mrf.mxu2  ;;  %v1322_v31 = vpop.f32.mrf.mxu3 }
 0x1e8   : > { %v1333_v32 = vpop.f32.mrf.mxu0  ;;  %v1346_v6 = vpop.f32.mrf.mxu1  ;;  %v1582_v5 = vpack.c.b16 %v1581_v61, %v1581_v61  ;;  %v1504_v7 = vpack.c.b16 %v1503_v62, %v1503_v62 }
 0x1e9   : > { %v1334_v40 = vadd.f32 %v1333_v32, %v782_v34 }
 0x1eb   : > { %v1347_v44 = vadd.f32 %v1346_v6, %v1334_v40 }
 0x1ef   : > { %v1359_v41 = vpop.f32.mrf.mxu2  ;;  %v1372_v57 = vpop.f32.mrf.mxu3 }
 0x1f0   : > { %v1360_v58 = vadd.f32 %v1359_v41, %v783_v38  ;;  %v1335_v1 = vpop.f32.mrf.mxu0  ;;  %v1348_v42 = vpop.f32.mrf.mxu1 }
 0x1f2   : > { %v1373_v45 = vadd.f32 %v1372_v57, %v1360_v58 }
 0x1f4   : > { %v1429_v47 = vpack.c.bf16 %v1373_v45, %v1347_v44 }
 0x1f6   : > { %v1436_v49 = vsel %vm1431_vm5, %v1429_v47, 0  ;;  %v1583_v50 = vunpack.c.h.b16 %v1429_v47  ;;  %v1508_v51 = vunpack.c.l.b16 %v1429_v47 }
 0x1f7   : > { %v1361_v52 = vpop.f32.mrf.mxu2  ;;  %v1374_v53 = vpop.f32.mrf.mxu3  ;;  %1445 = vmatpush.bf16.xpose.msrb.mxu0 %v1436_v49 }
 0x1f8   : > { %v1584_v55 = vpack.c.b16 %v1583_v50, %v1583_v50  ;;  %v1509_v56 = vpack.c.b16 %v1508_v51, %v1508_v51 }
 0x1f9   : > { %v1385_v59 = vpop.f32.mrf.mxu0  ;;  %v1398_v35 = vpop.f32.mrf.mxu1 }
 0x1fa   : > { %1653 = vrot.lane.b32.xlu2 %v1584_v55, %s3934_s22  ;;  %1510 = vrot.lane.b32.xlu1 %v1509_v56, %s3934_s22  ;;  %v1589_v60 = vsel %vm1431_vm5, %v1584_v55, 0  ;;  %v1386_v2 = vadd.f32 %v1385_v59, %v784_v36 }
 0x1fc   : > { %v1399_v13 = vadd.f32 %v1398_v35, %v1386_v2 }
 0x1fe   : > { %2921 = vmatmul.msk.bf16.vlgmr.msrb.gmra.mxu0 %vm1431_vm5, %v1428_v54 }
 0x1ff   : > { %1598 = vmatpush.bf16.xpose.msra.mxu0 %v1589_v60 }
 0x200   : > { %v1411_v3 = vpop.f32.mrf.mxu2  ;;  %v1424_v4 = vpop.f32.mrf.mxu3 }
 0x201   : > { %v1412_v8 = vadd.f32 %v1411_v3, %v785_v63  ;;  %v1387_v11 = vpop.f32.mrf.mxu0  ;;  %v1400_v12 = vpop.f32.mrf.mxu1 }
 0x202   : > { %1651 = vrot.lane.b32.xlu2 %v1582_v5, %s3934_s22  ;;  %1505 = vrot.lane.b32.xlu1 %v1504_v7, %s3934_s22 }
 0x203   : > { %v1425_v14 = vadd.f32 %v1424_v4, %v1412_v8 }
 0x205   : > { %v4191_v16 = vpack.c.bf16 %v1425_v14, %v1399_v13 }
 0x207   : > { %v1487_v17 = vand.u32 %v4189_v15, %v4191_v16  ;;  %v1630_v18 = vunpack.c.h.b16 %v4191_v16  ;;  %v1558_v14 = vunpack.c.l.b16 %v4191_v16 }
 0x208   : > { %v1413_v20 = vpop.f32.mrf.mxu2  ;;  %v1426_v21 = vpop.f32.mrf.mxu3 }
 0x209   : > { %v1631_v22 = vpack.c.b16 %v1630_v18, %v1630_v18  ;;  %1496 = vmatpush.bf16.msrb.mxu1 %v1487_v17  ;;  %v1559_v18 = vpack.c.b16 %v1558_v14, %v1558_v14  ;;  %v3298_v14 = vld [vmem:[#allocation9 + $0x64] sm:$0xf0] }
 0x20b   : > { %v1636_v23 = vand.u32 %v1631_v22, %v4189_v15 }
 0x20d   : > { %1645 = vmatpush.bf16.msra.mxu1 %v1636_v23 }
 0x20e   : > { %2925 = vmatmul.msk.bf16.vlgmr.msra.gmra.mxu0 %vm1431_vm5, %v1582_v5 }
 0x254   : > { %v1654_v24 = vpop.permute.xlu2 %1653 }
 0x255   : > { %v1659_v27 = vsel %vm1431_vm5, %v1654_v24, 0 }
 0x25c   : > { %v1652_v6 = vpop.permute.xlu2 %1651 }
 0x26c   : > { %v1511_v25 = vpop.permute.xlu1 %1510 }
 0x26d   : > { %v1516_v26 = vsel %vm1431_vm5, %v1511_v25, 0 }
 0x26e   : > { %1525 = vmatpush.bf16.xpose.msrb.mxu2 %v1516_v26 }
 0x274   : > { %v1506_v28 = vpop.permute.xlu1 %1505 }
 0x275   : > { %2923 = vmatmul.msk.bf16.vlgmr.msrb.gmra.mxu2 %vm1431_vm5, %v1506_v28 }
 0x276   : > { %1668 = vmatpush.bf16.xpose.msra.mxu2 %v1659_v27 }
 0x27b   : > { %v1447_v29 = vpop.f32.mrf.mxu0 }
 0x27c   : > { %v1451_v30 = vmul.f32 0.125, %v1447_v29 }
 0x27e   : > { %v1453_v31 = vsel %vm1452_vm8, %v1451_v30, -inf }
 0x27f   : > { %1454 = vmax.xlane.f32.xlu2 %v1453_v31 }
 0x283   : > { %v1449_v32 = vpop.f32.mrf.mxu0 }
 0x285   : > { %2927 = vmatmul.msk.bf16.vlgmr.msra.gmra.mxu2 %vm1431_vm5, %v1652_v6 }
 0x28b   : > { %v1600_v33 = vpop.f32.mrf.mxu0 }
 0x28c   : > { %v1604_v40 = vmul.f32 0.125, %v1600_v33 }
 0x28e   : > { %v1605_v58 = vsel %vm1452_vm8, %v1604_v40, -inf }
 0x293   : > { %v1602_v34 = vpop.f32.mrf.mxu0 }
 0x297   : > { %1700 = vrot.lane.b32.xlu2 %v1631_v22, %s3934_s22 }
 0x2f2   : > { %v1455_v41 = vpop.xlane.xlu2 %1454 }
 0x2f3   : > { %v1456_v0 = vsub.f32 %v1451_v30, %v1455_v41 }
 0x2f5   : > { %v1457_v1 = vmul.f32 1.442695, %v1456_v0 }
 0x2f7   : > { %3497 = vpow2.f32 %v1457_v1 }
 0x2f8   : > { %v1527_v37 = vpop.f32.mrf.mxu2 }
 0x2f9   : > { %v1531_v38 = vmul.f32 0.125, %v1527_v37 }
 0x2fb   : > { %v1532_v39 = vsel %vm1452_vm8, %v1531_v38, -inf }
 0x2fc   : > { %1533 = vmax.xlane.f32.xlu0 %v1532_v39 }
 0x2fd   : > { %v3498_v45 = vpop.eup %3497 }
 0x2fe   : > { %v1459_v47 = vsel %vm1452_vm8, %v3498_v45, 0.0 }
 0x300   : > { %v1529_v57 = vpop.f32.mrf.mxu2 }
 0x304   : > { %1606 = vmax.xlane.f32.xlu0 %v1605_v58 }
 0x308   : > { %v1670_v42 = vpop.f32.mrf.mxu2 }
 0x309   : > { %v1674_v43 = vmul.f32 0.125, %v1670_v42 }
 0x30b   : > { %v1675_v44 = vsel %vm1452_vm8, %v1674_v43, -inf }
 0x30c   : > { %1676 = vmax.xlane.f32.xlu1 %v1675_v44  ;;  %v1701_v44 = vpop.permute.xlu2 %1700 }
 0x310   : > { %v1672_v46 = vpop.f32.mrf.mxu2 }
 0x314   : > { %1460 = vadd.xlane.f32.xlu1 %v1459_v47 }
 0x36f   : > { %v1534_v48 = vpop.xlane.xlu0 %1533 }
 0x370   : > { %v1535_v49 = vsub.f32 %v1531_v38, %v1534_v48  ;;  %v1706_v48 = vand.u32 %v1701_v44, %v4189_v15  ;;  %v3029_v44 = vld [vmem:[#allocation9 + $0xc8] sm:$0xf0] }
 0x372   : > { %v1536_v50 = vmul.f32 1.442695, %v1535_v49 }
 0x374   : > { %3499 = vpow2.f32 %v1536_v50 }
 0x377   : > { %v1607_v51 = vpop.xlane.xlu0 %1606 }
 0x378   : > { %v1608_v52 = vsub.f32 %v1604_v40, %v1607_v51 }
 0x37a   : > { %v4208_v53 = vpop.eup %3499  ;;  %v1609_v54 = vmul.f32 1.442695, %v1608_v52 }
 0x37b   : > { %v1538_v55 = vsel %vm1452_vm8, %v4208_v53, 0.0 }
 0x37c   : > { %3501 = vpow2.f32 %v1609_v54  ;;  %1539 = vadd.xlane.f32.xlu0 %v1538_v55 }
 0x37f   : > { %v1677_v56 = vpop.xlane.xlu1 %1676 }
 0x380   : > { %v1678_v59 = vsub.f32 %v1674_v43, %v1677_v56 }
 0x382   : > { %v3502_v35 = vpop.eup %3501  ;;  %v1679_v60 = vmul.f32 1.442695, %v1678_v59 }
 0x383   : > { %v1611_v36 = vsel %vm1452_vm8, %v3502_v35, 0.0 }
 0x384   : > { %3503 = vpow2.f32 %v1679_v60  ;;  %1612 = vadd.xlane.f32.xlu1 %v1611_v36 }
 0x387   : > { %v1461_v61 = vpop.xlane.xlu1 %1460 }
 0x388   : > { %3505 = vrcp.f32 %v1461_v61  ;;  %v1473_v5 = vand.u32 2147483648, %v1461_v61  ;;  %v1471_v8 = vand.u32 2147483647, %v1461_v61  ;;  %vm1467_vm10 = vweird.f32 %v1461_v61 }
 0x38a   : > { %v4213_v62 = vpop.eup %3503  ;;  %v1474_v10 = vor.u32 1.1754944e-38, %v1473_v5  ;;  %vm1472_vm12 = vcmp.eq.f32.partialorder %v1471_v8, 8.507059e+37  ;;  %v3316_v5 = vld [vmem:[#allocation9 + $0xf4] sm:$0xf0]  ;;  %v2989_v8 = vld [vmem:[#allocation9 + $0x78] sm:$0xf0] }
 0x38b   : > { %v1681_v63 = vsel %vm1452_vm8, %v4213_v62, 0.0 }
 0x38c   : > { %1682 = vadd.xlane.f32.xlu0 %v1681_v63  ;;  %v2987_v63 = vld [vmem:[#allocation9 + $0x70] sm:$0xf] }
 0x38e   : > { %v3506_v2 = vpop.eup %3505 }
 0x38f   : > { %v1463_v3 = vmul.f32 %v3506_v2, %v1461_v61  ;;  %vm1468_vm9 = vweird.f32 %v3506_v2 }
 0x390   : > { %vm1469_vm11 = vmor %vm1467_vm10, %vm1468_vm9 }
 0x391   : > { %v1464_v4 = vsub.f32 1.0, %v1463_v3  ;;  %v3051_v3 = vld [vmem:[#allocation9 + $0xf0] sm:$0xf] }
 0x393   : > { %v1465_v7 = vmul.f32 %v3506_v2, %v1464_v4 }
 0x395   : > { %v1466_v9 = vadd.f32 %v3506_v2, %v1465_v7  ;;  %v3299_v7 = vld [vmem:[#allocation9 + $0x74] sm:$0xf] }
 0x397   : > { %v1470_v11 = vsel %vm1469_vm11, %v3506_v2, %v1466_v9  ;;  %v3300_v2 = vld [vmem:[#allocation9 + $0x74] sm:$0xf0]  ;;  %v3052_v9 = vor.u32 %v3316_v5, %v3051_v3  ;;  %v3011_v3 = vld [vmem:[#allocation9 + $0xa0] sm:$0xf]  ;;  %v3306_v5 = vld [vmem:[#allocation9 + $0xa4] sm:$0xf0] }
 0x398   : > { %v1475_v12 = vsel %vm1472_vm12, %v1474_v10, %v1470_v11  ;;  %v2988_v4 = vor.u32 %v3300_v2, %v2987_v63  ;;  %v2992_v10 = vor.u32 %v3299_v7, %v2989_v8  ;;  %v3315_v11 = vld [vmem:[#allocation9 + $0xf4] sm:$0xf]  ;;  %v2947_v63 = vld [vmem:[#allocation9 + $0x20] sm:$0xf]  ;;  %v3290_v2 = vld [vmem:[#allocation9 + $0x24] sm:$0xf0] }
 0x399   : > { %v1476_v13 = vmul.f32 %v3498_v45, %v1475_v12  ;;  %v3053_v12 = vld [vmem:[#allocation9 + $0xf8] sm:$0xf0]  ;;  %v3289_v7 = vld [vmem:[#allocation9 + $0x24] sm:$0xf]  ;;  %v2949_v8 = vld [vmem:[#allocation9 + $0x28] sm:$0xf0] }
 0x39a   : > { %1931 = vmatpush.bf16.msrb.mxu0 %v2988_v4  ;;  %1957 = vmatpush.bf16.msrb.mxu2 %v2992_v10  ;;  %v3013_v10 = vld [vmem:[#allocation9 + $0xa8] sm:$0xf0] }
 0x39b   : > { %v1477_v17 = vpack.c.bf16 %v1476_v13, %v1476_v13  ;;  %v2979_v13 = vld [vmem:[#allocation9 + $0x60] sm:$0xf] }
 0x39d   : > { %2922 = vmatmul.msk.bf16.vlgmr.msrb.gmra.mxu1 %vm1478_vm13, %v1477_v17  ;;  %v3043_v17 = vld [vmem:[#allocation9 + $0xe0] sm:$0xf] }
 0x39e   : > { %1944 = vmatpush.bf16.msrb.mxu1 %v3052_v9  ;;  %v3305_v9 = vld [vmem:[#allocation9 + $0xa4] sm:$0xf] }
 0x3a0   : > { %1560 = vrot.lane.b32.xlu0 %v1559_v18, %s3934_s22  ;;  %v3314_v18 = vld [vmem:[#allocation9 + $0xe4] sm:$0xf0] }
 0x3ef   : > { %v1540_v20 = vpop.xlane.xlu0 %1539 }
 0x3f0   : > { %3507 = vrcp.f32 %v1540_v20  ;;  %v1552_v39 = vand.u32 2147483648, %v1540_v20  ;;  %vm1546_vm4 = vweird.f32 %v1540_v20  ;;  %v1550_v41 = vand.u32 2147483647, %v1540_v20 }
 0x3f2   : > { %v1553_v1 = vor.u32 1.1754944e-38, %v1552_v39  ;;  %vm1551_vm7 = vcmp.eq.f32.partialorder %v1550_v41, 8.507059e+37  ;;  %v3294_v41 = vld [vmem:[#allocation9 + $0x44] sm:$0xf0] }
 0x3f6   : > { %v3508_v22 = vpop.eup %3507 }
 0x3f7   : > { %v1613_v21 = vpop.xlane.xlu1 %1612  ;;  %v1542_v23 = vmul.f32 %v3508_v22, %v1540_v20  ;;  %vm1547_vm3 = vweird.f32 %v3508_v22  ;;  %v2980_v20 = vor.u32 %v3298_v14, %v2979_v13  ;;  %v2952_v13 = vor.u32 %v3289_v7, %v2949_v8  ;;  %v3288_v14 = vld [vmem:[#allocation9 + $0x14] sm:$0xf0]  ;;  %v3324_v8 = vld [vmem:[#allocation15 + $0x38] sm:$0xff] }
 0x3f8   : > { %3509 = vrcp.f32 %v1613_v21  ;;  %v1625_v29 = vand.u32 2147483648, %v1613_v21  ;;  %v1623_v16 = vand.u32 2147483647, %v1613_v21  ;;  %vm1619_vm15 = vweird.f32 %v1613_v21  ;;  %vm1548_vm6 = vmor %vm1546_vm4, %vm1547_vm3 }
 0x3f9   : > { %v1543_v26 = vsub.f32 1.0, %v1542_v23  ;;  %v2981_v23 = vld [vmem:[#allocation9 + $0x68] sm:$0xf0]  ;;  %1932 = vmatpush.bf16.msrb.mxu0 %v2980_v20  ;;  %v3304_v20 = vld [vmem:[#allocation9 + $0x94] sm:$0xf0] }
 0x3fa   : > { %v1626_v6 = vor.u32 1.1754944e-38, %v1625_v29  ;;  %vm1624_vm2 = vcmp.eq.f32.partialorder %v1623_v16, 8.507059e+37  ;;  %v3312_v16 = vld [vmem:[#allocation9 + $0xd4] sm:$0xf0] }
 0x3fb   : > { %v1544_v31 = vmul.f32 %v3508_v22, %v1543_v26  ;;  %v3045_v26 = vld [vmem:[#allocation9 + $0xe8] sm:$0xf0] }
 0x3fd   : > { %v1545_v34 = vadd.f32 %v3508_v22, %v1544_v31  ;;  %v3295_v31 = vld [vmem:[#allocation9 + $0x54] sm:$0xf] }
 0x3fe   : > { %v3510_v24 = vpop.eup %3509 }
 0x3ff   : > { %v1615_v25 = vmul.f32 %v3510_v24, %v1613_v21  ;;  %v1683_v27 = vpop.xlane.xlu0 %1682  ;;  %vm1620_vm14 = vweird.f32 %v3510_v24  ;;  %v1549_v0 = vsel %vm1548_vm6, %v3508_v22, %v1545_v34  ;;  %v3044_v21 = vor.u32 %v3314_v18, %v3043_v17  ;;  %v3297_v22 = vld [vmem:[#allocation9 + $0x64] sm:$0xf]  ;;  %v3037_v34 = vld [vmem:[#allocation9 + $0xd8] sm:$0xf0]  ;;  %v3003_v17 = vld [vmem:[#allocation9 + $0x90] sm:$0xf] }
 0x400   : > { %3511 = vrcp.f32 %v1683_v27  ;;  %vm1621_vm1 = vmor %vm1619_vm15, %vm1620_vm14  ;;  %v1554_v42 = vsel %vm1551_vm7, %v1553_v1, %v1549_v0  ;;  %v1695_v52 = vand.u32 2147483648, %v1683_v27  ;;  %vm1689_vm9 = vweird.f32 %v1683_v27  ;;  %v3293_v1 = vld [vmem:[#allocation9 + $0x44] sm:$0xf] }
 0x401   : > { %v1616_v28 = vsub.f32 1.0, %v1615_v25  ;;  %v1555_v45 = vmul.f32 %v4208_v53, %v1554_v42  ;;  %v1693_v54 = vand.u32 2147483647, %v1683_v27  ;;  %v2984_v25 = vor.u32 %v3297_v22, %v2981_v23  ;;  %1945 = vmatpush.bf16.msrb.mxu1 %v3044_v21  ;;  %v2965_v42 = vld [vmem:[#allocation9 + $0x48] sm:$0xf0] }
 0x402   : > { %v1696_v56 = vor.u32 1.1754944e-38, %v1695_v52  ;;  %v3308_v52 = vld [vmem:[#allocation9 + $0xb4] sm:$0xf0]  ;;  %v3016_v18 = vor.u32 %v3305_v9, %v3013_v10  ;;  %v3287_v21 = vld [vmem:[#allocation9 + $0x14] sm:$0xf]  ;;  %v3332_v9 = vld [vmem:[#allocation15 + $0x78] sm:$0xff] }
 0x403   : > { %v1617_v30 = vmul.f32 %v3510_v24, %v1616_v28  ;;  %v1556_v50 = vpack.c.bf16 %v1555_v45, %v1555_v45  ;;  %vm1694_vm11 = vcmp.eq.f32.partialorder %v1693_v54, 8.507059e+37  ;;  %v3296_v28 = vld [vmem:[#allocation9 + $0x54] sm:$0xf0]  ;;  %1958 = vmatpush.bf16.msrb.mxu2 %v2984_v25  ;;  %v3291_v54 = vld [vmem:[#allocation9 + $0x34] sm:$0xf] }
 0x404   : > { %v2941_v22 = vld [vmem:[#allocation9 + $0x18] sm:$0xf0]  ;;  %v3303_v23 = vld [vmem:[#allocation9 + $0x94] sm:$0xf] }
 0x405   : > { %v1618_v32 = vadd.f32 %v3510_v24, %v1617_v30  ;;  %v3035_v30 = vld [vmem:[#allocation9 + $0xd0] sm:$0xf] }
 0x406   : > { %v3512_v38 = vpop.eup %3511 }
 0x407   : > { %v1622_v33 = vsel %vm1621_vm1, %v3510_v24, %v1618_v32  ;;  %v1685_v58 = vmul.f32 %v3512_v38, %v1683_v27  ;;  %vm1690_vm8 = vweird.f32 %v3512_v38  ;;  %v3313_v24 = vld [vmem:[#allocation9 + $0xe4] sm:$0xf]  ;;  %v2971_v27 = vld [vmem:[#allocation9 + $0x50] sm:$0xf] }
 0x408   : > { %v1627_v37 = vsel %vm1624_vm2, %v1626_v6, %v1622_v33  ;;  %vm1691_vm10 = vmor %vm1689_vm9, %vm1690_vm8  ;;  %v3048_v29 = vor.u32 %v3313_v24, %v3045_v26  ;;  %v2972_v32 = vor.u32 %v3296_v28, %v2971_v27  ;;  %v2973_v6 = vld [vmem:[#allocation9 + $0x58] sm:$0xf0]  ;;  %v3311_v33 = vld [vmem:[#allocation9 + $0xd4] sm:$0xf]  ;;  %v3004_v27 = vor.u32 %v3304_v20, %v3003_v17 }
 0x409   : > { %v1628_v40 = vmul.f32 %v3502_v35, %v1627_v37  ;;  %v1686_v43 = vsub.f32 1.0, %v1685_v58  ;;  %v2976_v39 = vor.u32 %v3295_v31, %v2973_v6  ;;  %v3040_v0 = vor.u32 %v3311_v33, %v3037_v34  ;;  %v3310_v58 = vld [vmem:[#allocation9 + $0xc4] sm:$0xf0]  ;;  %v3005_v24 = vld [vmem:[#allocation9 + $0x98] sm:$0xf0] }
 0x40a   : > { %1933 = vmatpush.bf16.msrb.mxu0 %v2972_v32  ;;  %v2944_v28 = vor.u32 %v3287_v21, %v2941_v22  ;;  %v2931_v31 = vld [vmem:[#allocation9] sm:$0xf]  ;;  %v3286_v32 = vld [vmem:[#allocation9 + $0x4] sm:$0xf0]  ;;  %v3323_v21 = vld [vmem:[#allocation15 + $0x30] sm:$0xff] }
 0x40b   : > { %v1629_v57 = vpack.c.bf16 %v1628_v40, %v1628_v40  ;;  %v1687_v49 = vmul.f32 %v3512_v38, %v1686_v43  ;;  %v2963_v40 = vld [vmem:[#allocation9 + $0x40] sm:$0xf]  ;;  %v3309_v43 = vld [vmem:[#allocation9 + $0xc4] sm:$0xf]  ;;  %1959 = vmatpush.bf16.msrb.mxu2 %v2976_v39  ;;  %v2932_v33 = vor.u32 %v3286_v32, %v2931_v31  ;;  %v3302_v34 = vld [vmem:[#allocation9 + $0x84] sm:$0xf0] }
 0x40c   : > { %v2964_v45 = vor.u32 %v3294_v41, %v2963_v40  ;;  %v2995_v6 = vld [vmem:[#allocation9 + $0x80] sm:$0xf]  ;;  %v2933_v39 = vld [vmem:[#allocation9 + $0x8] sm:$0xf0]  ;;  %v3331_v22 = vld [vmem:[#allocation15 + $0x70] sm:$0xff] }
 0x40d   : > { %2926 = vmatmul.msk.bf16.vlgmr.msra.gmra.mxu1 %vm1478_vm13, %v1629_v57  ;;  %v1688_v51 = vadd.f32 %v3512_v38, %v1687_v49  ;;  %v3027_v57 = vld [vmem:[#allocation9 + $0xc0] sm:$0xf]  ;;  %v3292_v49 = vld [vmem:[#allocation9 + $0x34] sm:$0xf0]  ;;  %v2996_v40 = vor.u32 %v3302_v34, %v2995_v6  ;;  %v3326_v31 = vld [vmem:[#allocation15 + $0x48] sm:$0xff] }
 0x40e   : > { %1934 = vmatpush.bf16.msrb.mxu0 %v2964_v45  ;;  %v3317_v32 = vld [vmem:[#allocation15] sm:$0xff]  ;;  %v3348_v34 = vld [vmem:[#allocation18 + $0x74] sm:$0xf0] }
 0x40f   : > { %v1692_v53 = vsel %vm1691_vm10, %v3512_v38, %v1688_v51  ;;  %v3036_v38 = vor.u32 %v3312_v16, %v3035_v30  ;;  %v3032_v51 = vor.u32 %v3309_v43, %v3029_v44  ;;  %v3008_v30 = vor.u32 %v3303_v23, %v3005_v24  ;;  %v3322_v23 = vld [vmem:[#allocation15 + $0x28] sm:$0xff]  ;;  %v3325_v6 = vld [vmem:[#allocation15 + $0x40] sm:$0xff] }
 0x410   : > { %v1697_v59 = vsel %vm1694_vm11, %v1696_v56, %v1692_v53  ;;  %v2957_v53 = vld [vmem:[#allocation9 + $0x38] sm:$0xf0]  ;;  %v3307_v56 = vld [vmem:[#allocation9 + $0xb4] sm:$0xf] }
 0x411   : > { %1946 = vmatpush.bf16.msrb.mxu1 %v3036_v38  ;;  %v3285_v38 = vld [vmem:[#allocation9 + $0x4] sm:$0xf]  ;;  %v3330_v24 = vld [vmem:[#allocation15 + $0x68] sm:$0xff] }
 0x412   : > { %v1561_v46 = vpop.permute.xlu0 %1560  ;;  %v2936_v41 = vor.u32 %v3285_v38, %v2933_v39  ;;  %v3347_v38 = vld [vmem:[#allocation18 + $0x74] sm:$0xf] }
 0x413   : > { %v1566_v47 = vand.u32 %v1561_v46, %v4189_v15  ;;  %v1698_v15 = vmul.f32 %v4213_v62, %v1697_v59  ;;  %v3056_v62 = vor.u32 %v3315_v11, %v3053_v12  ;;  %v3028_v46 = vor.u32 %v3310_v58, %v3027_v57  ;;  %v3021_v59 = vld [vmem:[#allocation9 + $0xb8] sm:$0xf0]  ;;  %v3301_v57 = vld [vmem:[#allocation9 + $0x84] sm:$0xf] }
 0x414   : > { %v3024_v4 = vor.u32 %v3307_v56, %v3021_v59  ;;  %v2948_v11 = vor.u32 %v3290_v2, %v2947_v63  ;;  %v3012_v12 = vor.u32 %v3306_v5, %v3011_v3 }
 0x415   : > { %1575 = vmatpush.bf16.msrb.mxu3 %v1566_v47  ;;  %v1699_v60 = vpack.c.bf16 %v1698_v15, %v1698_v15  ;;  %v2968_v47 = vor.u32 %v3293_v1, %v2965_v42  ;;  %1947 = vmatpush.bf16.msrb.mxu1 %v3028_v46 }
 0x417   : > { %1960 = vmatpush.bf16.msrb.mxu2 %v2968_v47  ;;  %v1765_v47 = vld [vmem:[#allocation10] sm:$0x3] }
 0x418   : > { %2924 = vmatmul.msk.bf16.vlgmr.msrb.gmra.mxu3 %vm1478_vm13, %v1556_v50  ;;  %v3019_v50 = vld [vmem:[#allocation9 + $0xb0] sm:$0xf] }
 0x419   : > { %1715 = vmatpush.bf16.msra.mxu3 %v1706_v48  ;;  %v2955_v48 = vld [vmem:[#allocation9 + $0x30] sm:$0xf] }
 0x41a   : > { %v4225_v55 = vpop.f32.mrf.mxu1  ;;  %v2956_v15 = vor.u32 %v3292_v49, %v2955_v48  ;;  %v1767_v48 = vperm.slane %v1765_v47, 0 }
 0x41c   : > { %1935 = vmatpush.bf16.msrb.mxu0 %v2956_v15  ;;  %v3517_v15 = vld [vmem:[%s4129_s30] sm:$0x1f] }
 0x41d   : > { %1970 = vmatpush.bf16.msrb.mxu3 %v3056_v62  ;;  %v2939_v62 = vld [vmem:[#allocation9 + $0x10] sm:$0xf] }
 0x41e   : > { %v2940_v25 = vor.u32 %v3288_v14, %v2939_v62 }
 0x420   : > { %1936 = vmatpush.bf16.msrb.mxu0 %v2948_v11 }
 0x421   : > { %1971 = vmatpush.bf16.msrb.mxu3 %v3048_v29 }
 0x422   : > { %v1500_v35 = vpop.f32.mrf.mxu1 }
 0x424   : > { %1937 = vmatpush.bf16.msrb.mxu0 %v2940_v25  ;;  %v3321_v25 = vld [vmem:[#allocation15 + $0x20] sm:$0xff] }
 0x425   : > { %1972 = vmatpush.bf16.msrb.mxu3 %v3040_v0 }
 0x428   : > { %2928 = vmatmul.msk.bf16.vlgmr.msra.gmra.mxu3 %vm1478_vm13, %v1699_v60  ;;  %v3020_v60 = vor.u32 %v3308_v52, %v3019_v50  ;;  %1938 = vmatpush.bf16.msrb.mxu0 %v2932_v33  ;;  %v1768_v52 = vperm.slane %v1765_v47, 1  ;;  %v3179_v33 = vld [vmem:[#allocation18 + $0x70] sm:$0xf]  ;;  %v2022_v47 = vld [vmem:[#allocation13] sm:$0x3] }
 0x429   : > { %1973 = vmatpush.bf16.msrb.mxu3 %v3032_v51 }
 0x42a   : > { %1948 = vmatpush.bf16.msrb.mxu1 %v3020_v60 }
 0x42c   : > { %2164 = vmatpush.bf16.msra.mxu0 %v3324_v8  ;;  %v3344_v8 = vld [vmem:[#allocation18 + $0x54] sm:$0xf0] }
 0x42d   : > { %1974 = vmatpush.bf16.msrb.mxu3 %v3024_v4 }
 0x42e   : > { %1949 = vmatpush.bf16.msrb.mxu1 %v3012_v12 }
 0x430   : > { %2165 = vmatpush.bf16.msra.mxu0 %v3323_v21  ;;  %v3147_v21 = vld [vmem:[#allocation18 + $0x30] sm:$0xf] }
 0x431   : > { %1975 = vmatpush.bf16.msrb.mxu3 %v3016_v18 }
 0x432   : > { %1950 = vmatpush.bf16.msrb.mxu1 %v3004_v27  ;;  %v3320_v27 = vld [vmem:[#allocation15 + $0x18] sm:$0xff] }
 0x434   : > { %2166 = vmatpush.bf16.msra.mxu0 %v3322_v23  ;;  %v3339_v23 = vld [vmem:[#allocation18 + $0x34] sm:$0xf] }
 0x435   : > { %1976 = vmatpush.bf16.msrb.mxu3 %v3008_v30  ;;  %v3327_v30 = vld [vmem:[#allocation15 + $0x50] sm:$0xff] }
 0x436   : > { %1951 = vmatpush.bf16.msrb.mxu1 %v2996_v40  ;;  %v3180_v40 = vor.u32 %v3348_v34, %v3179_v33  ;;  %v3335_v33 = vld [vmem:[#allocation18 + $0x14] sm:$0xf]  ;;  %v3133_v34 = vld [vmem:[#allocation18 + $0x18] sm:$0xf0] }
 0x438   : > { %2167 = vmatpush.bf16.msra.mxu0 %v3321_v25  ;;  %v3149_v25 = vld [vmem:[#allocation18 + $0x38] sm:$0xf0] }
 0x43a   : > { %2177 = vmatpush.bf16.msra.mxu1 %v3332_v9  ;;  %v3343_v9 = vld [vmem:[#allocation18 + $0x54] sm:$0xf] }
 0x43c   : > { %2168 = vmatpush.bf16.msra.mxu0 %v3320_v27  ;;  %v3338_v27 = vld [vmem:[#allocation18 + $0x24] sm:$0xf0] }
 0x43e   : > { %2178 = vmatpush.bf16.msra.mxu1 %v3331_v22  ;;  %v3340_v22 = vld [vmem:[#allocation18 + $0x34] sm:$0xf0] }
 0x442   : > { %2179 = vmatpush.bf16.msra.mxu1 %v3330_v24  ;;  %v3148_v24 = vor.u32 %v3340_v22, %v3147_v21 }
 0x48a   : > { %v4229_v36 = vpop.f32.mrf.mxu1 }
 0x492   : > { %v1649_v61 = vpop.f32.mrf.mxu1 }
 0x493   : > { %v2960_v61 = vor.u32 %v3291_v54, %v2957_v53 }
 0x495   : > { %1961 = vmatpush.bf16.msrb.mxu2 %v2960_v61  ;;  %v3518_v61 = vld [vmem:[%s4129_s30 + $0x8] sm:$0x1f] }
 0x499   : > { %1962 = vmatpush.bf16.msrb.mxu2 %v2952_v13 }
 0x49b   : > { %v4231_v37 = vpop.f32.mrf.mxu3 }
 0x49d   : > { %1963 = vmatpush.bf16.msrb.mxu2 %v2944_v28  ;;  %v3328_v28 = vld [vmem:[#allocation15 + $0x58] sm:$0xff] }
 0x4a1   : > { %1964 = vmatpush.bf16.msrb.mxu2 %v2936_v41  ;;  %v3181_v41 = vld [vmem:[#allocation18 + $0x78] sm:$0xf0] }
 0x4a3   : > { %v1579_v35 = vpop.f32.mrf.mxu3 }
 0x4a5   : > { %2302 = vmatpush.bf16.msra.mxu2 %v3180_v40  ;;  %v3123_v40 = vld [vmem:[#allocation18] sm:$0xf] }
 0x4ab   : > { %v1717_v26 = vpop.f32.mrf.mxu3 }
 0x4ac   : > { %v3487_v29 = vpack.i.bf16 %v1717_v26, %v4231_v37  ;;  %v2997_v37 = vld [vmem:[#allocation9 + $0x88] sm:$0xf0] }
 0x4ad   : > { %v3000_v0 = vor.u32 %v3301_v57, %v2997_v37  ;;  %v3329_v26 = vld [vmem:[#allocation15 + $0x60] sm:$0xff]  ;;  %v3184_v37 = vor.u32 %v3347_v38, %v3181_v41  ;;  %v3334_v41 = vld [vmem:[#allocation18 + $0x4] sm:$0xf0] }
 0x4ae   : > { %3488 = vrot.lane.b32.xlu0 %v3487_v29, %s3934_s22  ;;  %2180 = vmatpush.bf16.msra.mxu1 %v3329_v26  ;;  %v3319_v29 = vld [vmem:[#allocation15 + $0x10] sm:$0xff]  ;;  %v3139_v26 = vld [vmem:[#allocation18 + $0x20] sm:$0xf] }
 0x4af   : > { %1977 = vmatpush.bf16.msrb.mxu3 %v3000_v0  ;;  %2169 = vmatpush.bf16.msra.mxu0 %v3319_v29  ;;  %v3337_v29 = vld [vmem:[#allocation18 + $0x24] sm:$0xf] }
 0x4b2   : > { %2181 = vmatpush.bf16.msra.mxu1 %v3328_v28  ;;  %v3152_v28 = vor.u32 %v3339_v23, %v3149_v25 }
 0x4b3   : > { %v1719_v16 = vpop.f32.mrf.mxu3  ;;  %2315 = vmatpush.bf16.msra.mxu3 %v3184_v37  ;;  %v3125_v37 = vld [vmem:[#allocation18 + $0x8] sm:$0xf0] }
 0x4b4   : > { %v3318_v16 = vld [vmem:[#allocation15 + $0x8] sm:$0xff] }
 0x4b5   : > { %2170 = vmatpush.bf16.msra.mxu0 %v3318_v16  ;;  %v3140_v16 = vor.u32 %v3338_v27, %v3139_v26 }
 0x4b6   : > { %2182 = vmatpush.bf16.msra.mxu1 %v3327_v30  ;;  %v3141_v30 = vld [vmem:[#allocation18 + $0x28] sm:$0xf0] }
 0x4b9   : > { %2171 = vmatpush.bf16.msra.mxu0 %v3317_v32  ;;  %v3131_v32 = vld [vmem:[#allocation18 + $0x10] sm:$0xf] }
 0x4ba   : > { %2183 = vmatpush.bf16.msra.mxu1 %v3326_v31  ;;  %v3144_v31 = vor.u32 %v3337_v29, %v3141_v30 }
 0x4be   : > { %2184 = vmatpush.bf16.msra.mxu1 %v3325_v6  ;;  %v3336_v6 = vld [vmem:[#allocation18 + $0x14] sm:$0xf0] }
 0x4bf   : > { %v3132_v38 = vor.u32 %v3336_v6, %v3131_v32 }
 0x520   : > { %v3489_v58 = vpop.permute.xlu0 %3488 }
 0x521   : > { %v3491_v1 = vunpack.i.h.bf16 %v3489_v58  ;;  %v3490_v42 = vunpack.i.l.bf16 %v3489_v58 }
 0x523   : > { %v1730_v43 = vsel %vm1431_vm5, %v4229_v36, %v3491_v1  ;;  %v1729_v44 = vsel %vm1431_vm5, %v4225_v55, %v3490_v42 }
 0x524   : > { %v1732_v45 = vpack.c.bf16 %v1730_v43, %v1730_v43  ;;  %v1731_v46 = vpack.c.bf16 %v1729_v44, %v1729_v44 }
 0x526   : > { %1939 = vmatmul.bf16.vlgmr.msrb.gmra.mxu0 %v1731_v46  ;;  %1952 = vmatmul.bf16.vlgmr.msrb.gmra.mxu1 %v1732_v45 }
 0x527   : > { %1965 = vmatmul.bf16.vlgmr.msrb.gmra.mxu2 %v1731_v46  ;;  %1978 = vmatmul.bf16.vlgmr.msrb.gmra.mxu3 %v1732_v45  ;;  %v2014_v45 = vld [vmem:[#allocation12] sm:$0x3] }
 0x5a3   : > { %v1940_v49 = vpop.f32.mrf.mxu0  ;;  %v1953_v50 = vpop.f32.mrf.mxu1 }
 0x5a4   : > { %v1941_v51 = vadd.f32 %v1940_v49, %v1767_v48  ;;  %v2016_v48 = vperm.slane %v2014_v45, 0  ;;  %v2017_v49 = vperm.slane %v2014_v45, 1 }
 0x5a6   : > { %v1954_v54 = vadd.f32 %v1953_v50, %v1941_v51 }
 0x5a8   : > { %v4240_v35 = vadd.f32 %v3517_v15, %v1954_v54  ;;  %v2025_v54 = vperm.slane %v2022_v47, 1 }
 0x5aa   : > { %v1966_v53 = vpop.f32.mrf.mxu2  ;;  %v1979_v36 = vpop.f32.mrf.mxu3  ;;  %v1985_v2 = vsel %vm627_vm0, %v4240_v35, 0.0 }
 0x5ab   : > { %v1967_v56 = vadd.f32 %v1966_v53, %v1768_v52  ;;  %v1942_v59 = vpop.f32.mrf.mxu0  ;;  %v1955_v55 = vpop.f32.mrf.mxu1  ;;  %v2024_v52 = vperm.slane %v2022_v47, 0 }
 0x5ad   : > { %v1980_v60 = vadd.f32 %v1979_v36, %v1967_v56 }
 0x5af   : > { %v4243_v63 = vadd.f32 %v3518_v61, %v1980_v60  ;;  %v3171_v60 = vld [vmem:[#allocation18 + $0x60] sm:$0xf]  ;;  %v3346_v61 = vld [vmem:[#allocation18 + $0x64] sm:$0xf0] }
 0x5b1   : > { %v1986_v3 = vsel %vm627_vm0, %v4243_v63, 0.0 }
 0x5b2   : > { %v1968_v4 = vpop.f32.mrf.mxu2  ;;  %v1981_v5 = vpop.f32.mrf.mxu3  ;;  %v1987_v7 = vadd.f32 %v1986_v3, %v1985_v2  ;;  %v3345_v2 = vld [vmem:[#allocation18 + $0x64] sm:$0xf]  ;;  %v3172_v3 = vor.u32 %v3346_v61, %v3171_v60 }
 0x5b3   : > { %v3173_v4 = vld [vmem:[#allocation18 + $0x68] sm:$0xf0] }
 0x5b4   : > { %1988 = vadd.xlane.f32.xlu1 %v1987_v7  ;;  %v3176_v5 = vor.u32 %v3345_v2, %v3173_v4  ;;  %2303 = vmatpush.bf16.msra.mxu2 %v3172_v3  ;;  %v3163_v7 = vld [vmem:[#allocation18 + $0x50] sm:$0xf] }
 0x5b6   : > { %2316 = vmatpush.bf16.msra.mxu3 %v3176_v5 }
 0x627   : > { %v1989_v10 = vpop.xlane.xlu1 %1988 }
 0x628   : > { %v1990_v11 = vmul.f32 %v1989_v10, %v4148_v19  ;;  %v3164_v10 = vor.u32 %v3344_v8, %v3163_v7 }
 0x62a   : > { %v4251_v12 = vsub.f32 %v4240_v35, %v1990_v11  ;;  %v1992_v13 = vsub.f32 %v4243_v63, %v1990_v11  ;;  %v3165_v11 = vld [vmem:[#allocation18 + $0x58] sm:$0xf0]  ;;  %2304 = vmatpush.bf16.msra.mxu2 %v3164_v10 }
 0x62c   : > { %v1993_v62 = vmul.f32 %v4251_v12, %v4251_v12  ;;  %v1994_v14 = vmul.f32 %v1992_v13, %v1992_v13 }
 0x62e   : > { %v1995_v17 = vsel %vm627_vm0, %v1993_v62, 0.0  ;;  %v1996_v18 = vsel %vm627_vm0, %v1994_v14, 0.0  ;;  %v3342_v62 = vld [vmem:[#allocation18 + $0x44] sm:$0xf0]  ;;  %v3341_v14 = vld [vmem:[#allocation18 + $0x44] sm:$0xf] }
 0x62f   : > { %v1997_v20 = vadd.f32 %v1996_v18, %v1995_v17  ;;  %v3157_v18 = vld [vmem:[#allocation18 + $0x48] sm:$0xf0] }
 0x631   : > { %1998 = vadd.xlane.f32.xlu0 %v1997_v20  ;;  %v3160_v20 = vor.u32 %v3341_v14, %v3157_v18 }
 0x6a4   : > { %v1999_v39 = vpop.xlane.xlu0 %1998 }
 0x6a5   : > { %v2000_v57 = vmul.f32 %v1999_v39, %v4148_v19  ;;  %v3136_v39 = vor.u32 %v3335_v33, %v3133_v34 }
 0x6a7   : > { %v2001_v0 = vadd.f32 1e-05, %v2000_v57  ;;  %v3333_v57 = vld [vmem:[#allocation18 + $0x4] sm:$0xf] }
 0x6a9   : > { %3513 = vrsqrt.f32 %v2001_v0  ;;  %vm2008_vm5 = vweird.f32 %v2001_v0 }
 0x6af   : > { %v3514_v58 = vpop.eup %3513 }
 0x6b0   : > { %v2003_v1 = vmul.f32 %v3514_v58, %v2001_v0  ;;  %vm2009_vm0 = vweird.f32 %v3514_v58  ;;  %v3124_v0 = vor.u32 %v3334_v41, %v3123_v40 }
 0x6b1   : > { %vm2010_vm12 = vmor %vm2008_vm5, %vm2009_vm0 }
 0x6b2   : > { %v2004_v42 = vmul.f32 %v3514_v58, %v2003_v1  ;;  %v3492_v1 = vld [vmem:[#allocation16] ss:$0 sm:$0xff] }
 0x6b4   : > { %v2005_v43 = vmul.f32 0.5, %v2004_v42 }
 0x6b6   : > { %v2006_v44 = vsub.f32 1.5, %v2005_v43 }
 0x6b8   : > { %v2007_v46 = vmul.f32 %v3514_v58, %v2006_v44 }
 0x6ba   : > { %v2011_v50 = vsel %vm2010_vm12, %v3514_v58, %v2007_v46  ;;  %v3128_v58 = vor.u32 %v3333_v57, %v3125_v37 }
 0x6bb   : > { %v2012_v19 = vmul.f32 %v2011_v50, %v4251_v12  ;;  %v2013_v51 = vmul.f32 %v2011_v50, %v1992_v13  ;;  %v3168_v12 = vor.u32 %v3343_v9, %v3165_v11  ;;  %v3155_v13 = vld [vmem:[#allocation18 + $0x40] sm:$0xf] }
 0x6bc   : > { %v3156_v17 = vor.u32 %v3342_v62, %v3155_v13 }
 0x6bd   : > { %v2020_v53 = vmul.f32 %v2016_v48, %v2012_v19  ;;  %v2021_v36 = vmul.f32 %v2017_v49, %v2013_v51  ;;  %2317 = vmatpush.bf16.msra.mxu3 %v3168_v12 }
 0x6be   : > { %2305 = vmatpush.bf16.msra.mxu2 %v3156_v17 }
 0x6bf   : > { %v2028_v56 = vadd.f32 %v2024_v52, %v2020_v53  ;;  %v2029_v59 = vadd.f32 %v2025_v54, %v2021_v36 }
 0x6c1   : > { %v2030_v55 = vpack.c.bf16 %v2028_v56, %v2028_v56  ;;  %v2031_v15 = vpack.c.bf16 %v2029_v59, %v2029_v59  ;;  %2318 = vmatpush.bf16.msra.mxu3 %v3160_v20  ;;  %v2216_v59 = vld [vmem:[#allocation19] sm:$0x3] }
 0x6c2   : > { %2306 = vmatpush.bf16.msra.mxu2 %v3148_v24 }
 0x6c3   : > { %2172 = vmatmul.bf16.vlgmr.msra.gmra.mxu0 %v2030_v55  ;;  %2185 = vmatmul.bf16.vlgmr.msra.gmra.mxu1 %v2031_v15  ;;  %v2218_v55 = vperm.slane %v2216_v59, 0  ;;  %v2219_v15 = vperm.slane %v2216_v59, 1 }
 0x6c5   : > { %2319 = vmatpush.bf16.msra.mxu3 %v3152_v28 }
 0x6c6   : > { %2307 = vmatpush.bf16.msra.mxu2 %v3140_v16 }
 0x6c9   : > { %2320 = vmatpush.bf16.msra.mxu3 %v3144_v31 }
 0x6ca   : > { %2308 = vmatpush.bf16.msra.mxu2 %v3132_v38 }
 0x6cd   : > { %2321 = vmatpush.bf16.msra.mxu3 %v3136_v39 }
 0x6ce   : > { %2309 = vmatpush.bf16.msra.mxu2 %v3124_v0 }
 0x6d1   : > { %2322 = vmatpush.bf16.msra.mxu3 %v3128_v58 }
 0x740   : > { %v2173_v42 = vpop.f32.mrf.mxu0  ;;  %v2186_v43 = vpop.f32.mrf.mxu1 }
 0x741   : > { %v2174_v44 = vadd.f32 %v3492_v1, %v2173_v42 }
 0x743   : > { %v2187_v45 = vadd.f32 %v2186_v43, %v2174_v44 }
 0x745   : > { %v2191_v46 = vmul.f32 0.044715, %v2187_v45  ;;  %v2190_v54 = vmul.f32 0.5, %v2187_v45 }
 0x747   : > { %v2192_v47 = vmul.f32 %v2191_v46, %v2187_v45 }
 0x748   : > { %v2175_v48 = vpop.f32.mrf.mxu0  ;;  %v2188_v49 = vpop.f32.mrf.mxu1 }
 0x749   : > { %v2193_v50 = vmul.f32 %v2192_v47, %v2187_v45 }
 0x74b   : > { %v2194_v19 = vadd.f32 %v2193_v50, %v2187_v45 }
 0x74d   : > { %v2195_v51 = vmul.f32 0.7978846, %v2194_v19 }
 0x74f   : > { %3515 = vtanh.f32 %v2195_v51 }
 0x755   : > { %v3516_v52 = vpop.eup %3515 }
 0x756   : > { %v2197_v53 = vadd.f32 1.0, %v3516_v52 }
 0x758   : > { %v2198_v36 = vmul.f32 %v2197_v53, %v2190_v54 }
 0x75a   : > { %v2199_v56 = vpack.c.bf16 %v2198_v36, %v2198_v36 }
 0x75c   : > { %2310 = vmatmul.bf16.vlgmr.msra.gmra.mxu2 %v2199_v56  ;;  %2323 = vmatmul.bf16.vlgmr.msra.gmra.mxu3 %v2199_v56 }
 0x7df   : > { %v2311_v60 = vpop.f32.mrf.mxu2  ;;  %v2324_v61 = vpop.f32.mrf.mxu3 }
 0x7e0   : > { %v2312_v2 = vadd.f32 %v2311_v60, %v2218_v55  ;;  %v2325_v3 = vadd.f32 %v2324_v61, %v2219_v15 }
 0x7e2   : > { %v2328_v4 = vadd.f32 %v2312_v2, %v4240_v35  ;;  %v2329_v5 = vadd.f32 %v2325_v3, %v4243_v63 }
 0x7e4   : > { %2330 = vst [vmem:[%s623_s24] sm:$0x1f] %v2328_v4 }
 0x7e5   : > { %2331 = vst [vmem:[%s623_s24 + $0x8] sm:$0x1f] %v2329_v5 }
 0x7e7   : > { %v2313_v7 = vpop.f32.mrf.mxu2  ;;  %v2326_v8 = vpop.f32.mrf.mxu3 }
 0x7e8 PF: > { %s30_s25 = sadd.s32 1, %s3913_s25  }
 0x7e9   : > { %p27_p7 = scmp.ge.s32.totalorder %s30_s25, 4  }
 0x7eb   :  { %29 = sbr.rel (!%p27_p7) target bundleno = 12 (0xc), region = 151 }
 0x7f0   :  { %2353 = vsyncpa [#allocation3], 1 }
 0x7f1   :  { %2355 = vsyncpa [#allocation3 + $0x1], 1 }
 0x7f2   :  { %2356 = vsyncpa [#allocation5], 1 }
 0x7f3   :  { %2357 = vsyncpa [#allocation8], 1 }
 0x7f4   :  { %2358 = vsyncpa [#allocation11], 1 }
 0x7f5   :  { %2359 = vsyncpa [#allocation14], 1 }
 0x7f6   :  { %2360 = vsyncpa [#allocation17], 1 }
 0x7f7   :  { %2361 = vsyncpa [#allocation20], 1 }

// kernel: vit_forward.11
= control target key start
LH: loop header
LB: loop body
LE: loop exit
PB: predicated region body
PF: predicated region fallthrough
CT: control target
= control target key end

     0   :  { %s1176_s12 = smov 0   ;;  %s1178_s13 = smov 0   ;;  %s1414_s0 = inlined_call_operand.vmem [shape: bf16[32,128], index: 0, kind: input, shape index: {}]   ;;  %s1415_s1 = inlined_call_operand.vmem [shape: bf16[128,2048], index: 1, kind: input, shape index: {}]   ;;  %s1416_s2 = inlined_call_operand.vmem [shape: f32[1,2048], index: 2, kind: input, shape index: {}]   ;;  %s1417_s3 = inlined_call_operand.vmem [shape: bf16[32,2048], index: 3, kind: output, shape index: {}]  }
   0x1   :  { %s1180_s14 = smov 0   ;;  %s1182_s15 = smov 0  }
   0x2   :  { %s1184_s16 = smov 0  }
   0x3 LB: > { %s28_s17 = sadd.s32 1, %s1150_s15  ;;  %s887_s18 = sadd.s32 4294967295, %s1154_s16   ;;  %s1154_s16 = sphi %s1184_s16, %s13_s16   ;;  %s1150_s15 = sphi %s1182_s15, %s1422_s15   ;;  %s1146_s14 = sphi %s1180_s14, %s1421_s14   ;;  %s1142_s13 = sphi %s1178_s13, %s1420_s13   ;;  %s1138_s12 = sphi %s1176_s12, %s1419_s12  }
   0x4   : > { %p30_p0 = scmp.ge.s32.totalorder %s28_s17, 4  ;;  %p76_p1 = scmp.ne.s32.totalorder %s1142_s13, %s1138_s12 }
   0x5   : > { %p77_p2 = scmp.eq.s32.totalorder %s1154_s16, 0  ;;  %p134_p4 = scmp.eq.s32.totalorder %s887_s18, 3 }
   0x6   : > { %s1424_s17 = smov (%p30_p0, %s28_s17), 0  ;;  %s69_s20 = sadd.s32 1, %s1142_s13 }
   0x7   : > { %p78_p3 = por %p77_p2, %p76_p1  ;;  %s65_s19 = ssub.s32 %s1150_s15, %s1424_s17 }
   0x8   : > { %p67_p5 = scmp.eq.s32.totalorder %s65_s19, 0  ;;  %p1211_p6 = por %p134_p4, %p76_p1 }
   0x9   : > { %p891_p7 = scmp.ge.s32.totalorder %s1154_s16, 4 }
   0xa   : > { %s1216_s22 = scalar_select %p67_p5, %s1142_s13, %s69_s20  }
   0xb   : > { %168 = sbr.rel (%p891_p7) target bundleno = 52 (0x34), region = 20 }
  0x10   : > { %171 = sbr.rel (!%p78_p3) target bundleno = 52 (0x34), region = 24  ;;  %s173_s23 = sand.u32 (%p78_p3), 1, %s1142_s13  }
  0x11   : > { %s1040_s24 = sshll.u32 (%p78_p3), %s1150_s15, 4  ;;  %s892_s25 = sshll.u32 (%p78_p3), %s173_s23, 8 }
  0x12   : > { %s1224_s28 = scalar_lea.vmem (%p78_p3), %s1415_s1, %s1040_s24  ;;  %s1229_s29 = scalar_lea.vmem (%p78_p3), [#allocation3], %s892_s25 }
  0x13   : > { %v194_v0 = vld [vmem:[%s1224_s28] sm:$0xff] (%p78_p3)  ;;  %v196_v1 = vld [vmem:[%s1224_s28 + $0x8] sm:$0xff] (%p78_p3) }
  0x14   : > { %v198_v2 = vld [vmem:[%s1224_s28 + $0x40] sm:$0xff] (%p78_p3)  ;;  %195 = vst [vmem:[%s1229_s29] sm:$0xff] (%p78_p3), %v194_v0  ;;  %v200_v3 = vld [vmem:[%s1224_s28 + $0x48] sm:$0xff] (%p78_p3) }
  0x15   : > { %197 = vst [vmem:[%s1229_s29 + $0x8] sm:$0xff] %v196_v1  ;;  %v202_v4 = vld [vmem:[%s1224_s28 + $0x80] sm:$0xff]  ;;  %v204_v5 = vld [vmem:[%s1224_s28 + $0x88] sm:$0xff] }
  0x16   : > { %199 = vst [vmem:[%s1229_s29 + $0x10] sm:$0xff] %v198_v2  ;;  %v206_v6 = vld [vmem:[%s1224_s28 + $0xc0] sm:$0xff]  ;;  %v208_v7 = vld [vmem:[%s1224_s28 + $0xc8] sm:$0xff] }
  0x17   : > { %201 = vst [vmem:[%s1229_s29 + $0x18] sm:$0xff] %v200_v3  ;;  %v210_v8 = vld [vmem:[%s1224_s28 + $0x100] sm:$0xff]  ;;  %v212_v9 = vld [vmem:[%s1224_s28 + $0x108] sm:$0xff] }
  0x18   : > { %203 = vst [vmem:[%s1229_s29 + $0x20] sm:$0xff] %v202_v4  ;;  %v214_v10 = vld [vmem:[%s1224_s28 + $0x140] sm:$0xff]  ;;  %v216_v11 = vld [vmem:[%s1224_s28 + $0x148] sm:$0xff] }
  0x19   : > { %205 = vst [vmem:[%s1229_s29 + $0x28] sm:$0xff] %v204_v5  ;;  %v218_v12 = vld [vmem:[%s1224_s28 + $0x180] sm:$0xff]  ;;  %v220_v13 = vld [vmem:[%s1224_s28 + $0x188] sm:$0xff] }
  0x1a   : > { %207 = vst [vmem:[%s1229_s29 + $0x30] sm:$0xff] %v206_v6  ;;  %v222_v14 = vld [vmem:[%s1224_s28 + $0x1c0] sm:$0xff]  ;;  %v224_v15 = vld [vmem:[%s1224_s28 + $0x1c8] sm:$0xff] }
  0x1b   : > { %209 = vst [vmem:[%s1229_s29 + $0x38] sm:$0xff] %v208_v7  ;;  %v226_v16 = vld [vmem:[%s1224_s28 + $0x200] sm:$0xff]  ;;  %v228_v17 = vld [vmem:[%s1224_s28 + $0x208] sm:$0xff] }
  0x1c   : > { %211 = vst [vmem:[%s1229_s29 + $0x40] sm:$0xff] %v210_v8  ;;  %v230_v18 = vld [vmem:[%s1224_s28 + $0x240] sm:$0xff]  ;;  %v232_v19 = vld [vmem:[%s1224_s28 + $0x248] sm:$0xff] }
  0x1d   : > { %213 = vst [vmem:[%s1229_s29 + $0x48] sm:$0xff] %v212_v9  ;;  %v234_v20 = vld [vmem:[%s1224_s28 + $0x280] sm:$0xff]  ;;  %v236_v21 = vld [vmem:[%s1224_s28 + $0x288] sm:$0xff] }
  0x1e   : > { %215 = vst [vmem:[%s1229_s29 + $0x50] sm:$0xff] %v214_v10  ;;  %v238_v22 = vld [vmem:[%s1224_s28 + $0x2c0] sm:$0xff]  ;;  %v240_v23 = vld [vmem:[%s1224_s28 + $0x2c8] sm:$0xff] }
  0x1f   : > { %217 = vst [vmem:[%s1229_s29 + $0x58] sm:$0xff] %v216_v11  ;;  %v242_v24 = vld [vmem:[%s1224_s28 + $0x300] sm:$0xff]  ;;  %v244_v25 = vld [vmem:[%s1224_s28 + $0x308] sm:$0xff] }
  0x20   : > { %219 = vst [vmem:[%s1229_s29 + $0x60] sm:$0xff] %v218_v12  ;;  %v246_v26 = vld [vmem:[%s1224_s28 + $0x340] sm:$0xff]  ;;  %v248_v27 = vld [vmem:[%s1224_s28 + $0x348] sm:$0xff] }
  0x21   : > { %221 = vst [vmem:[%s1229_s29 + $0x68] sm:$0xff] %v220_v13  ;;  %v250_v28 = vld [vmem:[%s1224_s28 + $0x380] sm:$0xff]  ;;  %v252_v29 = vld [vmem:[%s1224_s28 + $0x388] sm:$0xff] }
  0x22   : > { %223 = vst [vmem:[%s1229_s29 + $0x70] sm:$0xff] %v222_v14  ;;  %v254_v30 = vld [vmem:[%s1224_s28 + $0x3c0] sm:$0xff]  ;;  %v256_v31 = vld [vmem:[%s1224_s28 + $0x3c8] sm:$0xff] }
  0x23   : > { %225 = vst [vmem:[%s1229_s29 + $0x78] sm:$0xff] %v224_v15 }
  0x24   : > { %227 = vst [vmem:[%s1229_s29 + $0x80] sm:$0xff] %v226_v16 }
  0x25   : > { %229 = vst [vmem:[%s1229_s29 + $0x88] sm:$0xff] %v228_v17 }
  0x26   : > { %231 = vst [vmem:[%s1229_s29 + $0x90] sm:$0xff] %v230_v18 }
  0x27   : > { %233 = vst [vmem:[%s1229_s29 + $0x98] sm:$0xff] %v232_v19 }
  0x28   : > { %235 = vst [vmem:[%s1229_s29 + $0xa0] sm:$0xff] %v234_v20 }
  0x29   : > { %237 = vst [vmem:[%s1229_s29 + $0xa8] sm:$0xff] %v236_v21 }
  0x2a   : > { %239 = vst [vmem:[%s1229_s29 + $0xb0] sm:$0xff] %v238_v22 }
  0x2b   : > { %241 = vst [vmem:[%s1229_s29 + $0xb8] sm:$0xff] %v240_v23 }
  0x2c   : > { %243 = vst [vmem:[%s1229_s29 + $0xc0] sm:$0xff] %v242_v24 }
  0x2d   : > { %245 = vst [vmem:[%s1229_s29 + $0xc8] sm:$0xff] %v244_v25 }
  0x2e   : > { %247 = vst [vmem:[%s1229_s29 + $0xd0] sm:$0xff] %v246_v26 }
  0x2f   : > { %249 = vst [vmem:[%s1229_s29 + $0xd8] sm:$0xff] %v248_v27 }
  0x30   : > { %251 = vst [vmem:[%s1229_s29 + $0xe0] sm:$0xff] %v250_v28 }
  0x31   : > { %253 = vst [vmem:[%s1229_s29 + $0xe8] sm:$0xff] %v252_v29 }
  0x32   : > { %255 = vst [vmem:[%s1229_s29 + $0xf0] sm:$0xff] %v254_v30 }
  0x33   : > { %257 = vst [vmem:[%s1229_s29 + $0xf8] sm:$0xff] %v256_v31 }
  0x34 PF: > { %p895_p8 = scmp.ge.s32.totalorder %s1154_s16, 1  ;;  %p270_p9 = scmp.lt.s32.totalorder %s1154_s16, 5 }
  0x36   : > { %p271_p10 = pnand %p895_p8, %p270_p9 }
  0x37   : > { %s277_s30 = sand.u32 (!%p271_p10), 1, %s1138_s12   ;;  %s898_s10 = sshll.u32 (!%p271_p10), %s1146_s14, 2 }
  0x38   : > { %274 = sbr.rel (%p271_p10) target bundleno = 266 (0x10a), region = 51  ;;  %s896_s4 = sshll.u32 (!%p271_p10), %s277_s30, 8 }
  0x39   : > { %s1297_s5 = scalar_lea.vmem (!%p271_p10), [#allocation3], %s896_s4  ;;  %p323_p11 = scmp.lt.s32.totalorder (!%p271_p10), %s898_s10, 15 }
  0x3a   : > { %s897_s20 = sshll.u32 (!%p271_p10), %s277_s30, 6 }
  0x3b   : > { %s1375_s23 = scalar_lea.vmem (!%p271_p10), [#allocation4], %s897_s20 }
  0x3d   : > { %v1021_v32 = vld [vmem:[%s1297_s5 + $0xe0] sm:$0xf]  ;;  %v1073_v33 = vld [vmem:[%s1297_s5 + $0xec] sm:$0xf0]  ;;  %v1071_v34 = vld [vmem:[%s1297_s5 + $0xe4] sm:$0xf] }
  0x3e   : > { %v1022_v35 = vor.u32 %v1073_v33, %v1021_v32  ;;  %v1023_v36 = vld [vmem:[%s1297_s5 + $0xf0] sm:$0xf0]  ;;  %v1029_v37 = vld [vmem:[%s1297_s5 + $0xe8] sm:$0xf]  ;;  %v1074_v38 = vld [vmem:[%s1297_s5 + $0xf4] sm:$0xf0] }
  0x3f   : > { %v1026_v39 = vor.u32 %v1071_v34, %v1023_v36  ;;  %v1030_v40 = vor.u32 %v1074_v38, %v1029_v37  ;;  %v1072_v41 = vld [vmem:[%s1297_s5 + $0xec] sm:$0xf]  ;;  %v1031_v42 = vld [vmem:[%s1297_s5 + $0xf8] sm:$0xf0]  ;;  %v1005_v43 = vld [vmem:[%s1297_s5 + $0xc0] sm:$0xf] }
  0x40   : > { %573 = vmatpush.bf16.msra.mxu0 %v1022_v35  ;;  %v1034_v44 = vor.u32 %v1072_v41, %v1031_v42  ;;  %v1069_v45 = vld [vmem:[%s1297_s5 + $0xcc] sm:$0xf0]  ;;  %v1067_v46 = vld [vmem:[%s1297_s5 + $0xc4] sm:$0xf]  ;;  %v1007_v47 = vld [vmem:[%s1297_s5 + $0xd0] sm:$0xf0] }
  0x41   : > { %592 = vmatpush.bf16.msra.mxu1 %v1026_v39  ;;  %611 = vmatpush.bf16.msra.mxu2 %v1030_v40  ;;  %v1006_v48 = vor.u32 %v1069_v45, %v1005_v43  ;;  %v1010_v49 = vor.u32 %v1067_v46, %v1007_v47  ;;  %v1013_v50 = vld [vmem:[%s1297_s5 + $0xc8] sm:$0xf]  ;;  %v1070_v51 = vld [vmem:[%s1297_s5 + $0xd4] sm:$0xf0]  ;;  %v1068_v52 = vld [vmem:[%s1297_s5 + $0xcc] sm:$0xf] }
  0x42   : > { %630 = vmatpush.bf16.msra.mxu3 %v1034_v44  ;;  %v1014_v53 = vor.u32 %v1070_v51, %v1013_v50  ;;  %v1015_v54 = vld [vmem:[%s1297_s5 + $0xd8] sm:$0xf0]  ;;  %v989_v55 = vld [vmem:[%s1297_s5 + $0xa0] sm:$0xf]  ;;  %v1065_v56 = vld [vmem:[%s1297_s5 + $0xac] sm:$0xf0] }
  0x43   : > { %v1018_v57 = vor.u32 %v1068_v52, %v1015_v54  ;;  %v1063_v58 = vld [vmem:[%s1297_s5 + $0xa4] sm:$0xf]  ;;  %v991_v59 = vld [vmem:[%s1297_s5 + $0xb0] sm:$0xf0]  ;;  %v997_v60 = vld [vmem:[%s1297_s5 + $0xa8] sm:$0xf]  ;;  %v990_v61 = vor.u32 %v1065_v56, %v989_v55 }
  0x44   : > { %574 = vmatpush.bf16.msra.mxu0 %v1006_v48  ;;  %v1066_v62 = vld [vmem:[%s1297_s5 + $0xb4] sm:$0xf0]  ;;  %v1064_v63 = vld [vmem:[%s1297_s5 + $0xac] sm:$0xf]  ;;  %v999_v0 = vld [vmem:[%s1297_s5 + $0xb8] sm:$0xf0]  ;;  %v994_v1 = vor.u32 %v1063_v58, %v991_v59 }
  0x45   : > { %593 = vmatpush.bf16.msra.mxu1 %v1010_v49  ;;  %612 = vmatpush.bf16.msra.mxu2 %v1014_v53  ;;  %v998_v2 = vor.u32 %v1066_v62, %v997_v60  ;;  %v973_v3 = vld [vmem:[%s1297_s5 + $0x80] sm:$0xf]  ;;  %v1061_v4 = vld [vmem:[%s1297_s5 + $0x8c] sm:$0xf0]  ;;  %v1059_v5 = vld [vmem:[%s1297_s5 + $0x84] sm:$0xf]  ;;  %v1002_v6 = vor.u32 %v1064_v63, %v999_v0 }
  0x46   : > { %631 = vmatpush.bf16.msra.mxu3 %v1018_v57  ;;  %v975_v7 = vld [vmem:[%s1297_s5 + $0x90] sm:$0xf0]  ;;  %v981_v8 = vld [vmem:[%s1297_s5 + $0x88] sm:$0xf]  ;;  %v1062_v9 = vld [vmem:[%s1297_s5 + $0x94] sm:$0xf0]  ;;  %v974_v12 = vor.u32 %v1061_v4, %v973_v3 }
  0x47   : > { %v1060_v10 = vld [vmem:[%s1297_s5 + $0x8c] sm:$0xf]  ;;  %v983_v11 = vld [vmem:[%s1297_s5 + $0x98] sm:$0xf0]  ;;  %v978_v13 = vor.u32 %v1059_v5, %v975_v7  ;;  %v982_v14 = vor.u32 %v1062_v9, %v981_v8  ;;  %v957_v15 = vld [vmem:[%s1297_s5 + $0x60] sm:$0xf] }
  0x48   : > { %575 = vmatpush.bf16.msra.mxu0 %v990_v61  ;;  %v1057_v16 = vld [vmem:[%s1297_s5 + $0x6c] sm:$0xf0]  ;;  %v1055_v17 = vld [vmem:[%s1297_s5 + $0x64] sm:$0xf]  ;;  %v986_v18 = vor.u32 %v1060_v10, %v983_v11  ;;  %v959_v19 = vld [vmem:[%s1297_s5 + $0x70] sm:$0xf0] }
  0x49   : > { %594 = vmatpush.bf16.msra.mxu1 %v994_v1  ;;  %613 = vmatpush.bf16.msra.mxu2 %v998_v2  ;;  %v965_v20 = vld [vmem:[%s1297_s5 + $0x68] sm:$0xf]  ;;  %v1058_v21 = vld [vmem:[%s1297_s5 + $0x74] sm:$0xf0]  ;;  %v1056_v22 = vld [vmem:[%s1297_s5 + $0x6c] sm:$0xf]  ;;  %v958_v24 = vor.u32 %v1057_v16, %v957_v15  ;;  %v962_v25 = vor.u32 %v1055_v17, %v959_v19 }
  0x4a   : > { %632 = vmatpush.bf16.msra.mxu3 %v1002_v6  ;;  %v967_v23 = vld [vmem:[%s1297_s5 + $0x78] sm:$0xf0]  ;;  %v966_v26 = vor.u32 %v1058_v21, %v965_v20  ;;  %v941_v27 = vld [vmem:[%s1297_s5 + $0x40] sm:$0xf]  ;;  %v1053_v28 = vld [vmem:[%s1297_s5 + $0x4c] sm:$0xf0] }
  0x4b   : > { %v1051_v29 = vld [vmem:[%s1297_s5 + $0x44] sm:$0xf]  ;;  %v970_v30 = vor.u32 %v1056_v22, %v967_v23  ;;  %v943_v31 = vld [vmem:[%s1297_s5 + $0x50] sm:$0xf0]  ;;  %v949_v32 = vld [vmem:[%s1297_s5 + $0x48] sm:$0xf]  ;;  %v942_v36 = vor.u32 %v1053_v28, %v941_v27 }
  0x4c   : > { %576 = vmatpush.bf16.msra.mxu0 %v974_v12  ;;  %v1054_v33 = vld [vmem:[%s1297_s5 + $0x54] sm:$0xf0]  ;;  %v1052_v34 = vld [vmem:[%s1297_s5 + $0x4c] sm:$0xf]  ;;  %v951_v35 = vld [vmem:[%s1297_s5 + $0x58] sm:$0xf0]  ;;  %v946_v37 = vor.u32 %v1051_v29, %v943_v31 }
  0x4d   : > { %595 = vmatpush.bf16.msra.mxu1 %v978_v13  ;;  %614 = vmatpush.bf16.msra.mxu2 %v982_v14  ;;  %v950_v38 = vor.u32 %v1054_v33, %v949_v32  ;;  %v925_v39 = vld [vmem:[%s1297_s5 + $0x20] sm:$0xf]  ;;  %v1049_v40 = vld [vmem:[%s1297_s5 + $0x2c] sm:$0xf0]  ;;  %v1047_v41 = vld [vmem:[%s1297_s5 + $0x24] sm:$0xf]  ;;  %v954_v42 = vor.u32 %v1052_v34, %v951_v35 }
  0x4e   : > { %633 = vmatpush.bf16.msra.mxu3 %v986_v18  ;;  %v927_v43 = vld [vmem:[%s1297_s5 + $0x30] sm:$0xf0]  ;;  %v933_v44 = vld [vmem:[%s1297_s5 + $0x28] sm:$0xf]  ;;  %v1050_v45 = vld [vmem:[%s1297_s5 + $0x34] sm:$0xf0]  ;;  %v926_v48 = vor.u32 %v1049_v40, %v925_v39 }
  0x4f   : > { %v1048_v46 = vld [vmem:[%s1297_s5 + $0x2c] sm:$0xf]  ;;  %v935_v47 = vld [vmem:[%s1297_s5 + $0x38] sm:$0xf0]  ;;  %v930_v49 = vor.u32 %v1047_v41, %v927_v43  ;;  %v934_v50 = vor.u32 %v1050_v45, %v933_v44  ;;  %v909_v51 = vld [vmem:[%s1297_s5] sm:$0xf] }
  0x50   : > { %577 = vmatpush.bf16.msra.mxu0 %v958_v24  ;;  %v1045_v52 = vld [vmem:[%s1297_s5 + $0xc] sm:$0xf0]  ;;  %v1043_v53 = vld [vmem:[%s1297_s5 + $0x4] sm:$0xf]  ;;  %v938_v54 = vor.u32 %v1048_v46, %v935_v47  ;;  %v911_v55 = vld [vmem:[%s1297_s5 + $0x10] sm:$0xf0] }
  0x51   : > { %596 = vmatpush.bf16.msra.mxu1 %v962_v25  ;;  %615 = vmatpush.bf16.msra.mxu2 %v966_v26  ;;  %v917_v56 = vld [vmem:[%s1297_s5 + $0x8] sm:$0xf]  ;;  %v1046_v57 = vld [vmem:[%s1297_s5 + $0x14] sm:$0xf0]  ;;  %v1044_v58 = vld [vmem:[%s1297_s5 + $0xc] sm:$0xf]  ;;  %v910_v60 = vor.u32 %v1045_v52, %v909_v51  ;;  %v914_v61 = vor.u32 %v1043_v53, %v911_v55 }
  0x52   : > { %634 = vmatpush.bf16.msra.mxu3 %v970_v30  ;;  %v919_v59 = vld [vmem:[%s1297_s5 + $0x18] sm:$0xf0]  ;;  %v918_v62 = vor.u32 %v1046_v57, %v917_v56  ;;  %v1041_v0 = vld [vmem:[%s1414_s0] sm:$0xff]  ;;  %v1042_v1 = vld [vmem:[%s1414_s0 + $0x8] sm:$0xff]  ;;  %s1426_s10 = smov (!%p323_p11, %s898_s10), 15  ;;  %s1075_s12 = sshll.u32 (%p1211_p6), %s1146_s14, 4 }
  0x53   : > { %v922_v63 = vor.u32 %v1044_v58, %v919_v59  ;;  %s325_s19 = scalar_lea.vmem %s1416_s2, %s1426_s10  ;;  %s754_s26 = scalar_lea.vmem (%p1211_p6), %s1417_s3, %s1075_s12 }
  0x54   : > { %578 = vmatpush.bf16.msra.mxu0 %v942_v36  ;;  %v700_v2 = vld [vmem:[%s325_s19] sm:$0xf] }
  0x55   : > { %597 = vmatpush.bf16.msra.mxu1 %v946_v37  ;;  %616 = vmatpush.bf16.msra.mxu2 %v950_v38  ;;  %v702_v3 = vperm.slane %v700_v2, 0  ;;  %v703_v4 = vperm.slane %v700_v2, 1  ;;  %v704_v10 = vperm.slane %v700_v2, 2  ;;  %v705_v11 = vperm.slane %v700_v2, 3 }
  0x56   : > { %635 = vmatpush.bf16.msra.mxu3 %v954_v42 }
  0x58   : > { %579 = vmatpush.bf16.msra.mxu0 %v926_v48 }
  0x59   : > { %598 = vmatpush.bf16.msra.mxu1 %v930_v49  ;;  %617 = vmatpush.bf16.msra.mxu2 %v934_v50 }
  0x5a   : > { %636 = vmatpush.bf16.msra.mxu3 %v938_v54 }
  0x5c   : > { %580 = vmatpush.bf16.msra.mxu0 %v910_v60 }
  0x5d   : > { %599 = vmatpush.bf16.msra.mxu1 %v914_v61  ;;  %618 = vmatpush.bf16.msra.mxu2 %v918_v62 }
  0x5e   : > { %637 = vmatpush.bf16.msra.mxu3 %v922_v63 }
  0x5f   : > { %581 = vmatmul.bf16.vlgmr.msra.gmra.mxu0 %v1041_v0 }
  0x60   : > { %600 = vmatmul.bf16.vlgmr.msra.gmra.mxu1 %v1041_v0  ;;  %619 = vmatmul.bf16.vlgmr.msra.gmra.mxu2 %v1041_v0 }
  0x61   : > { %638 = vmatmul.bf16.vlgmr.msra.gmra.mxu3 %v1041_v0 }
  0x6f   : > { %586 = vmatmul.bf16.gmra.mxu0 %v1042_v1 }
  0x70   : > { %605 = vmatmul.bf16.gmra.mxu1 %v1042_v1  ;;  %624 = vmatmul.bf16.gmra.mxu2 %v1042_v1 }
  0x71   : > { %643 = vmatmul.bf16.gmra.mxu3 %v1042_v1 }
  0xdc   : > { %v582_v5 = vpop.f32.mrf.mxu0 }
  0xdd   : > { %v710_v6 = vadd.f32 %v702_v3, %v582_v5  ;;  %v601_v7 = vpop.f32.mrf.mxu1 }
  0xde   : > { %v711_v8 = vadd.f32 %v703_v4, %v601_v7 }
  0xe0   : > { %v726_v9 = vpack.c.bf16 %v711_v8, %v710_v6 }
  0xe2   : > { %734 = vst [vmem:[%s1375_s23] sm:$0xff] %v726_v9 }
  0xe3   : > { %v620_v12 = vpop.f32.mrf.mxu2 }
  0xe4   : > { %v712_v13 = vadd.f32 %v704_v10, %v620_v12  ;;  %v639_v14 = vpop.f32.mrf.mxu3  ;;  %v584_v15 = vpop.f32.mrf.mxu0 }
  0xe5   : > { %v713_v16 = vadd.f32 %v705_v11, %v639_v14  ;;  %v714_v17 = vadd.f32 %v702_v3, %v584_v15  ;;  %v603_v18 = vpop.f32.mrf.mxu1 }
  0xe6   : > { %v715_v19 = vadd.f32 %v703_v4, %v603_v18 }
  0xe7   : > { %v727_v20 = vpack.c.bf16 %v713_v16, %v712_v13 }
  0xe8   : > { %v728_v21 = vpack.c.bf16 %v715_v19, %v714_v17 }
  0xe9   : > { %735 = vst [vmem:[%s1375_s23 + $0x8] sm:$0xff] %v727_v20  ;;  %v767_v47 = vld [vmem:[%s1375_s23] sm:$0xff] (%p1211_p6) }
  0xea   : > { %736 = vst [vmem:[%s1375_s23 + $0x10] sm:$0xff] %v728_v21 }
  0xeb   : > { %v622_v22 = vpop.f32.mrf.mxu2  ;;  %768 = vst [vmem:[%s754_s26] sm:$0xff] (%p1211_p6), %v767_v47 }
  0xec   : > { %v716_v23 = vadd.f32 %v704_v10, %v622_v22  ;;  %v641_v24 = vpop.f32.mrf.mxu3  ;;  %v587_v25 = vpop.f32.mrf.mxu0 }
  0xed   : > { %v717_v26 = vadd.f32 %v705_v11, %v641_v24  ;;  %v718_v27 = vadd.f32 %v702_v3, %v587_v25  ;;  %v606_v28 = vpop.f32.mrf.mxu1 }
  0xee   : > { %v719_v29 = vadd.f32 %v703_v4, %v606_v28 }
  0xef   : > { %v729_v30 = vpack.c.bf16 %v717_v26, %v716_v23 }
  0xf0   : > { %v730_v31 = vpack.c.bf16 %v719_v29, %v718_v27  ;;  %v769_v48 = vld [vmem:[%s1375_s23 + $0x8] sm:$0xff] (%p1211_p6) }
  0xf1   : > { %737 = vst [vmem:[%s1375_s23 + $0x18] sm:$0xff] %v729_v30  ;;  %v771_v49 = vld [vmem:[%s1375_s23 + $0x10] sm:$0xff] (%p1211_p6) }
  0xf2   : > { %738 = vst [vmem:[%s1375_s23 + $0x20] sm:$0xff] %v730_v31 }
  0xf3   : > { %v625_v32 = vpop.f32.mrf.mxu2  ;;  %770 = vst [vmem:[%s754_s26 + $0x8] sm:$0xff] (%p1211_p6), %v769_v48 }
  0xf4   : > { %v720_v33 = vadd.f32 %v704_v10, %v625_v32  ;;  %v644_v34 = vpop.f32.mrf.mxu3  ;;  %v589_v35 = vpop.f32.mrf.mxu0  ;;  %772 = vst [vmem:[%s754_s26 + $0x40] sm:$0xff] (%p1211_p6), %v771_v49 }
  0xf5   : > { %v721_v36 = vadd.f32 %v705_v11, %v644_v34  ;;  %v722_v37 = vadd.f32 %v702_v3, %v589_v35  ;;  %v608_v38 = vpop.f32.mrf.mxu1 }
  0xf6   : > { %v723_v39 = vadd.f32 %v703_v4, %v608_v38 }
  0xf7   : > { %v731_v40 = vpack.c.bf16 %v721_v36, %v720_v33 }
  0xf8   : > { %v732_v41 = vpack.c.bf16 %v723_v39, %v722_v37  ;;  %v773_v50 = vld [vmem:[%s1375_s23 + $0x18] sm:$0xff] (%p1211_p6) }
  0xf9   : > { %739 = vst [vmem:[%s1375_s23 + $0x28] sm:$0xff] %v731_v40  ;;  %v775_v51 = vld [vmem:[%s1375_s23 + $0x20] sm:$0xff] (%p1211_p6) }
  0xfa   : > { %740 = vst [vmem:[%s1375_s23 + $0x30] sm:$0xff] %v732_v41 }
  0xfb   : > { %v627_v42 = vpop.f32.mrf.mxu2  ;;  %774 = vst [vmem:[%s754_s26 + $0x48] sm:$0xff] (%p1211_p6), %v773_v50 }
  0xfc   : > { %v724_v43 = vadd.f32 %v704_v10, %v627_v42  ;;  %v646_v44 = vpop.f32.mrf.mxu3  ;;  %776 = vst [vmem:[%s754_s26 + $0x80] sm:$0xff] (%p1211_p6), %v775_v51 }
  0xfd   : > { %v725_v45 = vadd.f32 %v705_v11, %v646_v44  ;;  %748 = sbr.rel (!%p1211_p6) target bundleno = 266 (0x10a), region = 67 }
  0xff   : > { %v733_v46 = vpack.c.bf16 %v725_v45, %v724_v43 }
 0x100   : > { %v777_v52 = vld [vmem:[%s1375_s23 + $0x28] sm:$0xff] (%p1211_p6) }
 0x101   : > { %741 = vst [vmem:[%s1375_s23 + $0x38] sm:$0xff] %v733_v46  ;;  %v779_v53 = vld [vmem:[%s1375_s23 + $0x30] sm:$0xff] (%p1211_p6) }
 0x102   : > { %778 = vst [vmem:[%s754_s26 + $0x88] sm:$0xff] %v777_v52 }
 0x103   : > { %780 = vst [vmem:[%s754_s26 + $0xc0] sm:$0xff] %v779_v53 }
 0x108   : > { %v781_v54 = vld [vmem:[%s1375_s23 + $0x38] sm:$0xff] }
 0x109   : > { %782 = vst [vmem:[%s754_s26 + $0xc8] sm:$0xff] %v781_v54 }
 0x10a PF: > { %s13_s16 = sadd.s32 1, %s1154_s16   ;;  %s1419_s12 = smov %s1142_s13 }
 0x10b   : > { %p10_p12 = scmp.ge.s32.totalorder %s13_s16, 6   ;;  %s1420_s13 = smov %s1216_s22 }
 0x10c   : > { %s1421_s14 = smov %s1150_s15  ;;  %s1422_s15 = smov %s1424_s17 }
 0x10d   :  { %12 = sbr.rel (!%p10_p12) target bundleno = 3 (0x3), region = 127 }

// kernel: vit_forward.12
= control target key start
LH: loop header
LB: loop body
LE: loop exit
PB: predicated region body
PF: predicated region fallthrough
CT: control target
= control target key end

     0   :  { %s3446_s1 = inlined_call_operand.vmem [shape: bf16[128,512], index: 1, kind: input, shape index: {}]   ;;  %s3447_s0 = inlined_call_operand.vmem [shape: bf16[400,128], index: 0, kind: input, shape index: {}]   ;;  %s3448_s2 = inlined_call_operand.vmem [shape: f32[1,512], index: 2, kind: input, shape index: {}]   ;;  %s3449_s3 = inlined_call_operand.vmem [shape: bf16[400,512], index: 3, kind: output, shape index: {}]  }
   0x1   :  { %v2577_v0 = vld [vmem:[%s3446_s1 + $0xe0] sm:$0xf]  ;;  %v2646_v1 = vld [vmem:[%s3446_s1 + $0xec] sm:$0xf0]  ;;  %v2644_v2 = vld [vmem:[%s3446_s1 + $0xe4] sm:$0xf] }
   0x2   :  { %v2578_v3 = vor.u32 %v2646_v1, %v2577_v0  ;;  %v2579_v4 = vld [vmem:[%s3446_s1 + $0xf0] sm:$0xf0]  ;;  %v2585_v5 = vld [vmem:[%s3446_s1 + $0xe8] sm:$0xf]  ;;  %v2647_v6 = vld [vmem:[%s3446_s1 + $0xf4] sm:$0xf0] }
   0x3   :  { %v2582_v7 = vor.u32 %v2644_v2, %v2579_v4  ;;  %v2586_v8 = vor.u32 %v2647_v6, %v2585_v5  ;;  %v2645_v9 = vld [vmem:[%s3446_s1 + $0xec] sm:$0xf]  ;;  %v2587_v10 = vld [vmem:[%s3446_s1 + $0xf8] sm:$0xf0]  ;;  %v2561_v11 = vld [vmem:[%s3446_s1 + $0xc0] sm:$0xf] }
   0x4   :  { %810 = vmatpush.bf16.msra.mxu0 %v2578_v3  ;;  %v2590_v12 = vor.u32 %v2645_v9, %v2587_v10  ;;  %v2642_v13 = vld [vmem:[%s3446_s1 + $0xcc] sm:$0xf0]  ;;  %v2640_v14 = vld [vmem:[%s3446_s1 + $0xc4] sm:$0xf]  ;;  %v2563_v15 = vld [vmem:[%s3446_s1 + $0xd0] sm:$0xf0] }
   0x5   :  { %944 = vmatpush.bf16.msra.mxu1 %v2582_v7  ;;  %1078 = vmatpush.bf16.msra.mxu2 %v2586_v8  ;;  %v2562_v16 = vor.u32 %v2642_v13, %v2561_v11  ;;  %v2566_v17 = vor.u32 %v2640_v14, %v2563_v15  ;;  %v2569_v18 = vld [vmem:[%s3446_s1 + $0xc8] sm:$0xf]  ;;  %v2643_v19 = vld [vmem:[%s3446_s1 + $0xd4] sm:$0xf0]  ;;  %v2641_v20 = vld [vmem:[%s3446_s1 + $0xcc] sm:$0xf] }
   0x6   :  { %1212 = vmatpush.bf16.msra.mxu3 %v2590_v12  ;;  %v2570_v21 = vor.u32 %v2643_v19, %v2569_v18  ;;  %v2571_v22 = vld [vmem:[%s3446_s1 + $0xd8] sm:$0xf0]  ;;  %v2545_v23 = vld [vmem:[%s3446_s1 + $0xa0] sm:$0xf]  ;;  %v2638_v24 = vld [vmem:[%s3446_s1 + $0xac] sm:$0xf0] }
   0x7   :  { %v2574_v25 = vor.u32 %v2641_v20, %v2571_v22  ;;  %v2636_v26 = vld [vmem:[%s3446_s1 + $0xa4] sm:$0xf]  ;;  %v2547_v27 = vld [vmem:[%s3446_s1 + $0xb0] sm:$0xf0]  ;;  %v2553_v28 = vld [vmem:[%s3446_s1 + $0xa8] sm:$0xf]  ;;  %v2546_v29 = vor.u32 %v2638_v24, %v2545_v23 }
   0x8   :  { %811 = vmatpush.bf16.msra.mxu0 %v2562_v16  ;;  %v2639_v30 = vld [vmem:[%s3446_s1 + $0xb4] sm:$0xf0]  ;;  %v2637_v31 = vld [vmem:[%s3446_s1 + $0xac] sm:$0xf]  ;;  %v2555_v32 = vld [vmem:[%s3446_s1 + $0xb8] sm:$0xf0]  ;;  %v2550_v33 = vor.u32 %v2636_v26, %v2547_v27 }
   0x9   :  { %945 = vmatpush.bf16.msra.mxu1 %v2566_v17  ;;  %1079 = vmatpush.bf16.msra.mxu2 %v2570_v21  ;;  %v2554_v34 = vor.u32 %v2639_v30, %v2553_v28  ;;  %v2529_v35 = vld [vmem:[%s3446_s1 + $0x80] sm:$0xf]  ;;  %v2634_v36 = vld [vmem:[%s3446_s1 + $0x8c] sm:$0xf0]  ;;  %v2632_v37 = vld [vmem:[%s3446_s1 + $0x84] sm:$0xf]  ;;  %v2558_v38 = vor.u32 %v2637_v31, %v2555_v32 }
   0xa   :  { %1213 = vmatpush.bf16.msra.mxu3 %v2574_v25  ;;  %v2531_v39 = vld [vmem:[%s3446_s1 + $0x90] sm:$0xf0]  ;;  %v2537_v40 = vld [vmem:[%s3446_s1 + $0x88] sm:$0xf]  ;;  %v2635_v41 = vld [vmem:[%s3446_s1 + $0x94] sm:$0xf0]  ;;  %v2530_v44 = vor.u32 %v2634_v36, %v2529_v35 }
   0xb   :  { %v2633_v42 = vld [vmem:[%s3446_s1 + $0x8c] sm:$0xf]  ;;  %v2539_v43 = vld [vmem:[%s3446_s1 + $0x98] sm:$0xf0]  ;;  %v2534_v45 = vor.u32 %v2632_v37, %v2531_v39  ;;  %v2538_v46 = vor.u32 %v2635_v41, %v2537_v40  ;;  %v2513_v47 = vld [vmem:[%s3446_s1 + $0x60] sm:$0xf] }
   0xc   :  { %812 = vmatpush.bf16.msra.mxu0 %v2546_v29  ;;  %v2630_v48 = vld [vmem:[%s3446_s1 + $0x6c] sm:$0xf0]  ;;  %v2628_v49 = vld [vmem:[%s3446_s1 + $0x64] sm:$0xf]  ;;  %v2542_v50 = vor.u32 %v2633_v42, %v2539_v43  ;;  %v2515_v51 = vld [vmem:[%s3446_s1 + $0x70] sm:$0xf0] }
   0xd   :  { %946 = vmatpush.bf16.msra.mxu1 %v2550_v33  ;;  %1080 = vmatpush.bf16.msra.mxu2 %v2554_v34  ;;  %v2521_v52 = vld [vmem:[%s3446_s1 + $0x68] sm:$0xf]  ;;  %v2631_v53 = vld [vmem:[%s3446_s1 + $0x74] sm:$0xf0]  ;;  %v2629_v54 = vld [vmem:[%s3446_s1 + $0x6c] sm:$0xf]  ;;  %v2514_v56 = vor.u32 %v2630_v48, %v2513_v47  ;;  %v2518_v57 = vor.u32 %v2628_v49, %v2515_v51 }
   0xe   :  { %1214 = vmatpush.bf16.msra.mxu3 %v2558_v38  ;;  %v2523_v55 = vld [vmem:[%s3446_s1 + $0x78] sm:$0xf0]  ;;  %v2522_v58 = vor.u32 %v2631_v53, %v2521_v52  ;;  %v2497_v59 = vld [vmem:[%s3446_s1 + $0x40] sm:$0xf]  ;;  %v2626_v60 = vld [vmem:[%s3446_s1 + $0x4c] sm:$0xf0] }
   0xf   :  { %v2624_v61 = vld [vmem:[%s3446_s1 + $0x44] sm:$0xf]  ;;  %v2526_v62 = vor.u32 %v2629_v54, %v2523_v55  ;;  %v2499_v63 = vld [vmem:[%s3446_s1 + $0x50] sm:$0xf0]  ;;  %v2505_v0 = vld [vmem:[%s3446_s1 + $0x48] sm:$0xf]  ;;  %v2498_v4 = vor.u32 %v2626_v60, %v2497_v59 }
  0x10   :  { %813 = vmatpush.bf16.msra.mxu0 %v2530_v44  ;;  %v2627_v1 = vld [vmem:[%s3446_s1 + $0x54] sm:$0xf0]  ;;  %v2625_v2 = vld [vmem:[%s3446_s1 + $0x4c] sm:$0xf]  ;;  %v2507_v3 = vld [vmem:[%s3446_s1 + $0x58] sm:$0xf0]  ;;  %v2502_v5 = vor.u32 %v2624_v61, %v2499_v63 }
  0x11   :  { %947 = vmatpush.bf16.msra.mxu1 %v2534_v45  ;;  %1081 = vmatpush.bf16.msra.mxu2 %v2538_v46  ;;  %v2506_v6 = vor.u32 %v2627_v1, %v2505_v0  ;;  %v2481_v7 = vld [vmem:[%s3446_s1 + $0x20] sm:$0xf]  ;;  %v2622_v8 = vld [vmem:[%s3446_s1 + $0x2c] sm:$0xf0]  ;;  %v2620_v9 = vld [vmem:[%s3446_s1 + $0x24] sm:$0xf]  ;;  %v2510_v10 = vor.u32 %v2625_v2, %v2507_v3 }
  0x12   :  { %1215 = vmatpush.bf16.msra.mxu3 %v2542_v50  ;;  %v2483_v11 = vld [vmem:[%s3446_s1 + $0x30] sm:$0xf0]  ;;  %v2489_v12 = vld [vmem:[%s3446_s1 + $0x28] sm:$0xf]  ;;  %v2623_v13 = vld [vmem:[%s3446_s1 + $0x34] sm:$0xf0]  ;;  %v2482_v16 = vor.u32 %v2622_v8, %v2481_v7 }
  0x13   :  { %v2621_v14 = vld [vmem:[%s3446_s1 + $0x2c] sm:$0xf]  ;;  %v2491_v15 = vld [vmem:[%s3446_s1 + $0x38] sm:$0xf0]  ;;  %v2486_v17 = vor.u32 %v2620_v9, %v2483_v11  ;;  %v2490_v18 = vor.u32 %v2623_v13, %v2489_v12  ;;  %v2465_v19 = vld [vmem:[%s3446_s1] sm:$0xf] }
  0x14   :  { %814 = vmatpush.bf16.msra.mxu0 %v2514_v56  ;;  %v2618_v20 = vld [vmem:[%s3446_s1 + $0xc] sm:$0xf0]  ;;  %v2616_v21 = vld [vmem:[%s3446_s1 + $0x4] sm:$0xf]  ;;  %v2494_v22 = vor.u32 %v2621_v14, %v2491_v15  ;;  %v2467_v23 = vld [vmem:[%s3446_s1 + $0x10] sm:$0xf0] }
  0x15   :  { %948 = vmatpush.bf16.msra.mxu1 %v2518_v57  ;;  %1082 = vmatpush.bf16.msra.mxu2 %v2522_v58  ;;  %v2473_v24 = vld [vmem:[%s3446_s1 + $0x8] sm:$0xf]  ;;  %v2619_v25 = vld [vmem:[%s3446_s1 + $0x14] sm:$0xf0]  ;;  %v2617_v26 = vld [vmem:[%s3446_s1 + $0xc] sm:$0xf]  ;;  %v2466_v28 = vor.u32 %v2618_v20, %v2465_v19  ;;  %v2470_v29 = vor.u32 %v2616_v21, %v2467_v23 }
  0x16   :  { %1216 = vmatpush.bf16.msra.mxu3 %v2526_v62  ;;  %v2475_v27 = vld [vmem:[%s3446_s1 + $0x18] sm:$0xf0]  ;;  %v2474_v30 = vor.u32 %v2619_v25, %v2473_v24  ;;  %v2591_v32 = vld [vmem:[%s3447_s0] sm:$0xff]  ;;  %v2592_v33 = vld [vmem:[%s3447_s0 + $0x8] sm:$0xff] }
  0x17   :  { %v2478_v31 = vor.u32 %v2617_v26, %v2475_v27  ;;  %v2593_v34 = vld [vmem:[%s3447_s0 + $0x10] sm:$0xff]  ;;  %v2594_v35 = vld [vmem:[%s3447_s0 + $0x18] sm:$0xff]  ;;  %v2595_v36 = vld [vmem:[%s3447_s0 + $0x20] sm:$0xff] }
  0x18   :  { %815 = vmatpush.bf16.msra.mxu0 %v2498_v4  ;;  %v2596_v37 = vld [vmem:[%s3447_s0 + $0x28] sm:$0xff]  ;;  %v2597_v38 = vld [vmem:[%s3447_s0 + $0x30] sm:$0xff]  ;;  %v2598_v39 = vld [vmem:[%s3447_s0 + $0x38] sm:$0xff] }
  0x19   :  { %949 = vmatpush.bf16.msra.mxu1 %v2502_v5  ;;  %1083 = vmatpush.bf16.msra.mxu2 %v2506_v6  ;;  %v1949_v40 = vld [vmem:[%s3448_s2] sm:$0xf]  ;;  %v2600_v62 = vld [vmem:[%s3447_s0 + $0x48] sm:$0xff]  ;;  %v2601_v19 = vld [vmem:[%s3447_s0 + $0x50] sm:$0xff] }
  0x1a   :  { %1217 = vmatpush.bf16.msra.mxu3 %v2510_v10  ;;  %v2887_v41 = vperm.slane %v1949_v40, 0  ;;  %v2889_v42 = vperm.slane %v1949_v40, 1  ;;  %v2599_v43 = vld [vmem:[%s3447_s0 + $0x40] sm:$0xff]  ;;  %v2896_v49 = vperm.slane %v1949_v40, 2  ;;  %v2898_v50 = vperm.slane %v1949_v40, 3  ;;  %v2602_v40 = vld [vmem:[%s3447_s0 + $0x58] sm:$0xff] }
  0x1c   :  { %816 = vmatpush.bf16.msra.mxu0 %v2482_v16 }
  0x1d   :  { %950 = vmatpush.bf16.msra.mxu1 %v2486_v17  ;;  %1084 = vmatpush.bf16.msra.mxu2 %v2490_v18 }
  0x1e   :  { %1218 = vmatpush.bf16.msra.mxu3 %v2494_v22 }
  0x20   :  { %817 = vmatpush.bf16.msra.mxu0 %v2466_v28 }
  0x21   :  { %951 = vmatpush.bf16.msra.mxu1 %v2470_v29  ;;  %1085 = vmatpush.bf16.msra.mxu2 %v2474_v30 }
  0x22   :  { %1219 = vmatpush.bf16.msra.mxu3 %v2478_v31 }
  0x23   :  { %818 = vmatmul.bf16.vlgmr.msra.gmra.mxu0 %v2591_v32 }
  0x24   :  { %952 = vmatmul.bf16.vlgmr.msra.gmra.mxu1 %v2591_v32  ;;  %1086 = vmatmul.bf16.vlgmr.msra.gmra.mxu2 %v2591_v32 }
  0x25   :  { %1220 = vmatmul.bf16.vlgmr.msra.gmra.mxu3 %v2591_v32 }
  0x33   :  { %823 = vmatmul.bf16.gmra.mxu0 %v2592_v33 }
  0x34   :  { %957 = vmatmul.bf16.gmra.mxu1 %v2592_v33  ;;  %1091 = vmatmul.bf16.gmra.mxu2 %v2592_v33 }
  0x35   :  { %1225 = vmatmul.bf16.gmra.mxu3 %v2592_v33 }
  0x43   :  { %828 = vmatmul.bf16.gmra.mxu0 %v2593_v34 }
  0x44   :  { %962 = vmatmul.bf16.gmra.mxu1 %v2593_v34  ;;  %1096 = vmatmul.bf16.gmra.mxu2 %v2593_v34 }
  0x45   :  { %1230 = vmatmul.bf16.gmra.mxu3 %v2593_v34 }
  0x53   :  { %833 = vmatmul.bf16.gmra.mxu0 %v2594_v35 }
  0x54   :  { %967 = vmatmul.bf16.gmra.mxu1 %v2594_v35  ;;  %1101 = vmatmul.bf16.gmra.mxu2 %v2594_v35 }
  0x55   :  { %1235 = vmatmul.bf16.gmra.mxu3 %v2594_v35 }
  0x63   :  { %838 = vmatmul.bf16.gmra.mxu0 %v2595_v36 }
  0x64   :  { %972 = vmatmul.bf16.gmra.mxu1 %v2595_v36  ;;  %1106 = vmatmul.bf16.gmra.mxu2 %v2595_v36 }
  0x65   :  { %1240 = vmatmul.bf16.gmra.mxu3 %v2595_v36 }
  0x73   :  { %843 = vmatmul.bf16.gmra.mxu0 %v2596_v37 }
  0x74   :  { %977 = vmatmul.bf16.gmra.mxu1 %v2596_v37  ;;  %1111 = vmatmul.bf16.gmra.mxu2 %v2596_v37 }
  0x75   :  { %1245 = vmatmul.bf16.gmra.mxu3 %v2596_v37 }
  0x83   :  { %848 = vmatmul.bf16.gmra.mxu0 %v2597_v38 }
  0x84   :  { %982 = vmatmul.bf16.gmra.mxu1 %v2597_v38  ;;  %1116 = vmatmul.bf16.gmra.mxu2 %v2597_v38 }
  0x85   :  { %1250 = vmatmul.bf16.gmra.mxu3 %v2597_v38 }
  0x93   :  { %853 = vmatmul.bf16.gmra.mxu0 %v2598_v39 }
  0x94   :  { %987 = vmatmul.bf16.gmra.mxu1 %v2598_v39  ;;  %1121 = vmatmul.bf16.gmra.mxu2 %v2598_v39 }
  0x95   :  { %1255 = vmatmul.bf16.gmra.mxu3 %v2598_v39 }
  0xa0   :  { %v819_v44 = vpop.f32.mrf.mxu0 }
  0xa1   :  { %v1959_v45 = vadd.f32 %v2887_v41, %v819_v44  ;;  %v953_v46 = vpop.f32.mrf.mxu1 }
  0xa2   :  { %v1960_v47 = vadd.f32 %v2889_v42, %v953_v46 }
  0xa3   :  { %858 = vmatmul.bf16.gmra.mxu0 %v2599_v43 }
  0xa4   :  { %v2159_v48 = vpack.c.bf16 %v1960_v47, %v1959_v45  ;;  %992 = vmatmul.bf16.gmra.mxu1 %v2599_v43  ;;  %1126 = vmatmul.bf16.gmra.mxu2 %v2599_v43 }
  0xa5   :  { %1260 = vmatmul.bf16.gmra.mxu3 %v2599_v43 }
  0xa6   :  { %2259 = vst [vmem:[%s3449_s3] sm:$0xff] %v2159_v48 }
  0xa7   :  { %v1087_v51 = vpop.f32.mrf.mxu2 }
  0xa8   :  { %v1961_v52 = vadd.f32 %v2896_v49, %v1087_v51  ;;  %v1221_v53 = vpop.f32.mrf.mxu3  ;;  %v821_v54 = vpop.f32.mrf.mxu0 }
  0xa9   :  { %v1962_v55 = vadd.f32 %v2898_v50, %v1221_v53  ;;  %v1963_v56 = vadd.f32 %v2887_v41, %v821_v54  ;;  %v955_v57 = vpop.f32.mrf.mxu1 }
  0xaa   :  { %v1964_v58 = vadd.f32 %v2889_v42, %v955_v57 }
  0xab   :  { %v2160_v59 = vpack.c.bf16 %v1962_v55, %v1961_v52 }
  0xac   :  { %v2161_v60 = vpack.c.bf16 %v1964_v58, %v1963_v56 }
  0xad   :  { %2260 = vst [vmem:[%s3449_s3 + $0x8] sm:$0xff] %v2160_v59 }
  0xae   :  { %2261 = vst [vmem:[%s3449_s3 + $0x10] sm:$0xff] %v2161_v60 }
  0xaf   :  { %v1089_v61 = vpop.f32.mrf.mxu2 }
  0xb0   :  { %v1965_v63 = vadd.f32 %v2896_v49, %v1089_v61  ;;  %v1223_v0 = vpop.f32.mrf.mxu3  ;;  %v824_v1 = vpop.f32.mrf.mxu0 }
  0xb1   :  { %v1966_v2 = vadd.f32 %v2898_v50, %v1223_v0  ;;  %v1967_v3 = vadd.f32 %v2887_v41, %v824_v1  ;;  %v958_v4 = vpop.f32.mrf.mxu1  ;;  %v2603_v1 = vld [vmem:[%s3447_s0 + $0x60] sm:$0xff] }
  0xb2   :  { %v1968_v5 = vadd.f32 %v2889_v42, %v958_v4 }
  0xb3   :  { %v2162_v6 = vpack.c.bf16 %v1966_v2, %v1965_v63  ;;  %863 = vmatmul.bf16.gmra.mxu0 %v2600_v62 }
  0xb4   :  { %v2163_v7 = vpack.c.bf16 %v1968_v5, %v1967_v3  ;;  %997 = vmatmul.bf16.gmra.mxu1 %v2600_v62  ;;  %1131 = vmatmul.bf16.gmra.mxu2 %v2600_v62 }
  0xb5   :  { %2262 = vst [vmem:[%s3449_s3 + $0x18] sm:$0xff] %v2162_v6  ;;  %1265 = vmatmul.bf16.gmra.mxu3 %v2600_v62 }
  0xb6   :  { %2263 = vst [vmem:[%s3449_s3 + $0x20] sm:$0xff] %v2163_v7 }
  0xb7   :  { %v1092_v8 = vpop.f32.mrf.mxu2 }
  0xb8   :  { %v1969_v9 = vadd.f32 %v2896_v49, %v1092_v8  ;;  %v1226_v10 = vpop.f32.mrf.mxu3  ;;  %v826_v11 = vpop.f32.mrf.mxu0 }
  0xb9   :  { %v1970_v12 = vadd.f32 %v2898_v50, %v1226_v10  ;;  %v1971_v13 = vadd.f32 %v2887_v41, %v826_v11  ;;  %v960_v14 = vpop.f32.mrf.mxu1 }
  0xba   :  { %v1972_v15 = vadd.f32 %v2889_v42, %v960_v14 }
  0xbb   :  { %v2164_v16 = vpack.c.bf16 %v1970_v12, %v1969_v9 }
  0xbc   :  { %v2165_v17 = vpack.c.bf16 %v1972_v15, %v1971_v13 }
  0xbd   :  { %2264 = vst [vmem:[%s3449_s3 + $0x28] sm:$0xff] %v2164_v16 }
  0xbe   :  { %2265 = vst [vmem:[%s3449_s3 + $0x30] sm:$0xff] %v2165_v17 }
  0xbf   :  { %v1094_v18 = vpop.f32.mrf.mxu2 }
  0xc0   :  { %v1973_v20 = vadd.f32 %v2896_v49, %v1094_v18  ;;  %v1228_v21 = vpop.f32.mrf.mxu3  ;;  %v829_v22 = vpop.f32.mrf.mxu0 }
  0xc1   :  { %v1974_v23 = vadd.f32 %v2898_v50, %v1228_v21  ;;  %v1975_v24 = vadd.f32 %v2887_v41, %v829_v22  ;;  %v963_v25 = vpop.f32.mrf.mxu1  ;;  %v2604_v22 = vld [vmem:[%s3447_s0 + $0x68] sm:$0xff] }
  0xc2   :  { %v1976_v26 = vadd.f32 %v2889_v42, %v963_v25 }
  0xc3   :  { %v2166_v27 = vpack.c.bf16 %v1974_v23, %v1973_v20  ;;  %868 = vmatmul.bf16.gmra.mxu0 %v2601_v19 }
  0xc4   :  { %v2167_v28 = vpack.c.bf16 %v1976_v26, %v1975_v24  ;;  %1002 = vmatmul.bf16.gmra.mxu1 %v2601_v19  ;;  %1136 = vmatmul.bf16.gmra.mxu2 %v2601_v19 }
  0xc5   :  { %2266 = vst [vmem:[%s3449_s3 + $0x38] sm:$0xff] %v2166_v27  ;;  %1270 = vmatmul.bf16.gmra.mxu3 %v2601_v19 }
  0xc6   :  { %2267 = vst [vmem:[%s3449_s3 + $0x40] sm:$0xff] %v2167_v28 }
  0xc7   :  { %v1097_v29 = vpop.f32.mrf.mxu2 }
  0xc8   :  { %v1977_v30 = vadd.f32 %v2896_v49, %v1097_v29  ;;  %v1231_v31 = vpop.f32.mrf.mxu3  ;;  %v831_v32 = vpop.f32.mrf.mxu0 }
  0xc9   :  { %v1978_v33 = vadd.f32 %v2898_v50, %v1231_v31  ;;  %v1979_v34 = vadd.f32 %v2887_v41, %v831_v32  ;;  %v965_v35 = vpop.f32.mrf.mxu1 }
  0xca   :  { %v1980_v36 = vadd.f32 %v2889_v42, %v965_v35 }
  0xcb   :  { %v2168_v37 = vpack.c.bf16 %v1978_v33, %v1977_v30 }
  0xcc   :  { %v2169_v38 = vpack.c.bf16 %v1980_v36, %v1979_v34 }
  0xcd   :  { %2268 = vst [vmem:[%s3449_s3 + $0x48] sm:$0xff] %v2168_v37 }
  0xce   :  { %2269 = vst [vmem:[%s3449_s3 + $0x50] sm:$0xff] %v2169_v38 }
  0xcf   :  { %v1099_v39 = vpop.f32.mrf.mxu2 }
  0xd0   :  { %v1981_v43 = vadd.f32 %v2896_v49, %v1099_v39  ;;  %v1233_v44 = vpop.f32.mrf.mxu3  ;;  %v834_v45 = vpop.f32.mrf.mxu0 }
  0xd1   :  { %v1982_v46 = vadd.f32 %v2898_v50, %v1233_v44  ;;  %v1983_v47 = vadd.f32 %v2887_v41, %v834_v45  ;;  %v968_v48 = vpop.f32.mrf.mxu1  ;;  %v2605_v45 = vld [vmem:[%s3447_s0 + $0x70] sm:$0xff] }
  0xd2   :  { %v1984_v51 = vadd.f32 %v2889_v42, %v968_v48 }
  0xd3   :  { %v2170_v52 = vpack.c.bf16 %v1982_v46, %v1981_v43  ;;  %873 = vmatmul.bf16.gmra.mxu0 %v2602_v40 }
  0xd4   :  { %v2171_v53 = vpack.c.bf16 %v1984_v51, %v1983_v47  ;;  %1007 = vmatmul.bf16.gmra.mxu1 %v2602_v40  ;;  %1141 = vmatmul.bf16.gmra.mxu2 %v2602_v40 }
  0xd5   :  { %2270 = vst [vmem:[%s3449_s3 + $0x58] sm:$0xff] %v2170_v52  ;;  %1275 = vmatmul.bf16.gmra.mxu3 %v2602_v40 }
  0xd6   :  { %2271 = vst [vmem:[%s3449_s3 + $0x60] sm:$0xff] %v2171_v53 }
  0xd7   :  { %v1102_v54 = vpop.f32.mrf.mxu2 }
  0xd8   :  { %v1985_v55 = vadd.f32 %v2896_v49, %v1102_v54  ;;  %v1236_v56 = vpop.f32.mrf.mxu3  ;;  %v836_v57 = vpop.f32.mrf.mxu0 }
  0xd9   :  { %v1986_v58 = vadd.f32 %v2898_v50, %v1236_v56  ;;  %v1987_v59 = vadd.f32 %v2887_v41, %v836_v57  ;;  %v970_v60 = vpop.f32.mrf.mxu1 }
  0xda   :  { %v1988_v61 = vadd.f32 %v2889_v42, %v970_v60 }
  0xdb   :  { %v2172_v62 = vpack.c.bf16 %v1986_v58, %v1985_v55 }
  0xdc   :  { %v2173_v63 = vpack.c.bf16 %v1988_v61, %v1987_v59 }
  0xdd   :  { %2272 = vst [vmem:[%s3449_s3 + $0x68] sm:$0xff] %v2172_v62 }
  0xde   :  { %2273 = vst [vmem:[%s3449_s3 + $0x70] sm:$0xff] %v2173_v63 }
  0xdf   :  { %v1104_v0 = vpop.f32.mrf.mxu2 }
  0xe0   :  { %v1989_v2 = vadd.f32 %v2896_v49, %v1104_v0  ;;  %v1238_v3 = vpop.f32.mrf.mxu3  ;;  %v839_v4 = vpop.f32.mrf.mxu0 }
  0xe1   :  { %v1990_v5 = vadd.f32 %v2898_v50, %v1238_v3  ;;  %v1991_v6 = vadd.f32 %v2887_v41, %v839_v4  ;;  %v973_v7 = vpop.f32.mrf.mxu1  ;;  %v2606_v4 = vld [vmem:[%s3447_s0 + $0x78] sm:$0xff] }
  0xe2   :  { %v1992_v8 = vadd.f32 %v2889_v42, %v973_v7 }
  0xe3   :  { %v2174_v9 = vpack.c.bf16 %v1990_v5, %v1989_v2  ;;  %878 = vmatmul.bf16.gmra.mxu0 %v2603_v1 }
  0xe4   :  { %v2175_v10 = vpack.c.bf16 %v1992_v8, %v1991_v6  ;;  %1012 = vmatmul.bf16.gmra.mxu1 %v2603_v1  ;;  %1146 = vmatmul.bf16.gmra.mxu2 %v2603_v1 }
  0xe5   :  { %2274 = vst [vmem:[%s3449_s3 + $0x78] sm:$0xff] %v2174_v9  ;;  %1280 = vmatmul.bf16.gmra.mxu3 %v2603_v1 }
  0xe6   :  { %2275 = vst [vmem:[%s3449_s3 + $0x80] sm:$0xff] %v2175_v10 }
  0xe7   :  { %v1107_v11 = vpop.f32.mrf.mxu2 }
  0xe8   :  { %v1993_v12 = vadd.f32 %v2896_v49, %v1107_v11  ;;  %v1241_v13 = vpop.f32.mrf.mxu3  ;;  %v841_v14 = vpop.f32.mrf.mxu0 }
  0xe9   :  { %v1994_v15 = vadd.f32 %v2898_v50, %v1241_v13  ;;  %v1995_v16 = vadd.f32 %v2887_v41, %v841_v14  ;;  %v975_v17 = vpop.f32.mrf.mxu1 }
  0xea   :  { %v1996_v18 = vadd.f32 %v2889_v42, %v975_v17 }
  0xeb   :  { %v2176_v19 = vpack.c.bf16 %v1994_v15, %v1993_v12 }
  0xec   :  { %v2177_v20 = vpack.c.bf16 %v1996_v18, %v1995_v16 }
  0xed   :  { %2276 = vst [vmem:[%s3449_s3 + $0x88] sm:$0xff] %v2176_v19 }
  0xee   :  { %2277 = vst [vmem:[%s3449_s3 + $0x90] sm:$0xff] %v2177_v20 }
  0xef   :  { %v1109_v21 = vpop.f32.mrf.mxu2 }
  0xf0   :  { %v1997_v23 = vadd.f32 %v2896_v49, %v1109_v21  ;;  %v1243_v24 = vpop.f32.mrf.mxu3  ;;  %v844_v25 = vpop.f32.mrf.mxu0 }
  0xf1   :  { %v1998_v26 = vadd.f32 %v2898_v50, %v1243_v24  ;;  %v1999_v27 = vadd.f32 %v2887_v41, %v844_v25  ;;  %v978_v28 = vpop.f32.mrf.mxu1  ;;  %v2607_v25 = vld [vmem:[%s3447_s0 + $0x80] sm:$0xff] }
  0xf2   :  { %v2000_v29 = vadd.f32 %v2889_v42, %v978_v28 }
  0xf3   :  { %v2178_v30 = vpack.c.bf16 %v1998_v26, %v1997_v23  ;;  %883 = vmatmul.bf16.gmra.mxu0 %v2604_v22 }
  0xf4   :  { %v2179_v31 = vpack.c.bf16 %v2000_v29, %v1999_v27  ;;  %1017 = vmatmul.bf16.gmra.mxu1 %v2604_v22  ;;  %1151 = vmatmul.bf16.gmra.mxu2 %v2604_v22 }
  0xf5   :  { %2278 = vst [vmem:[%s3449_s3 + $0x98] sm:$0xff] %v2178_v30  ;;  %1285 = vmatmul.bf16.gmra.mxu3 %v2604_v22 }
  0xf6   :  { %2279 = vst [vmem:[%s3449_s3 + $0xa0] sm:$0xff] %v2179_v31 }
  0xf7   :  { %v1112_v32 = vpop.f32.mrf.mxu2 }
  0xf8   :  { %v2001_v33 = vadd.f32 %v2896_v49, %v1112_v32  ;;  %v1246_v34 = vpop.f32.mrf.mxu3  ;;  %v846_v35 = vpop.f32.mrf.mxu0 }
  0xf9   :  { %v2002_v36 = vadd.f32 %v2898_v50, %v1246_v34  ;;  %v2003_v37 = vadd.f32 %v2887_v41, %v846_v35  ;;  %v980_v38 = vpop.f32.mrf.mxu1 }
  0xfa   :  { %v2004_v39 = vadd.f32 %v2889_v42, %v980_v38 }
  0xfb   :  { %v2180_v40 = vpack.c.bf16 %v2002_v36, %v2001_v33 }
  0xfc   :  { %v2181_v43 = vpack.c.bf16 %v2004_v39, %v2003_v37 }
  0xfd   :  { %2280 = vst [vmem:[%s3449_s3 + $0xa8] sm:$0xff] %v2180_v40 }
  0xfe   :  { %2281 = vst [vmem:[%s3449_s3 + $0xb0] sm:$0xff] %v2181_v43 }
  0xff   :  { %v1114_v44 = vpop.f32.mrf.mxu2 }
 0x100   :  { %v2005_v46 = vadd.f32 %v2896_v49, %v1114_v44  ;;  %v1248_v47 = vpop.f32.mrf.mxu3  ;;  %v849_v48 = vpop.f32.mrf.mxu0 }
 0x101   :  { %v2006_v51 = vadd.f32 %v2898_v50, %v1248_v47  ;;  %v2007_v52 = vadd.f32 %v2887_v41, %v849_v48  ;;  %v983_v53 = vpop.f32.mrf.mxu1  ;;  %v2608_v48 = vld [vmem:[%s3447_s0 + $0x88] sm:$0xff] }
 0x102   :  { %v2008_v54 = vadd.f32 %v2889_v42, %v983_v53 }
 0x103   :  { %v2182_v55 = vpack.c.bf16 %v2006_v51, %v2005_v46  ;;  %888 = vmatmul.bf16.gmra.mxu0 %v2605_v45 }
 0x104   :  { %v2183_v56 = vpack.c.bf16 %v2008_v54, %v2007_v52  ;;  %1022 = vmatmul.bf16.gmra.mxu1 %v2605_v45  ;;  %1156 = vmatmul.bf16.gmra.mxu2 %v2605_v45 }
 0x105   :  { %2282 = vst [vmem:[%s3449_s3 + $0xb8] sm:$0xff] %v2182_v55  ;;  %1290 = vmatmul.bf16.gmra.mxu3 %v2605_v45 }
 0x106   :  { %2283 = vst [vmem:[%s3449_s3 + $0xc0] sm:$0xff] %v2183_v56 }
 0x107   :  { %v1117_v57 = vpop.f32.mrf.mxu2 }
 0x108   :  { %v2009_v58 = vadd.f32 %v2896_v49, %v1117_v57  ;;  %v1251_v59 = vpop.f32.mrf.mxu3  ;;  %v851_v60 = vpop.f32.mrf.mxu0 }
 0x109   :  { %v2010_v61 = vadd.f32 %v2898_v50, %v1251_v59  ;;  %v2011_v62 = vadd.f32 %v2887_v41, %v851_v60  ;;  %v985_v63 = vpop.f32.mrf.mxu1 }
 0x10a   :  { %v2012_v0 = vadd.f32 %v2889_v42, %v985_v63 }
 0x10b   :  { %v2184_v1 = vpack.c.bf16 %v2010_v61, %v2009_v58 }
 0x10c   :  { %v2185_v2 = vpack.c.bf16 %v2012_v0, %v2011_v62 }
 0x10d   :  { %2284 = vst [vmem:[%s3449_s3 + $0xc8] sm:$0xff] %v2184_v1 }
 0x10e   :  { %2285 = vst [vmem:[%s3449_s3 + $0xd0] sm:$0xff] %v2185_v2 }
 0x10f   :  { %v1119_v3 = vpop.f32.mrf.mxu2 }
 0x110   :  { %v2013_v5 = vadd.f32 %v2896_v49, %v1119_v3  ;;  %v1253_v6 = vpop.f32.mrf.mxu3  ;;  %v854_v7 = vpop.f32.mrf.mxu0 }
 0x111   :  { %v2014_v8 = vadd.f32 %v2898_v50, %v1253_v6  ;;  %v2015_v9 = vadd.f32 %v2887_v41, %v854_v7  ;;  %v988_v10 = vpop.f32.mrf.mxu1  ;;  %v2609_v7 = vld [vmem:[%s3447_s0 + $0x90] sm:$0xff] }
 0x112   :  { %v2016_v11 = vadd.f32 %v2889_v42, %v988_v10 }
 0x113   :  { %v2186_v12 = vpack.c.bf16 %v2014_v8, %v2013_v5  ;;  %893 = vmatmul.bf16.gmra.mxu0 %v2606_v4 }
 0x114   :  { %v2187_v13 = vpack.c.bf16 %v2016_v11, %v2015_v9  ;;  %1027 = vmatmul.bf16.gmra.mxu1 %v2606_v4  ;;  %1161 = vmatmul.bf16.gmra.mxu2 %v2606_v4 }
 0x115   :  { %2286 = vst [vmem:[%s3449_s3 + $0xd8] sm:$0xff] %v2186_v12  ;;  %1295 = vmatmul.bf16.gmra.mxu3 %v2606_v4 }
 0x116   :  { %2287 = vst [vmem:[%s3449_s3 + $0xe0] sm:$0xff] %v2187_v13 }
 0x117   :  { %v1122_v14 = vpop.f32.mrf.mxu2 }
 0x118   :  { %v2017_v15 = vadd.f32 %v2896_v49, %v1122_v14  ;;  %v1256_v16 = vpop.f32.mrf.mxu3  ;;  %v856_v17 = vpop.f32.mrf.mxu0 }
 0x119   :  { %v2018_v18 = vadd.f32 %v2898_v50, %v1256_v16  ;;  %v2019_v19 = vadd.f32 %v2887_v41, %v856_v17  ;;  %v990_v20 = vpop.f32.mrf.mxu1 }
 0x11a   :  { %v2020_v21 = vadd.f32 %v2889_v42, %v990_v20 }
 0x11b   :  { %v2188_v22 = vpack.c.bf16 %v2018_v18, %v2017_v15 }
 0x11c   :  { %v2189_v23 = vpack.c.bf16 %v2020_v21, %v2019_v19 }
 0x11d   :  { %2288 = vst [vmem:[%s3449_s3 + $0xe8] sm:$0xff] %v2188_v22 }
 0x11e   :  { %2289 = vst [vmem:[%s3449_s3 + $0xf0] sm:$0xff] %v2189_v23 }
 0x11f   :  { %v1124_v24 = vpop.f32.mrf.mxu2 }
 0x120   :  { %v2021_v26 = vadd.f32 %v2896_v49, %v1124_v24  ;;  %v1258_v27 = vpop.f32.mrf.mxu3  ;;  %v859_v28 = vpop.f32.mrf.mxu0 }
 0x121   :  { %v2022_v29 = vadd.f32 %v2898_v50, %v1258_v27  ;;  %v2023_v30 = vadd.f32 %v2887_v41, %v859_v28  ;;  %v993_v31 = vpop.f32.mrf.mxu1  ;;  %v2610_v28 = vld [vmem:[%s3447_s0 + $0x98] sm:$0xff] }
 0x122   :  { %v2024_v32 = vadd.f32 %v2889_v42, %v993_v31 }
 0x123   :  { %v2190_v33 = vpack.c.bf16 %v2022_v29, %v2021_v26  ;;  %898 = vmatmul.bf16.gmra.mxu0 %v2607_v25 }
 0x124   :  { %v2191_v34 = vpack.c.bf16 %v2024_v32, %v2023_v30  ;;  %1032 = vmatmul.bf16.gmra.mxu1 %v2607_v25  ;;  %1166 = vmatmul.bf16.gmra.mxu2 %v2607_v25 }
 0x125   :  { %2290 = vst [vmem:[%s3449_s3 + $0xf8] sm:$0xff] %v2190_v33  ;;  %1300 = vmatmul.bf16.gmra.mxu3 %v2607_v25 }
 0x126   :  { %2291 = vst [vmem:[%s3449_s3 + $0x100] sm:$0xff] %v2191_v34 }
 0x127   :  { %v1127_v35 = vpop.f32.mrf.mxu2 }
 0x128   :  { %v2025_v36 = vadd.f32 %v2896_v49, %v1127_v35  ;;  %v1261_v37 = vpop.f32.mrf.mxu3  ;;  %v861_v38 = vpop.f32.mrf.mxu0 }
 0x129   :  { %v2026_v39 = vadd.f32 %v2898_v50, %v1261_v37  ;;  %v2027_v40 = vadd.f32 %v2887_v41, %v861_v38  ;;  %v995_v43 = vpop.f32.mrf.mxu1 }
 0x12a   :  { %v2028_v44 = vadd.f32 %v2889_v42, %v995_v43 }
 0x12b   :  { %v2192_v45 = vpack.c.bf16 %v2026_v39, %v2025_v36 }
 0x12c   :  { %v2193_v46 = vpack.c.bf16 %v2028_v44, %v2027_v40 }
 0x12d   :  { %2292 = vst [vmem:[%s3449_s3 + $0x108] sm:$0xff] %v2192_v45 }
 0x12e   :  { %2293 = vst [vmem:[%s3449_s3 + $0x110] sm:$0xff] %v2193_v46 }
 0x12f   :  { %v1129_v47 = vpop.f32.mrf.mxu2 }
 0x130   :  { %v2029_v51 = vadd.f32 %v2896_v49, %v1129_v47  ;;  %v1263_v52 = vpop.f32.mrf.mxu3  ;;  %v864_v53 = vpop.f32.mrf.mxu0 }
 0x131   :  { %v2030_v54 = vadd.f32 %v2898_v50, %v1263_v52  ;;  %v2031_v55 = vadd.f32 %v2887_v41, %v864_v53  ;;  %v998_v56 = vpop.f32.mrf.mxu1  ;;  %v2611_v53 = vld [vmem:[%s3447_s0 + $0xa0] sm:$0xff] }
 0x132   :  { %v2032_v57 = vadd.f32 %v2889_v42, %v998_v56 }
 0x133   :  { %v2194_v58 = vpack.c.bf16 %v2030_v54, %v2029_v51  ;;  %903 = vmatmul.bf16.gmra.mxu0 %v2608_v48 }
 0x134   :  { %v2195_v59 = vpack.c.bf16 %v2032_v57, %v2031_v55  ;;  %1037 = vmatmul.bf16.gmra.mxu1 %v2608_v48  ;;  %1171 = vmatmul.bf16.gmra.mxu2 %v2608_v48 }
 0x135   :  { %2294 = vst [vmem:[%s3449_s3 + $0x118] sm:$0xff] %v2194_v58  ;;  %1305 = vmatmul.bf16.gmra.mxu3 %v2608_v48 }
 0x136   :  { %2295 = vst [vmem:[%s3449_s3 + $0x120] sm:$0xff] %v2195_v59 }
 0x137   :  { %v1132_v60 = vpop.f32.mrf.mxu2 }
 0x138   :  { %v2033_v61 = vadd.f32 %v2896_v49, %v1132_v60  ;;  %v1266_v62 = vpop.f32.mrf.mxu3  ;;  %v866_v63 = vpop.f32.mrf.mxu0 }
 0x139   :  { %v2034_v0 = vadd.f32 %v2898_v50, %v1266_v62  ;;  %v2035_v1 = vadd.f32 %v2887_v41, %v866_v63  ;;  %v1000_v2 = vpop.f32.mrf.mxu1 }
 0x13a   :  { %v2036_v3 = vadd.f32 %v2889_v42, %v1000_v2 }
 0x13b   :  { %v2196_v4 = vpack.c.bf16 %v2034_v0, %v2033_v61 }
 0x13c   :  { %v2197_v5 = vpack.c.bf16 %v2036_v3, %v2035_v1 }
 0x13d   :  { %2296 = vst [vmem:[%s3449_s3 + $0x128] sm:$0xff] %v2196_v4 }
 0x13e   :  { %2297 = vst [vmem:[%s3449_s3 + $0x130] sm:$0xff] %v2197_v5 }
 0x13f   :  { %v1134_v6 = vpop.f32.mrf.mxu2 }
 0x140   :  { %v2037_v8 = vadd.f32 %v2896_v49, %v1134_v6  ;;  %v1268_v9 = vpop.f32.mrf.mxu3  ;;  %v869_v10 = vpop.f32.mrf.mxu0 }
 0x141   :  { %v2038_v11 = vadd.f32 %v2898_v50, %v1268_v9  ;;  %v2039_v12 = vadd.f32 %v2887_v41, %v869_v10  ;;  %v1003_v13 = vpop.f32.mrf.mxu1  ;;  %v2612_v10 = vld [vmem:[%s3447_s0 + $0xa8] sm:$0xff] }
 0x142   :  { %v2040_v14 = vadd.f32 %v2889_v42, %v1003_v13 }
 0x143   :  { %v2198_v15 = vpack.c.bf16 %v2038_v11, %v2037_v8  ;;  %908 = vmatmul.bf16.gmra.mxu0 %v2609_v7 }
 0x144   :  { %v2199_v16 = vpack.c.bf16 %v2040_v14, %v2039_v12  ;;  %1042 = vmatmul.bf16.gmra.mxu1 %v2609_v7  ;;  %1176 = vmatmul.bf16.gmra.mxu2 %v2609_v7 }
 0x145   :  { %2298 = vst [vmem:[%s3449_s3 + $0x138] sm:$0xff] %v2198_v15  ;;  %1310 = vmatmul.bf16.gmra.mxu3 %v2609_v7 }
 0x146   :  { %2299 = vst [vmem:[%s3449_s3 + $0x140] sm:$0xff] %v2199_v16 }
 0x147   :  { %v1137_v17 = vpop.f32.mrf.mxu2 }
 0x148   :  { %v2041_v18 = vadd.f32 %v2896_v49, %v1137_v17  ;;  %v1271_v19 = vpop.f32.mrf.mxu3  ;;  %v871_v20 = vpop.f32.mrf.mxu0 }
 0x149   :  { %v2042_v21 = vadd.f32 %v2898_v50, %v1271_v19  ;;  %v2043_v22 = vadd.f32 %v2887_v41, %v871_v20  ;;  %v1005_v23 = vpop.f32.mrf.mxu1 }
 0x14a   :  { %v2044_v24 = vadd.f32 %v2889_v42, %v1005_v23 }
 0x14b   :  { %v2200_v25 = vpack.c.bf16 %v2042_v21, %v2041_v18 }
 0x14c   :  { %v2201_v26 = vpack.c.bf16 %v2044_v24, %v2043_v22 }
 0x14d   :  { %2300 = vst [vmem:[%s3449_s3 + $0x148] sm:$0xff] %v2200_v25 }
 0x14e   :  { %2301 = vst [vmem:[%s3449_s3 + $0x150] sm:$0xff] %v2201_v26 }
 0x14f   :  { %v1139_v27 = vpop.f32.mrf.mxu2 }
 0x150   :  { %v2045_v29 = vadd.f32 %v2896_v49, %v1139_v27  ;;  %v1273_v30 = vpop.f32.mrf.mxu3  ;;  %v874_v31 = vpop.f32.mrf.mxu0 }
 0x151   :  { %v2046_v32 = vadd.f32 %v2898_v50, %v1273_v30  ;;  %v2047_v33 = vadd.f32 %v2887_v41, %v874_v31  ;;  %v1008_v34 = vpop.f32.mrf.mxu1  ;;  %v2613_v31 = vld [vmem:[%s3447_s0 + $0xb0] sm:$0xff] }
 0x152   :  { %v2048_v35 = vadd.f32 %v2889_v42, %v1008_v34 }
 0x153   :  { %v2202_v36 = vpack.c.bf16 %v2046_v32, %v2045_v29  ;;  %913 = vmatmul.bf16.gmra.mxu0 %v2610_v28 }
 0x154   :  { %v2203_v37 = vpack.c.bf16 %v2048_v35, %v2047_v33  ;;  %1047 = vmatmul.bf16.gmra.mxu1 %v2610_v28  ;;  %1181 = vmatmul.bf16.gmra.mxu2 %v2610_v28 }
 0x155   :  { %2302 = vst [vmem:[%s3449_s3 + $0x158] sm:$0xff] %v2202_v36  ;;  %1315 = vmatmul.bf16.gmra.mxu3 %v2610_v28 }
 0x156   :  { %2303 = vst [vmem:[%s3449_s3 + $0x160] sm:$0xff] %v2203_v37 }
 0x157   :  { %v1142_v38 = vpop.f32.mrf.mxu2 }
 0x158   :  { %v2049_v39 = vadd.f32 %v2896_v49, %v1142_v38  ;;  %v1276_v40 = vpop.f32.mrf.mxu3  ;;  %v876_v43 = vpop.f32.mrf.mxu0 }
 0x159   :  { %v2050_v44 = vadd.f32 %v2898_v50, %v1276_v40  ;;  %v2051_v45 = vadd.f32 %v2887_v41, %v876_v43  ;;  %v1010_v46 = vpop.f32.mrf.mxu1 }
 0x15a   :  { %v2052_v47 = vadd.f32 %v2889_v42, %v1010_v46 }
 0x15b   :  { %v2204_v48 = vpack.c.bf16 %v2050_v44, %v2049_v39 }
 0x15c   :  { %v2205_v51 = vpack.c.bf16 %v2052_v47, %v2051_v45 }
 0x15d   :  { %2304 = vst [vmem:[%s3449_s3 + $0x168] sm:$0xff] %v2204_v48 }
 0x15e   :  { %2305 = vst [vmem:[%s3449_s3 + $0x170] sm:$0xff] %v2205_v51 }
 0x15f   :  { %v1144_v52 = vpop.f32.mrf.mxu2 }
 0x160   :  { %v2053_v54 = vadd.f32 %v2896_v49, %v1144_v52  ;;  %v1278_v55 = vpop.f32.mrf.mxu3  ;;  %v879_v56 = vpop.f32.mrf.mxu0 }
 0x161   :  { %v2054_v57 = vadd.f32 %v2898_v50, %v1278_v55  ;;  %v2055_v58 = vadd.f32 %v2887_v41, %v879_v56  ;;  %v1013_v59 = vpop.f32.mrf.mxu1  ;;  %v2614_v56 = vld [vmem:[%s3447_s0 + $0xb8] sm:$0xff] }
 0x162   :  { %v2056_v60 = vadd.f32 %v2889_v42, %v1013_v59 }
 0x163   :  { %v2206_v61 = vpack.c.bf16 %v2054_v57, %v2053_v54  ;;  %918 = vmatmul.bf16.gmra.mxu0 %v2611_v53 }
 0x164   :  { %v2207_v62 = vpack.c.bf16 %v2056_v60, %v2055_v58  ;;  %1052 = vmatmul.bf16.gmra.mxu1 %v2611_v53  ;;  %1186 = vmatmul.bf16.gmra.mxu2 %v2611_v53 }
 0x165   :  { %2306 = vst [vmem:[%s3449_s3 + $0x178] sm:$0xff] %v2206_v61  ;;  %1320 = vmatmul.bf16.gmra.mxu3 %v2611_v53 }
 0x166   :  { %2307 = vst [vmem:[%s3449_s3 + $0x180] sm:$0xff] %v2207_v62 }
 0x167   :  { %v1147_v63 = vpop.f32.mrf.mxu2 }
 0x168   :  { %v2057_v0 = vadd.f32 %v2896_v49, %v1147_v63  ;;  %v1281_v1 = vpop.f32.mrf.mxu3  ;;  %v881_v2 = vpop.f32.mrf.mxu0 }
 0x169   :  { %v2058_v3 = vadd.f32 %v2898_v50, %v1281_v1  ;;  %v2059_v4 = vadd.f32 %v2887_v41, %v881_v2  ;;  %v1015_v5 = vpop.f32.mrf.mxu1 }
 0x16a   :  { %v2060_v6 = vadd.f32 %v2889_v42, %v1015_v5 }
 0x16b   :  { %v2208_v7 = vpack.c.bf16 %v2058_v3, %v2057_v0 }
 0x16c   :  { %v2209_v8 = vpack.c.bf16 %v2060_v6, %v2059_v4 }
 0x16d   :  { %2308 = vst [vmem:[%s3449_s3 + $0x188] sm:$0xff] %v2208_v7 }
 0x16e   :  { %2309 = vst [vmem:[%s3449_s3 + $0x190] sm:$0xff] %v2209_v8 }
 0x16f   :  { %v1149_v9 = vpop.f32.mrf.mxu2 }
 0x170   :  { %v2061_v11 = vadd.f32 %v2896_v49, %v1149_v9  ;;  %v1283_v12 = vpop.f32.mrf.mxu3  ;;  %v884_v13 = vpop.f32.mrf.mxu0 }
 0x171   :  { %v2062_v14 = vadd.f32 %v2898_v50, %v1283_v12  ;;  %v2063_v15 = vadd.f32 %v2887_v41, %v884_v13  ;;  %v1018_v16 = vpop.f32.mrf.mxu1  ;;  %v2615_v13 = vld [vmem:[%s3447_s0 + $0xc0] sm:$0xff] }
 0x172   :  { %v2064_v17 = vadd.f32 %v2889_v42, %v1018_v16 }
 0x173   :  { %v2210_v18 = vpack.c.bf16 %v2062_v14, %v2061_v11  ;;  %923 = vmatmul.bf16.gmra.mxu0 %v2612_v10 }
 0x174   :  { %v2211_v19 = vpack.c.bf16 %v2064_v17, %v2063_v15  ;;  %1057 = vmatmul.bf16.gmra.mxu1 %v2612_v10  ;;  %1191 = vmatmul.bf16.gmra.mxu2 %v2612_v10 }
 0x175   :  { %2310 = vst [vmem:[%s3449_s3 + $0x198] sm:$0xff] %v2210_v18  ;;  %1325 = vmatmul.bf16.gmra.mxu3 %v2612_v10 }
 0x176   :  { %2311 = vst [vmem:[%s3449_s3 + $0x1a0] sm:$0xff] %v2211_v19 }
 0x177   :  { %v1152_v20 = vpop.f32.mrf.mxu2 }
 0x178   :  { %v2065_v21 = vadd.f32 %v2896_v49, %v1152_v20  ;;  %v1286_v22 = vpop.f32.mrf.mxu3  ;;  %v886_v23 = vpop.f32.mrf.mxu0 }
 0x179   :  { %v2066_v24 = vadd.f32 %v2898_v50, %v1286_v22  ;;  %v2067_v25 = vadd.f32 %v2887_v41, %v886_v23  ;;  %v1020_v26 = vpop.f32.mrf.mxu1 }
 0x17a   :  { %v2068_v27 = vadd.f32 %v2889_v42, %v1020_v26 }
 0x17b   :  { %v2212_v28 = vpack.c.bf16 %v2066_v24, %v2065_v21 }
 0x17c   :  { %v2213_v29 = vpack.c.bf16 %v2068_v27, %v2067_v25 }
 0x17d   :  { %2312 = vst [vmem:[%s3449_s3 + $0x1a8] sm:$0xff] %v2212_v28 }
 0x17e   :  { %2313 = vst [vmem:[%s3449_s3 + $0x1b0] sm:$0xff] %v2213_v29 }
 0x17f   :  { %v1154_v30 = vpop.f32.mrf.mxu2 }
 0x180   :  { %v2069_v32 = vadd.f32 %v2896_v49, %v1154_v30  ;;  %v1288_v33 = vpop.f32.mrf.mxu3  ;;  %v889_v34 = vpop.f32.mrf.mxu0 }
 0x181   :  { %v2070_v35 = vadd.f32 %v2898_v50, %v1288_v33  ;;  %v2071_v36 = vadd.f32 %v2887_v41, %v889_v34  ;;  %v1023_v37 = vpop.f32.mrf.mxu1 }
 0x182   :  { %v2072_v38 = vadd.f32 %v2889_v42, %v1023_v37 }
 0x183   :  { %v2214_v39 = vpack.c.bf16 %v2070_v35, %v2069_v32  ;;  %928 = vmatmul.bf16.gmra.mxu0 %v2613_v31 }
 0x184   :  { %v2215_v40 = vpack.c.bf16 %v2072_v38, %v2071_v36  ;;  %1062 = vmatmul.bf16.gmra.mxu1 %v2613_v31  ;;  %1196 = vmatmul.bf16.gmra.mxu2 %v2613_v31 }
 0x185   :  { %2314 = vst [vmem:[%s3449_s3 + $0x1b8] sm:$0xff] %v2214_v39  ;;  %1330 = vmatmul.bf16.gmra.mxu3 %v2613_v31 }
 0x186   :  { %2315 = vst [vmem:[%s3449_s3 + $0x1c0] sm:$0xff] %v2215_v40 }
 0x187   :  { %v1157_v43 = vpop.f32.mrf.mxu2 }
 0x188   :  { %v2073_v44 = vadd.f32 %v2896_v49, %v1157_v43  ;;  %v1291_v45 = vpop.f32.mrf.mxu3  ;;  %v891_v46 = vpop.f32.mrf.mxu0 }
 0x189   :  { %v2074_v47 = vadd.f32 %v2898_v50, %v1291_v45  ;;  %v2075_v48 = vadd.f32 %v2887_v41, %v891_v46  ;;  %v1025_v51 = vpop.f32.mrf.mxu1 }
 0x18a   :  { %v2076_v52 = vadd.f32 %v2889_v42, %v1025_v51 }
 0x18b   :  { %v2216_v53 = vpack.c.bf16 %v2074_v47, %v2073_v44 }
 0x18c   :  { %v2217_v54 = vpack.c.bf16 %v2076_v52, %v2075_v48 }
 0x18d   :  { %2316 = vst [vmem:[%s3449_s3 + $0x1c8] sm:$0xff] %v2216_v53 }
 0x18e   :  { %2317 = vst [vmem:[%s3449_s3 + $0x1d0] sm:$0xff] %v2217_v54 }
 0x18f   :  { %v1159_v55 = vpop.f32.mrf.mxu2 }
 0x190   :  { %v2077_v57 = vadd.f32 %v2896_v49, %v1159_v55  ;;  %v1293_v58 = vpop.f32.mrf.mxu3  ;;  %v894_v59 = vpop.f32.mrf.mxu0 }
 0x191   :  { %v2078_v60 = vadd.f32 %v2898_v50, %v1293_v58  ;;  %v2079_v61 = vadd.f32 %v2887_v41, %v894_v59  ;;  %v1028_v62 = vpop.f32.mrf.mxu1 }
 0x192   :  { %v2080_v63 = vadd.f32 %v2889_v42, %v1028_v62 }
 0x193   :  { %v2218_v0 = vpack.c.bf16 %v2078_v60, %v2077_v57  ;;  %933 = vmatmul.bf16.gmra.mxu0 %v2614_v56 }
 0x194   :  { %v2219_v1 = vpack.c.bf16 %v2080_v63, %v2079_v61  ;;  %1067 = vmatmul.bf16.gmra.mxu1 %v2614_v56  ;;  %1201 = vmatmul.bf16.gmra.mxu2 %v2614_v56 }
 0x195   :  { %2318 = vst [vmem:[%s3449_s3 + $0x1d8] sm:$0xff] %v2218_v0  ;;  %1335 = vmatmul.bf16.gmra.mxu3 %v2614_v56 }
 0x196   :  { %2319 = vst [vmem:[%s3449_s3 + $0x1e0] sm:$0xff] %v2219_v1 }
 0x197   :  { %v1162_v2 = vpop.f32.mrf.mxu2 }
 0x198   :  { %v2081_v3 = vadd.f32 %v2896_v49, %v1162_v2  ;;  %v1296_v4 = vpop.f32.mrf.mxu3  ;;  %v896_v5 = vpop.f32.mrf.mxu0 }
 0x199   :  { %v2082_v6 = vadd.f32 %v2898_v50, %v1296_v4  ;;  %v2083_v7 = vadd.f32 %v2887_v41, %v896_v5  ;;  %v1030_v8 = vpop.f32.mrf.mxu1 }
 0x19a   :  { %v2084_v9 = vadd.f32 %v2889_v42, %v1030_v8 }
 0x19b   :  { %v2220_v10 = vpack.c.bf16 %v2082_v6, %v2081_v3 }
 0x19c   :  { %v2221_v11 = vpack.c.bf16 %v2084_v9, %v2083_v7 }
 0x19d   :  { %2320 = vst [vmem:[%s3449_s3 + $0x1e8] sm:$0xff] %v2220_v10 }
 0x19e   :  { %2321 = vst [vmem:[%s3449_s3 + $0x1f0] sm:$0xff] %v2221_v11 }
 0x19f   :  { %v1164_v12 = vpop.f32.mrf.mxu2 }
 0x1a0   :  { %v2085_v14 = vadd.f32 %v2896_v49, %v1164_v12  ;;  %v1298_v15 = vpop.f32.mrf.mxu3  ;;  %v899_v16 = vpop.f32.mrf.mxu0 }
 0x1a1   :  { %v2086_v17 = vadd.f32 %v2898_v50, %v1298_v15  ;;  %v2087_v18 = vadd.f32 %v2887_v41, %v899_v16  ;;  %v1033_v19 = vpop.f32.mrf.mxu1 }
 0x1a2   :  { %v2088_v20 = vadd.f32 %v2889_v42, %v1033_v19 }
 0x1a3   :  { %v2222_v21 = vpack.c.bf16 %v2086_v17, %v2085_v14  ;;  %938 = vmatmul.bf16.gmra.mxu0 %v2615_v13 }
 0x1a4   :  { %v2223_v22 = vpack.c.bf16 %v2088_v20, %v2087_v18  ;;  %1072 = vmatmul.bf16.gmra.mxu1 %v2615_v13  ;;  %1206 = vmatmul.bf16.gmra.mxu2 %v2615_v13 }
 0x1a5   :  { %2322 = vst [vmem:[%s3449_s3 + $0x1f8] sm:$0xff] %v2222_v21  ;;  %1340 = vmatmul.bf16.gmra.mxu3 %v2615_v13 }
 0x1a6   :  { %2323 = vst [vmem:[%s3449_s3 + $0x200] sm:$0xff] %v2223_v22 }
 0x1a7   :  { %v1167_v23 = vpop.f32.mrf.mxu2 }
 0x1a8   :  { %v2089_v24 = vadd.f32 %v2896_v49, %v1167_v23  ;;  %v1301_v25 = vpop.f32.mrf.mxu3  ;;  %v901_v26 = vpop.f32.mrf.mxu0 }
 0x1a9   :  { %v2090_v27 = vadd.f32 %v2898_v50, %v1301_v25  ;;  %v2091_v28 = vadd.f32 %v2887_v41, %v901_v26  ;;  %v1035_v29 = vpop.f32.mrf.mxu1 }
 0x1aa   :  { %v2092_v30 = vadd.f32 %v2889_v42, %v1035_v29 }
 0x1ab   :  { %v2224_v31 = vpack.c.bf16 %v2090_v27, %v2089_v24 }
 0x1ac   :  { %v2225_v32 = vpack.c.bf16 %v2092_v30, %v2091_v28 }
 0x1ad   :  { %2324 = vst [vmem:[%s3449_s3 + $0x208] sm:$0xff] %v2224_v31 }
 0x1ae   :  { %2325 = vst [vmem:[%s3449_s3 + $0x210] sm:$0xff] %v2225_v32 }
 0x1af   :  { %v1169_v33 = vpop.f32.mrf.mxu2 }
 0x1b0   :  { %v2093_v34 = vadd.f32 %v2896_v49, %v1169_v33  ;;  %v1303_v35 = vpop.f32.mrf.mxu3  ;;  %v904_v36 = vpop.f32.mrf.mxu0 }
 0x1b1   :  { %v2094_v37 = vadd.f32 %v2898_v50, %v1303_v35  ;;  %v2095_v38 = vadd.f32 %v2887_v41, %v904_v36  ;;  %v1038_v39 = vpop.f32.mrf.mxu1 }
 0x1b2   :  { %v2096_v40 = vadd.f32 %v2889_v42, %v1038_v39 }
 0x1b3   :  { %v2226_v43 = vpack.c.bf16 %v2094_v37, %v2093_v34 }
 0x1b4   :  { %v2227_v44 = vpack.c.bf16 %v2096_v40, %v2095_v38 }
 0x1b5   :  { %2326 = vst [vmem:[%s3449_s3 + $0x218] sm:$0xff] %v2226_v43 }
 0x1b6   :  { %2327 = vst [vmem:[%s3449_s3 + $0x220] sm:$0xff] %v2227_v44 }
 0x1b7   :  { %v1172_v45 = vpop.f32.mrf.mxu2 }
 0x1b8   :  { %v2097_v46 = vadd.f32 %v2896_v49, %v1172_v45  ;;  %v1306_v47 = vpop.f32.mrf.mxu3  ;;  %v906_v48 = vpop.f32.mrf.mxu0 }
 0x1b9   :  { %v2098_v51 = vadd.f32 %v2898_v50, %v1306_v47  ;;  %v2099_v52 = vadd.f32 %v2887_v41, %v906_v48  ;;  %v1040_v53 = vpop.f32.mrf.mxu1 }
 0x1ba   :  { %v2100_v54 = vadd.f32 %v2889_v42, %v1040_v53 }
 0x1bb   :  { %v2228_v55 = vpack.c.bf16 %v2098_v51, %v2097_v46 }
 0x1bc   :  { %v2229_v56 = vpack.c.bf16 %v2100_v54, %v2099_v52 }
 0x1bd   :  { %2328 = vst [vmem:[%s3449_s3 + $0x228] sm:$0xff] %v2228_v55 }
 0x1be   :  { %2329 = vst [vmem:[%s3449_s3 + $0x230] sm:$0xff] %v2229_v56 }
 0x1bf   :  { %v1174_v57 = vpop.f32.mrf.mxu2 }
 0x1c0   :  { %v2101_v58 = vadd.f32 %v2896_v49, %v1174_v57  ;;  %v1308_v59 = vpop.f32.mrf.mxu3  ;;  %v909_v60 = vpop.f32.mrf.mxu0 }
 0x1c1   :  { %v2102_v61 = vadd.f32 %v2898_v50, %v1308_v59  ;;  %v2103_v62 = vadd.f32 %v2887_v41, %v909_v60  ;;  %v1043_v63 = vpop.f32.mrf.mxu1 }
 0x1c2   :  { %v2104_v0 = vadd.f32 %v2889_v42, %v1043_v63 }
 0x1c3   :  { %v2230_v1 = vpack.c.bf16 %v2102_v61, %v2101_v58 }
 0x1c4   :  { %v2231_v2 = vpack.c.bf16 %v2104_v0, %v2103_v62 }
 0x1c5   :  { %2330 = vst [vmem:[%s3449_s3 + $0x238] sm:$0xff] %v2230_v1 }
 0x1c6   :  { %2331 = vst [vmem:[%s3449_s3 + $0x240] sm:$0xff] %v2231_v2 }
 0x1c7   :  { %v1177_v3 = vpop.f32.mrf.mxu2 }
 0x1c8   :  { %v2105_v4 = vadd.f32 %v2896_v49, %v1177_v3  ;;  %v1311_v5 = vpop.f32.mrf.mxu3  ;;  %v911_v6 = vpop.f32.mrf.mxu0 }
 0x1c9   :  { %v2106_v7 = vadd.f32 %v2898_v50, %v1311_v5  ;;  %v2107_v8 = vadd.f32 %v2887_v41, %v911_v6  ;;  %v1045_v9 = vpop.f32.mrf.mxu1 }
 0x1ca   :  { %v2108_v10 = vadd.f32 %v2889_v42, %v1045_v9 }
 0x1cb   :  { %v2232_v11 = vpack.c.bf16 %v2106_v7, %v2105_v4 }
 0x1cc   :  { %v2233_v12 = vpack.c.bf16 %v2108_v10, %v2107_v8 }
 0x1cd   :  { %2332 = vst [vmem:[%s3449_s3 + $0x248] sm:$0xff] %v2232_v11 }
 0x1ce   :  { %2333 = vst [vmem:[%s3449_s3 + $0x250] sm:$0xff] %v2233_v12 }
 0x1cf   :  { %v1179_v13 = vpop.f32.mrf.mxu2 }
 0x1d0   :  { %v2109_v14 = vadd.f32 %v2896_v49, %v1179_v13  ;;  %v1313_v15 = vpop.f32.mrf.mxu3  ;;  %v914_v16 = vpop.f32.mrf.mxu0 }
 0x1d1   :  { %v2110_v17 = vadd.f32 %v2898_v50, %v1313_v15  ;;  %v2111_v18 = vadd.f32 %v2887_v41, %v914_v16  ;;  %v1048_v19 = vpop.f32.mrf.mxu1 }
 0x1d2   :  { %v2112_v20 = vadd.f32 %v2889_v42, %v1048_v19 }
 0x1d3   :  { %v2234_v21 = vpack.c.bf16 %v2110_v17, %v2109_v14 }
 0x1d4   :  { %v2235_v22 = vpack.c.bf16 %v2112_v20, %v2111_v18 }
 0x1d5   :  { %2334 = vst [vmem:[%s3449_s3 + $0x258] sm:$0xff] %v2234_v21 }
 0x1d6   :  { %2335 = vst [vmem:[%s3449_s3 + $0x260] sm:$0xff] %v2235_v22 }
 0x1d7   :  { %v1182_v23 = vpop.f32.mrf.mxu2 }
 0x1d8   :  { %v2113_v24 = vadd.f32 %v2896_v49, %v1182_v23  ;;  %v1316_v25 = vpop.f32.mrf.mxu3  ;;  %v916_v26 = vpop.f32.mrf.mxu0 }
 0x1d9   :  { %v2114_v27 = vadd.f32 %v2898_v50, %v1316_v25  ;;  %v2115_v28 = vadd.f32 %v2887_v41, %v916_v26  ;;  %v1050_v29 = vpop.f32.mrf.mxu1 }
 0x1da   :  { %v2116_v30 = vadd.f32 %v2889_v42, %v1050_v29 }
 0x1db   :  { %v2236_v31 = vpack.c.bf16 %v2114_v27, %v2113_v24 }
 0x1dc   :  { %v2237_v32 = vpack.c.bf16 %v2116_v30, %v2115_v28 }
 0x1dd   :  { %2336 = vst [vmem:[%s3449_s3 + $0x268] sm:$0xff] %v2236_v31 }
 0x1de   :  { %2337 = vst [vmem:[%s3449_s3 + $0x270] sm:$0xff] %v2237_v32 }
 0x1df   :  { %v1184_v33 = vpop.f32.mrf.mxu2 }
 0x1e0   :  { %v2117_v34 = vadd.f32 %v2896_v49, %v1184_v33  ;;  %v1318_v35 = vpop.f32.mrf.mxu3  ;;  %v919_v36 = vpop.f32.mrf.mxu0 }
 0x1e1   :  { %v2118_v37 = vadd.f32 %v2898_v50, %v1318_v35  ;;  %v2119_v38 = vadd.f32 %v2887_v41, %v919_v36  ;;  %v1053_v39 = vpop.f32.mrf.mxu1 }
 0x1e2   :  { %v2120_v40 = vadd.f32 %v2889_v42, %v1053_v39 }
 0x1e3   :  { %v2238_v43 = vpack.c.bf16 %v2118_v37, %v2117_v34 }
 0x1e4   :  { %v2239_v44 = vpack.c.bf16 %v2120_v40, %v2119_v38 }
 0x1e5   :  { %2338 = vst [vmem:[%s3449_s3 + $0x278] sm:$0xff] %v2238_v43 }
 0x1e6   :  { %2339 = vst [vmem:[%s3449_s3 + $0x280] sm:$0xff] %v2239_v44 }
 0x1e7   :  { %v1187_v45 = vpop.f32.mrf.mxu2 }
 0x1e8   :  { %v2121_v46 = vadd.f32 %v2896_v49, %v1187_v45  ;;  %v1321_v47 = vpop.f32.mrf.mxu3  ;;  %v921_v48 = vpop.f32.mrf.mxu0 }
 0x1e9   :  { %v2122_v51 = vadd.f32 %v2898_v50, %v1321_v47  ;;  %v2123_v52 = vadd.f32 %v2887_v41, %v921_v48  ;;  %v1055_v53 = vpop.f32.mrf.mxu1 }
 0x1ea   :  { %v2124_v54 = vadd.f32 %v2889_v42, %v1055_v53 }
 0x1eb   :  { %v2240_v55 = vpack.c.bf16 %v2122_v51, %v2121_v46 }
 0x1ec   :  { %v2241_v56 = vpack.c.bf16 %v2124_v54, %v2123_v52 }
 0x1ed   :  { %2340 = vst [vmem:[%s3449_s3 + $0x288] sm:$0xff] %v2240_v55 }
 0x1ee   :  { %2341 = vst [vmem:[%s3449_s3 + $0x290] sm:$0xff] %v2241_v56 }
 0x1ef   :  { %v1189_v57 = vpop.f32.mrf.mxu2 }
 0x1f0   :  { %v2125_v58 = vadd.f32 %v2896_v49, %v1189_v57  ;;  %v1323_v59 = vpop.f32.mrf.mxu3  ;;  %v924_v60 = vpop.f32.mrf.mxu0 }
 0x1f1   :  { %v2126_v61 = vadd.f32 %v2898_v50, %v1323_v59  ;;  %v2127_v62 = vadd.f32 %v2887_v41, %v924_v60  ;;  %v1058_v63 = vpop.f32.mrf.mxu1 }
 0x1f2   :  { %v2128_v0 = vadd.f32 %v2889_v42, %v1058_v63 }
 0x1f3   :  { %v2242_v1 = vpack.c.bf16 %v2126_v61, %v2125_v58 }
 0x1f4   :  { %v2243_v2 = vpack.c.bf16 %v2128_v0, %v2127_v62 }
 0x1f5   :  { %2342 = vst [vmem:[%s3449_s3 + $0x298] sm:$0xff] %v2242_v1 }
 0x1f6   :  { %2343 = vst [vmem:[%s3449_s3 + $0x2a0] sm:$0xff] %v2243_v2 }
 0x1f7   :  { %v1192_v3 = vpop.f32.mrf.mxu2 }
 0x1f8   :  { %v2129_v4 = vadd.f32 %v2896_v49, %v1192_v3  ;;  %v1326_v5 = vpop.f32.mrf.mxu3  ;;  %v926_v6 = vpop.f32.mrf.mxu0 }
 0x1f9   :  { %v2130_v7 = vadd.f32 %v2898_v50, %v1326_v5  ;;  %v2131_v8 = vadd.f32 %v2887_v41, %v926_v6  ;;  %v1060_v9 = vpop.f32.mrf.mxu1 }
 0x1fa   :  { %v2132_v10 = vadd.f32 %v2889_v42, %v1060_v9 }
 0x1fb   :  { %v2244_v11 = vpack.c.bf16 %v2130_v7, %v2129_v4 }
 0x1fc   :  { %v2245_v12 = vpack.c.bf16 %v2132_v10, %v2131_v8 }
 0x1fd   :  { %2344 = vst [vmem:[%s3449_s3 + $0x2a8] sm:$0xff] %v2244_v11 }
 0x1fe   :  { %2345 = vst [vmem:[%s3449_s3 + $0x2b0] sm:$0xff] %v2245_v12 }
 0x1ff   :  { %v1194_v13 = vpop.f32.mrf.mxu2 }
 0x200   :  { %v2133_v14 = vadd.f32 %v2896_v49, %v1194_v13  ;;  %v1328_v15 = vpop.f32.mrf.mxu3  ;;  %v929_v16 = vpop.f32.mrf.mxu0 }
 0x201   :  { %v2134_v17 = vadd.f32 %v2898_v50, %v1328_v15  ;;  %v2135_v18 = vadd.f32 %v2887_v41, %v929_v16  ;;  %v1063_v19 = vpop.f32.mrf.mxu1 }
 0x202   :  { %v2136_v20 = vadd.f32 %v2889_v42, %v1063_v19 }
 0x203   :  { %v2246_v21 = vpack.c.bf16 %v2134_v17, %v2133_v14 }
 0x204   :  { %v2247_v22 = vpack.c.bf16 %v2136_v20, %v2135_v18 }
 0x205   :  { %2346 = vst [vmem:[%s3449_s3 + $0x2b8] sm:$0xff] %v2246_v21 }
 0x206   :  { %2347 = vst [vmem:[%s3449_s3 + $0x2c0] sm:$0xff] %v2247_v22 }
 0x207   :  { %v1197_v23 = vpop.f32.mrf.mxu2 }
 0x208   :  { %v2137_v24 = vadd.f32 %v2896_v49, %v1197_v23  ;;  %v1331_v25 = vpop.f32.mrf.mxu3  ;;  %v931_v26 = vpop.f32.mrf.mxu0 }
 0x209   :  { %v2138_v27 = vadd.f32 %v2898_v50, %v1331_v25  ;;  %v2139_v28 = vadd.f32 %v2887_v41, %v931_v26  ;;  %v1065_v29 = vpop.f32.mrf.mxu1 }
 0x20a   :  { %v2140_v30 = vadd.f32 %v2889_v42, %v1065_v29 }
 0x20b   :  { %v2248_v31 = vpack.c.bf16 %v2138_v27, %v2137_v24 }
 0x20c   :  { %v2249_v32 = vpack.c.bf16 %v2140_v30, %v2139_v28 }
 0x20d   :  { %2348 = vst [vmem:[%s3449_s3 + $0x2c8] sm:$0xff] %v2248_v31 }
 0x20e   :  { %2349 = vst [vmem:[%s3449_s3 + $0x2d0] sm:$0xff] %v2249_v32 }
 0x20f   :  { %v1199_v33 = vpop.f32.mrf.mxu2 }
 0x210   :  { %v2141_v34 = vadd.f32 %v2896_v49, %v1199_v33  ;;  %v1333_v35 = vpop.f32.mrf.mxu3  ;;  %v934_v36 = vpop.f32.mrf.mxu0 }
 0x211   :  { %v2142_v37 = vadd.f32 %v2898_v50, %v1333_v35  ;;  %v2143_v38 = vadd.f32 %v2887_v41, %v934_v36  ;;  %v1068_v39 = vpop.f32.mrf.mxu1 }
 0x212   :  { %v2144_v40 = vadd.f32 %v2889_v42, %v1068_v39 }
 0x213   :  { %v2250_v43 = vpack.c.bf16 %v2142_v37, %v2141_v34 }
 0x214   :  { %v2251_v44 = vpack.c.bf16 %v2144_v40, %v2143_v38 }
 0x215   :  { %2350 = vst [vmem:[%s3449_s3 + $0x2d8] sm:$0xff] %v2250_v43 }
 0x216   :  { %2351 = vst [vmem:[%s3449_s3 + $0x2e0] sm:$0xff] %v2251_v44 }
 0x217   :  { %v1202_v45 = vpop.f32.mrf.mxu2 }
 0x218   :  { %v2145_v46 = vadd.f32 %v2896_v49, %v1202_v45  ;;  %v1336_v47 = vpop.f32.mrf.mxu3  ;;  %v936_v48 = vpop.f32.mrf.mxu0 }
 0x219   :  { %v2146_v51 = vadd.f32 %v2898_v50, %v1336_v47  ;;  %v2147_v52 = vadd.f32 %v2887_v41, %v936_v48  ;;  %v1070_v53 = vpop.f32.mrf.mxu1 }
 0x21a   :  { %v2148_v54 = vadd.f32 %v2889_v42, %v1070_v53 }
 0x21b   :  { %v2252_v55 = vpack.c.bf16 %v2146_v51, %v2145_v46 }
 0x21c   :  { %v2253_v56 = vpack.c.bf16 %v2148_v54, %v2147_v52 }
 0x21d   :  { %2352 = vst [vmem:[%s3449_s3 + $0x2e8] sm:$0xff] %v2252_v55 }
 0x21e   :  { %2353 = vst [vmem:[%s3449_s3 + $0x2f0] sm:$0xff] %v2253_v56 }
 0x21f   :  { %v1204_v57 = vpop.f32.mrf.mxu2 }
 0x220   :  { %v2149_v58 = vadd.f32 %v2896_v49, %v1204_v57  ;;  %v1338_v59 = vpop.f32.mrf.mxu3  ;;  %v939_v60 = vpop.f32.mrf.mxu0 }
 0x221   :  { %v2150_v61 = vadd.f32 %v2898_v50, %v1338_v59  ;;  %v2151_v62 = vadd.f32 %v2887_v41, %v939_v60  ;;  %v1073_v63 = vpop.f32.mrf.mxu1 }
 0x222   :  { %v2152_v0 = vadd.f32 %v2889_v42, %v1073_v63 }
 0x223   :  { %v2254_v1 = vpack.c.bf16 %v2150_v61, %v2149_v58 }
 0x224   :  { %v2255_v2 = vpack.c.bf16 %v2152_v0, %v2151_v62 }
 0x225   :  { %2354 = vst [vmem:[%s3449_s3 + $0x2f8] sm:$0xff] %v2254_v1 }
 0x226   :  { %2355 = vst [vmem:[%s3449_s3 + $0x300] sm:$0xff] %v2255_v2 }
 0x227   :  { %v1207_v3 = vpop.f32.mrf.mxu2 }
 0x228   :  { %v2153_v4 = vadd.f32 %v2896_v49, %v1207_v3  ;;  %v1341_v5 = vpop.f32.mrf.mxu3  ;;  %v941_v6 = vpop.f32.mrf.mxu0 }
 0x229   :  { %v2154_v7 = vadd.f32 %v2898_v50, %v1341_v5  ;;  %v2155_v8 = vadd.f32 %v2887_v41, %v941_v6  ;;  %v1075_v9 = vpop.f32.mrf.mxu1 }
 0x22a   :  { %v2156_v10 = vadd.f32 %v2889_v42, %v1075_v9 }
 0x22b   :  { %v2256_v11 = vpack.c.bf16 %v2154_v7, %v2153_v4 }
 0x22c   :  { %v2257_v12 = vpack.c.bf16 %v2156_v10, %v2155_v8 }
 0x22d   :  { %2356 = vst [vmem:[%s3449_s3 + $0x308] sm:$0xff] %v2256_v11 }
 0x22e   :  { %2357 = vst [vmem:[%s3449_s3 + $0x310] sm:$0xff] %v2257_v12 }
 0x22f   :  { %v1209_v13 = vpop.f32.mrf.mxu2 }
 0x230   :  { %v2157_v14 = vadd.f32 %v2896_v49, %v1209_v13  ;;  %v1343_v15 = vpop.f32.mrf.mxu3 }
 0x231   :  { %v2158_v16 = vadd.f32 %v2898_v50, %v1343_v15 }
 0x233   :  { %v2258_v41 = vpack.c.bf16 %v2158_v16, %v2157_v14 }
 0x235   :  { %2358 = vst [vmem:[%s3449_s3 + $0x318] sm:$0xff] %v2258_v41 }

// kernel: vit_forward.13
= control target key start
LH: loop header
LB: loop body
LE: loop exit
PB: predicated region body
PF: predicated region fallthrough
CT: control target
= control target key end

     0   :  { %s1624_s12 = smov 0   ;;  %s1626_s13 = smov 0   ;;  %s1857_s0 = inlined_call_operand.vmem [shape: bf16[2048,128], index: 0, kind: input, shape index: {}]   ;;  %s1858_s1 = inlined_call_operand.vmem [shape: bf16[128,128], index: 1, kind: input, shape index: {}]   ;;  %s1859_s2 = inlined_call_operand.vmem [shape: f32[1,128], index: 2, kind: input, shape index: {}]   ;;  %s1860_s3 = inlined_call_operand.vmem [shape: f32[2048,128], index: 3, kind: output, shape index: {}]  }
   0x1   :  { %s1628_s14 = smov 0  }
   0x2 LB: > { %s32_s15 = sadd.s32 1, %s1598_s13  ;;  %p1324_p0 = scmp.ge.s32.totalorder %s1602_s14, 1  ;;  %s1602_s14 = sphi %s1628_s14, %s13_s14   ;;  %s1598_s13 = sphi %s1626_s13, %s1862_s13   ;;  %s1594_s12 = sphi %s1624_s12, %s1861_s12  }
   0x3   : > { %p34_p1 = scmp.ge.s32.totalorder %s32_s15, 4  ;;  %p188_p2 = scmp.lt.s32.totalorder %s1602_s14, 5 }
   0x5   : > { %s1864_s15 = smov (%p34_p1, %s32_s15), 0  ;;  %p189_p3 = pnand %p1324_p0, %p188_p2 }
   0x6   : > { %s1325_s24 = sshll.u32 (!%p189_p3), %s1594_s12, 6 }
   0x7   : > { %192 = sbr.rel (%p189_p3) target bundleno = 301 (0x12d), region = 32  ;;  %p230_p4 = scmp.lt.s32.totalorder (!%p189_p3), %s1325_s24, 255 }
   0xc   : > { %v1530_v0 = vld [vmem:[%s1858_s1 + $0x38] sm:$0xff]  ;;  %v1529_v1 = vld [vmem:[%s1858_s1 + $0x30] sm:$0xff]  ;;  %v1528_v2 = vld [vmem:[%s1858_s1 + $0x28] sm:$0xff]  ;;  %s1866_s24 = smov (!%p230_p4, %s1325_s24), 255 }
   0xd   : > { %711 = vmatpush.bf16.msra.mxu0 %v1530_v0  ;;  %1531 = vmatpush.bf16.msra.mxu1 %v1530_v0  ;;  %v1527_v3 = vld [vmem:[%s1858_s1 + $0x20] sm:$0xff]  ;;  %v1526_v4 = vld [vmem:[%s1858_s1 + $0x18] sm:$0xff]  ;;  %v1525_v5 = vld [vmem:[%s1858_s1 + $0x10] sm:$0xff]  ;;  %s1326_s4 = sshll.u32 %s1866_s24, 2  ;;  %s1328_s10 = sshll.u32 %s1866_s24, 3 }
   0xe   : > { %1532 = vmatpush.bf16.msra.mxu2 %v1530_v0  ;;  %1533 = vmatpush.bf16.msra.mxu3 %v1530_v0  ;;  %v1524_v6 = vld [vmem:[%s1858_s1 + $0x8] sm:$0xff]  ;;  %v1523_v7 = vld [vmem:[%s1858_s1] sm:$0xff]  ;;  %s1675_s9 = scalar_lea.vmem %s1857_s0, %s1326_s4  ;;  %s1718_s18 = scalar_lea.vmem %s1860_s3, %s1328_s10 }
   0xf   : > { %v1491_v8 = vld [vmem:[%s1675_s9] sm:$0xff]  ;;  %v1492_v12 = vld [vmem:[%s1675_s9 + $0x8] sm:$0xff]  ;;  %v1493_v16 = vld [vmem:[%s1675_s9 + $0x10] sm:$0xff] }
  0x10   : > { %v1499_v9 = vld [vmem:[%s1675_s9 + $0x40] sm:$0xff]  ;;  %v1500_v13 = vld [vmem:[%s1675_s9 + $0x48] sm:$0xff]  ;;  %v1501_v17 = vld [vmem:[%s1675_s9 + $0x50] sm:$0xff] }
  0x11   : > { %712 = vmatpush.bf16.msra.mxu0 %v1529_v1  ;;  %1534 = vmatpush.bf16.msra.mxu1 %v1529_v1  ;;  %v1507_v10 = vld [vmem:[%s1675_s9 + $0x80] sm:$0xff]  ;;  %v1508_v14 = vld [vmem:[%s1675_s9 + $0x88] sm:$0xff]  ;;  %v1509_v18 = vld [vmem:[%s1675_s9 + $0x90] sm:$0xff] }
  0x12   : > { %1535 = vmatpush.bf16.msra.mxu2 %v1529_v1  ;;  %1536 = vmatpush.bf16.msra.mxu3 %v1529_v1  ;;  %v1515_v11 = vld [vmem:[%s1675_s9 + $0xc0] sm:$0xff]  ;;  %v1516_v15 = vld [vmem:[%s1675_s9 + $0xc8] sm:$0xff]  ;;  %v1517_v19 = vld [vmem:[%s1675_s9 + $0xd0] sm:$0xff] }
  0x13   : > { %v1494_v20 = vld [vmem:[%s1675_s9 + $0x18] sm:$0xff]  ;;  %v1495_v24 = vld [vmem:[%s1675_s9 + $0x20] sm:$0xff]  ;;  %v1496_v28 = vld [vmem:[%s1675_s9 + $0x28] sm:$0xff] }
  0x14   : > { %v1502_v21 = vld [vmem:[%s1675_s9 + $0x58] sm:$0xff]  ;;  %v1503_v25 = vld [vmem:[%s1675_s9 + $0x60] sm:$0xff]  ;;  %v1504_v29 = vld [vmem:[%s1675_s9 + $0x68] sm:$0xff] }
  0x15   : > { %713 = vmatpush.bf16.msra.mxu0 %v1528_v2  ;;  %1537 = vmatpush.bf16.msra.mxu1 %v1528_v2  ;;  %v1510_v22 = vld [vmem:[%s1675_s9 + $0x98] sm:$0xff]  ;;  %v1511_v26 = vld [vmem:[%s1675_s9 + $0xa0] sm:$0xff]  ;;  %v1512_v30 = vld [vmem:[%s1675_s9 + $0xa8] sm:$0xff] }
  0x16   : > { %1538 = vmatpush.bf16.msra.mxu2 %v1528_v2  ;;  %1539 = vmatpush.bf16.msra.mxu3 %v1528_v2  ;;  %v1518_v23 = vld [vmem:[%s1675_s9 + $0xd8] sm:$0xff]  ;;  %v1519_v27 = vld [vmem:[%s1675_s9 + $0xe0] sm:$0xff]  ;;  %v1520_v31 = vld [vmem:[%s1675_s9 + $0xe8] sm:$0xff] }
  0x17   : > { %v1497_v32 = vld [vmem:[%s1675_s9 + $0x30] sm:$0xff]  ;;  %v1498_v36 = vld [vmem:[%s1675_s9 + $0x38] sm:$0xff]  ;;  %v1713_v40 = vld [vmem:[%s1859_s2] ss:$0 sm:$0xff] }
  0x18   : > { %v1505_v33 = vld [vmem:[%s1675_s9 + $0x70] sm:$0xff]  ;;  %v1506_v37 = vld [vmem:[%s1675_s9 + $0x78] sm:$0xff] }
  0x19   : > { %714 = vmatpush.bf16.msra.mxu0 %v1527_v3  ;;  %1540 = vmatpush.bf16.msra.mxu1 %v1527_v3  ;;  %v1513_v34 = vld [vmem:[%s1675_s9 + $0xb0] sm:$0xff]  ;;  %v1514_v38 = vld [vmem:[%s1675_s9 + $0xb8] sm:$0xff] }
  0x1a   : > { %1541 = vmatpush.bf16.msra.mxu2 %v1527_v3  ;;  %1542 = vmatpush.bf16.msra.mxu3 %v1527_v3  ;;  %v1521_v35 = vld [vmem:[%s1675_s9 + $0xf0] sm:$0xff]  ;;  %v1522_v39 = vld [vmem:[%s1675_s9 + $0xf8] sm:$0xff] }
  0x1d   : > { %715 = vmatpush.bf16.msra.mxu0 %v1526_v4  ;;  %1543 = vmatpush.bf16.msra.mxu1 %v1526_v4 }
  0x1e   : > { %1544 = vmatpush.bf16.msra.mxu2 %v1526_v4  ;;  %1545 = vmatpush.bf16.msra.mxu3 %v1526_v4 }
  0x21   : > { %716 = vmatpush.bf16.msra.mxu0 %v1525_v5  ;;  %1546 = vmatpush.bf16.msra.mxu1 %v1525_v5 }
  0x22   : > { %1547 = vmatpush.bf16.msra.mxu2 %v1525_v5  ;;  %1548 = vmatpush.bf16.msra.mxu3 %v1525_v5 }
  0x25   : > { %717 = vmatpush.bf16.msra.mxu0 %v1524_v6  ;;  %1549 = vmatpush.bf16.msra.mxu1 %v1524_v6 }
  0x26   : > { %1550 = vmatpush.bf16.msra.mxu2 %v1524_v6  ;;  %1551 = vmatpush.bf16.msra.mxu3 %v1524_v6 }
  0x29   : > { %718 = vmatpush.bf16.msra.mxu0 %v1523_v7  ;;  %1552 = vmatpush.bf16.msra.mxu1 %v1523_v7 }
  0x2a   : > { %1553 = vmatpush.bf16.msra.mxu2 %v1523_v7  ;;  %1554 = vmatpush.bf16.msra.mxu3 %v1523_v7 }
  0x2c   : > { %719 = vmatmul.bf16.vlgmr.msra.gmra.mxu0 %v1491_v8  ;;  %759 = vmatmul.bf16.vlgmr.msra.gmra.mxu1 %v1499_v9 }
  0x2d   : > { %799 = vmatmul.bf16.vlgmr.msra.gmra.mxu2 %v1507_v10  ;;  %839 = vmatmul.bf16.vlgmr.msra.gmra.mxu3 %v1515_v11 }
  0x3c   : > { %724 = vmatmul.bf16.gmra.mxu0 %v1492_v12  ;;  %764 = vmatmul.bf16.gmra.mxu1 %v1500_v13 }
  0x3d   : > { %804 = vmatmul.bf16.gmra.mxu2 %v1508_v14  ;;  %844 = vmatmul.bf16.gmra.mxu3 %v1516_v15 }
  0x4c   : > { %729 = vmatmul.bf16.gmra.mxu0 %v1493_v16  ;;  %769 = vmatmul.bf16.gmra.mxu1 %v1501_v17 }
  0x4d   : > { %809 = vmatmul.bf16.gmra.mxu2 %v1509_v18  ;;  %849 = vmatmul.bf16.gmra.mxu3 %v1517_v19 }
  0x5c   : > { %734 = vmatmul.bf16.gmra.mxu0 %v1494_v20  ;;  %774 = vmatmul.bf16.gmra.mxu1 %v1502_v21 }
  0x5d   : > { %814 = vmatmul.bf16.gmra.mxu2 %v1510_v22  ;;  %854 = vmatmul.bf16.gmra.mxu3 %v1518_v23 }
  0x6c   : > { %739 = vmatmul.bf16.gmra.mxu0 %v1495_v24  ;;  %779 = vmatmul.bf16.gmra.mxu1 %v1503_v25 }
  0x6d   : > { %819 = vmatmul.bf16.gmra.mxu2 %v1511_v26  ;;  %859 = vmatmul.bf16.gmra.mxu3 %v1519_v27 }
  0x7c   : > { %744 = vmatmul.bf16.gmra.mxu0 %v1496_v28  ;;  %784 = vmatmul.bf16.gmra.mxu1 %v1504_v29 }
  0x7d   : > { %824 = vmatmul.bf16.gmra.mxu2 %v1512_v30  ;;  %864 = vmatmul.bf16.gmra.mxu3 %v1520_v31 }
  0x8c   : > { %749 = vmatmul.bf16.gmra.mxu0 %v1497_v32  ;;  %789 = vmatmul.bf16.gmra.mxu1 %v1505_v33 }
  0x8d   : > { %829 = vmatmul.bf16.gmra.mxu2 %v1513_v34  ;;  %869 = vmatmul.bf16.gmra.mxu3 %v1521_v35 }
  0x9c   : > { %754 = vmatmul.bf16.gmra.mxu0 %v1498_v36  ;;  %794 = vmatmul.bf16.gmra.mxu1 %v1506_v37 }
  0x9d   : > { %834 = vmatmul.bf16.gmra.mxu2 %v1514_v38  ;;  %874 = vmatmul.bf16.gmra.mxu3 %v1522_v39 }
  0xa9   : > { %v720_v41 = vpop.f32.mrf.mxu0  ;;  %v760_v42 = vpop.f32.mrf.mxu1 }
  0xaa   : > { %v1079_v43 = vadd.f32 %v1713_v40, %v720_v41  ;;  %v1095_v44 = vadd.f32 %v1713_v40, %v760_v42 }
  0xac   : > { %1143 = vst [vmem:[%s1718_s18] sm:$0xff] %v1079_v43 }
  0xad   : > { %1159 = vst [vmem:[%s1718_s18 + $0x80] sm:$0xff] %v1095_v44 }
  0xb0   : > { %v800_v45 = vpop.f32.mrf.mxu2  ;;  %v840_v46 = vpop.f32.mrf.mxu3 }
  0xb1   : > { %v1111_v47 = vadd.f32 %v1713_v40, %v800_v45  ;;  %v1127_v48 = vadd.f32 %v1713_v40, %v840_v46  ;;  %v722_v49 = vpop.f32.mrf.mxu0  ;;  %v762_v50 = vpop.f32.mrf.mxu1 }
  0xb2   : > { %v1080_v51 = vadd.f32 %v1713_v40, %v722_v49  ;;  %v1096_v52 = vadd.f32 %v1713_v40, %v762_v50 }
  0xb3   : > { %1175 = vst [vmem:[%s1718_s18 + $0x100] sm:$0xff] %v1111_v47 }
  0xb4   : > { %1191 = vst [vmem:[%s1718_s18 + $0x180] sm:$0xff] %v1127_v48 }
  0xb5   : > { %1144 = vst [vmem:[%s1718_s18 + $0x8] sm:$0xff] %v1080_v51 }
  0xb6   : > { %1160 = vst [vmem:[%s1718_s18 + $0x88] sm:$0xff] %v1096_v52 }
  0xb8   : > { %v802_v53 = vpop.f32.mrf.mxu2  ;;  %v842_v54 = vpop.f32.mrf.mxu3 }
  0xb9   : > { %v1112_v55 = vadd.f32 %v1713_v40, %v802_v53  ;;  %v1128_v56 = vadd.f32 %v1713_v40, %v842_v54  ;;  %v725_v57 = vpop.f32.mrf.mxu0  ;;  %v765_v58 = vpop.f32.mrf.mxu1 }
  0xba   : > { %v1081_v59 = vadd.f32 %v1713_v40, %v725_v57  ;;  %v1097_v60 = vadd.f32 %v1713_v40, %v765_v58 }
  0xbb   : > { %1176 = vst [vmem:[%s1718_s18 + $0x108] sm:$0xff] %v1112_v55 }
  0xbc   : > { %1192 = vst [vmem:[%s1718_s18 + $0x188] sm:$0xff] %v1128_v56 }
  0xbd   : > { %1145 = vst [vmem:[%s1718_s18 + $0x10] sm:$0xff] %v1081_v59 }
  0xbe   : > { %1161 = vst [vmem:[%s1718_s18 + $0x90] sm:$0xff] %v1097_v60 }
  0xc0   : > { %v805_v61 = vpop.f32.mrf.mxu2  ;;  %v845_v62 = vpop.f32.mrf.mxu3 }
  0xc1   : > { %v1113_v63 = vadd.f32 %v1713_v40, %v805_v61  ;;  %v1129_v0 = vadd.f32 %v1713_v40, %v845_v62  ;;  %v727_v1 = vpop.f32.mrf.mxu0  ;;  %v767_v2 = vpop.f32.mrf.mxu1 }
  0xc2   : > { %v1082_v3 = vadd.f32 %v1713_v40, %v727_v1  ;;  %v1098_v4 = vadd.f32 %v1713_v40, %v767_v2 }
  0xc3   : > { %1177 = vst [vmem:[%s1718_s18 + $0x110] sm:$0xff] %v1113_v63 }
  0xc4   : > { %1193 = vst [vmem:[%s1718_s18 + $0x190] sm:$0xff] %v1129_v0 }
  0xc5   : > { %1146 = vst [vmem:[%s1718_s18 + $0x18] sm:$0xff] %v1082_v3 }
  0xc6   : > { %1162 = vst [vmem:[%s1718_s18 + $0x98] sm:$0xff] %v1098_v4 }
  0xc8   : > { %v807_v5 = vpop.f32.mrf.mxu2  ;;  %v847_v6 = vpop.f32.mrf.mxu3 }
  0xc9   : > { %v1114_v7 = vadd.f32 %v1713_v40, %v807_v5  ;;  %v1130_v8 = vadd.f32 %v1713_v40, %v847_v6  ;;  %v730_v9 = vpop.f32.mrf.mxu0  ;;  %v770_v10 = vpop.f32.mrf.mxu1 }
  0xca   : > { %v1083_v11 = vadd.f32 %v1713_v40, %v730_v9  ;;  %v1099_v12 = vadd.f32 %v1713_v40, %v770_v10 }
  0xcb   : > { %1178 = vst [vmem:[%s1718_s18 + $0x118] sm:$0xff] %v1114_v7 }
  0xcc   : > { %1194 = vst [vmem:[%s1718_s18 + $0x198] sm:$0xff] %v1130_v8 }
  0xcd   : > { %1147 = vst [vmem:[%s1718_s18 + $0x20] sm:$0xff] %v1083_v11 }
  0xce   : > { %1163 = vst [vmem:[%s1718_s18 + $0xa0] sm:$0xff] %v1099_v12 }
  0xd0   : > { %v810_v13 = vpop.f32.mrf.mxu2  ;;  %v850_v14 = vpop.f32.mrf.mxu3 }
  0xd1   : > { %v1115_v15 = vadd.f32 %v1713_v40, %v810_v13  ;;  %v1131_v16 = vadd.f32 %v1713_v40, %v850_v14  ;;  %v732_v17 = vpop.f32.mrf.mxu0  ;;  %v772_v18 = vpop.f32.mrf.mxu1 }
  0xd2   : > { %v1084_v19 = vadd.f32 %v1713_v40, %v732_v17  ;;  %v1100_v20 = vadd.f32 %v1713_v40, %v772_v18 }
  0xd3   : > { %1179 = vst [vmem:[%s1718_s18 + $0x120] sm:$0xff] %v1115_v15 }
  0xd4   : > { %1195 = vst [vmem:[%s1718_s18 + $0x1a0] sm:$0xff] %v1131_v16 }
  0xd5   : > { %1148 = vst [vmem:[%s1718_s18 + $0x28] sm:$0xff] %v1084_v19 }
  0xd6   : > { %1164 = vst [vmem:[%s1718_s18 + $0xa8] sm:$0xff] %v1100_v20 }
  0xd8   : > { %v812_v21 = vpop.f32.mrf.mxu2  ;;  %v852_v22 = vpop.f32.mrf.mxu3 }
  0xd9   : > { %v1116_v23 = vadd.f32 %v1713_v40, %v812_v21  ;;  %v1132_v24 = vadd.f32 %v1713_v40, %v852_v22  ;;  %v735_v25 = vpop.f32.mrf.mxu0  ;;  %v775_v26 = vpop.f32.mrf.mxu1 }
  0xda   : > { %v1085_v27 = vadd.f32 %v1713_v40, %v735_v25  ;;  %v1101_v28 = vadd.f32 %v1713_v40, %v775_v26 }
  0xdb   : > { %1180 = vst [vmem:[%s1718_s18 + $0x128] sm:$0xff] %v1116_v23 }
  0xdc   : > { %1196 = vst [vmem:[%s1718_s18 + $0x1a8] sm:$0xff] %v1132_v24 }
  0xdd   : > { %1149 = vst [vmem:[%s1718_s18 + $0x30] sm:$0xff] %v1085_v27 }
  0xde   : > { %1165 = vst [vmem:[%s1718_s18 + $0xb0] sm:$0xff] %v1101_v28 }
  0xe0   : > { %v815_v29 = vpop.f32.mrf.mxu2  ;;  %v855_v30 = vpop.f32.mrf.mxu3 }
  0xe1   : > { %v1117_v31 = vadd.f32 %v1713_v40, %v815_v29  ;;  %v1133_v32 = vadd.f32 %v1713_v40, %v855_v30  ;;  %v737_v33 = vpop.f32.mrf.mxu0  ;;  %v777_v34 = vpop.f32.mrf.mxu1 }
  0xe2   : > { %v1086_v35 = vadd.f32 %v1713_v40, %v737_v33  ;;  %v1102_v36 = vadd.f32 %v1713_v40, %v777_v34 }
  0xe3   : > { %1181 = vst [vmem:[%s1718_s18 + $0x130] sm:$0xff] %v1117_v31 }
  0xe4   : > { %1197 = vst [vmem:[%s1718_s18 + $0x1b0] sm:$0xff] %v1133_v32 }
  0xe5   : > { %1150 = vst [vmem:[%s1718_s18 + $0x38] sm:$0xff] %v1086_v35 }
  0xe6   : > { %1166 = vst [vmem:[%s1718_s18 + $0xb8] sm:$0xff] %v1102_v36 }
  0xe8   : > { %v817_v37 = vpop.f32.mrf.mxu2  ;;  %v857_v38 = vpop.f32.mrf.mxu3 }
  0xe9   : > { %v1118_v39 = vadd.f32 %v1713_v40, %v817_v37  ;;  %v1134_v41 = vadd.f32 %v1713_v40, %v857_v38  ;;  %v740_v42 = vpop.f32.mrf.mxu0  ;;  %v780_v43 = vpop.f32.mrf.mxu1 }
  0xea   : > { %v1087_v44 = vadd.f32 %v1713_v40, %v740_v42  ;;  %v1103_v45 = vadd.f32 %v1713_v40, %v780_v43 }
  0xeb   : > { %1182 = vst [vmem:[%s1718_s18 + $0x138] sm:$0xff] %v1118_v39 }
  0xec   : > { %1198 = vst [vmem:[%s1718_s18 + $0x1b8] sm:$0xff] %v1134_v41 }
  0xed   : > { %1151 = vst [vmem:[%s1718_s18 + $0x40] sm:$0xff] %v1087_v44 }
  0xee   : > { %1167 = vst [vmem:[%s1718_s18 + $0xc0] sm:$0xff] %v1103_v45 }
  0xf0   : > { %v820_v46 = vpop.f32.mrf.mxu2  ;;  %v860_v47 = vpop.f32.mrf.mxu3 }
  0xf1   : > { %v1119_v48 = vadd.f32 %v1713_v40, %v820_v46  ;;  %v1135_v49 = vadd.f32 %v1713_v40, %v860_v47  ;;  %v742_v50 = vpop.f32.mrf.mxu0  ;;  %v782_v51 = vpop.f32.mrf.mxu1 }
  0xf2   : > { %v1088_v52 = vadd.f32 %v1713_v40, %v742_v50  ;;  %v1104_v53 = vadd.f32 %v1713_v40, %v782_v51 }
  0xf3   : > { %1183 = vst [vmem:[%s1718_s18 + $0x140] sm:$0xff] %v1119_v48 }
  0xf4   : > { %1199 = vst [vmem:[%s1718_s18 + $0x1c0] sm:$0xff] %v1135_v49 }
  0xf5   : > { %1152 = vst [vmem:[%s1718_s18 + $0x48] sm:$0xff] %v1088_v52 }
  0xf6   : > { %1168 = vst [vmem:[%s1718_s18 + $0xc8] sm:$0xff] %v1104_v53 }
  0xf8   : > { %v822_v54 = vpop.f32.mrf.mxu2  ;;  %v862_v55 = vpop.f32.mrf.mxu3 }
  0xf9   : > { %v1120_v56 = vadd.f32 %v1713_v40, %v822_v54  ;;  %v1136_v57 = vadd.f32 %v1713_v40, %v862_v55  ;;  %v745_v58 = vpop.f32.mrf.mxu0  ;;  %v785_v59 = vpop.f32.mrf.mxu1 }
  0xfa   : > { %v1089_v60 = vadd.f32 %v1713_v40, %v745_v58  ;;  %v1105_v61 = vadd.f32 %v1713_v40, %v785_v59 }
  0xfb   : > { %1184 = vst [vmem:[%s1718_s18 + $0x148] sm:$0xff] %v1120_v56 }
  0xfc   : > { %1200 = vst [vmem:[%s1718_s18 + $0x1c8] sm:$0xff] %v1136_v57 }
  0xfd   : > { %1153 = vst [vmem:[%s1718_s18 + $0x50] sm:$0xff] %v1089_v60 }
  0xfe   : > { %1169 = vst [vmem:[%s1718_s18 + $0xd0] sm:$0xff] %v1105_v61 }
 0x100   : > { %v825_v62 = vpop.f32.mrf.mxu2  ;;  %v865_v63 = vpop.f32.mrf.mxu3 }
 0x101   : > { %v1121_v0 = vadd.f32 %v1713_v40, %v825_v62  ;;  %v1137_v1 = vadd.f32 %v1713_v40, %v865_v63  ;;  %v747_v2 = vpop.f32.mrf.mxu0  ;;  %v787_v3 = vpop.f32.mrf.mxu1 }
 0x102   : > { %v1090_v4 = vadd.f32 %v1713_v40, %v747_v2  ;;  %v1106_v5 = vadd.f32 %v1713_v40, %v787_v3 }
 0x103   : > { %1185 = vst [vmem:[%s1718_s18 + $0x150] sm:$0xff] %v1121_v0 }
 0x104   : > { %1201 = vst [vmem:[%s1718_s18 + $0x1d0] sm:$0xff] %v1137_v1 }
 0x105   : > { %1154 = vst [vmem:[%s1718_s18 + $0x58] sm:$0xff] %v1090_v4 }
 0x106   : > { %1170 = vst [vmem:[%s1718_s18 + $0xd8] sm:$0xff] %v1106_v5 }
 0x108   : > { %v827_v6 = vpop.f32.mrf.mxu2  ;;  %v867_v7 = vpop.f32.mrf.mxu3 }
 0x109   : > { %v1122_v8 = vadd.f32 %v1713_v40, %v827_v6  ;;  %v1138_v9 = vadd.f32 %v1713_v40, %v867_v7  ;;  %v750_v10 = vpop.f32.mrf.mxu0  ;;  %v790_v11 = vpop.f32.mrf.mxu1 }
 0x10a   : > { %v1091_v12 = vadd.f32 %v1713_v40, %v750_v10  ;;  %v1107_v13 = vadd.f32 %v1713_v40, %v790_v11 }
 0x10b   : > { %1186 = vst [vmem:[%s1718_s18 + $0x158] sm:$0xff] %v1122_v8 }
 0x10c   : > { %1202 = vst [vmem:[%s1718_s18 + $0x1d8] sm:$0xff] %v1138_v9 }
 0x10d   : > { %1155 = vst [vmem:[%s1718_s18 + $0x60] sm:$0xff] %v1091_v12 }
 0x10e   : > { %1171 = vst [vmem:[%s1718_s18 + $0xe0] sm:$0xff] %v1107_v13 }
 0x110   : > { %v830_v14 = vpop.f32.mrf.mxu2  ;;  %v870_v15 = vpop.f32.mrf.mxu3 }
 0x111   : > { %v1123_v16 = vadd.f32 %v1713_v40, %v830_v14  ;;  %v1139_v17 = vadd.f32 %v1713_v40, %v870_v15  ;;  %v752_v18 = vpop.f32.mrf.mxu0  ;;  %v792_v19 = vpop.f32.mrf.mxu1 }
 0x112   : > { %v1092_v20 = vadd.f32 %v1713_v40, %v752_v18  ;;  %v1108_v21 = vadd.f32 %v1713_v40, %v792_v19 }
 0x113   : > { %1187 = vst [vmem:[%s1718_s18 + $0x160] sm:$0xff] %v1123_v16 }
 0x114   : > { %1203 = vst [vmem:[%s1718_s18 + $0x1e0] sm:$0xff] %v1139_v17 }
 0x115   : > { %1156 = vst [vmem:[%s1718_s18 + $0x68] sm:$0xff] %v1092_v20 }
 0x116   : > { %1172 = vst [vmem:[%s1718_s18 + $0xe8] sm:$0xff] %v1108_v21 }
 0x118   : > { %v832_v22 = vpop.f32.mrf.mxu2  ;;  %v872_v23 = vpop.f32.mrf.mxu3 }
 0x119   : > { %v1124_v24 = vadd.f32 %v1713_v40, %v832_v22  ;;  %v1140_v25 = vadd.f32 %v1713_v40, %v872_v23  ;;  %v755_v26 = vpop.f32.mrf.mxu0  ;;  %v795_v27 = vpop.f32.mrf.mxu1 }
 0x11a   : > { %v1093_v28 = vadd.f32 %v1713_v40, %v755_v26  ;;  %v1109_v29 = vadd.f32 %v1713_v40, %v795_v27 }
 0x11b   : > { %1188 = vst [vmem:[%s1718_s18 + $0x168] sm:$0xff] %v1124_v24 }
 0x11c   : > { %1204 = vst [vmem:[%s1718_s18 + $0x1e8] sm:$0xff] %v1140_v25 }
 0x11d   : > { %1157 = vst [vmem:[%s1718_s18 + $0x70] sm:$0xff] %v1093_v28 }
 0x11e   : > { %1173 = vst [vmem:[%s1718_s18 + $0xf0] sm:$0xff] %v1109_v29 }
 0x120   : > { %v835_v30 = vpop.f32.mrf.mxu2  ;;  %v875_v31 = vpop.f32.mrf.mxu3 }
 0x121   : > { %v1125_v32 = vadd.f32 %v1713_v40, %v835_v30  ;;  %v1141_v33 = vadd.f32 %v1713_v40, %v875_v31  ;;  %v757_v34 = vpop.f32.mrf.mxu0  ;;  %v797_v35 = vpop.f32.mrf.mxu1 }
 0x122   : > { %v1094_v36 = vadd.f32 %v1713_v40, %v757_v34  ;;  %v1110_v37 = vadd.f32 %v1713_v40, %v797_v35 }
 0x123   : > { %1189 = vst [vmem:[%s1718_s18 + $0x170] sm:$0xff] %v1125_v32 }
 0x124   : > { %1205 = vst [vmem:[%s1718_s18 + $0x1f0] sm:$0xff] %v1141_v33 }
 0x125   : > { %1158 = vst [vmem:[%s1718_s18 + $0x78] sm:$0xff] %v1094_v36 }
 0x126   : > { %1174 = vst [vmem:[%s1718_s18 + $0xf8] sm:$0xff] %v1110_v37 }
 0x128   : > { %v837_v38 = vpop.f32.mrf.mxu2  ;;  %v877_v39 = vpop.f32.mrf.mxu3 }
 0x129   : > { %v1126_v41 = vadd.f32 %v1713_v40, %v837_v38  ;;  %v1142_v42 = vadd.f32 %v1713_v40, %v877_v39 }
 0x12b   : > { %1190 = vst [vmem:[%s1718_s18 + $0x178] sm:$0xff] %v1126_v41 }
 0x12c   : > { %1206 = vst [vmem:[%s1718_s18 + $0x1f8] sm:$0xff] %v1142_v42 }
 0x12d PF: > { %s13_s14 = sadd.s32 1, %s1602_s14   ;;  %s1861_s12 = smov %s1598_s13 }
 0x12e   : > { %p10_p5 = scmp.ge.s32.totalorder %s13_s14, 6   ;;  %s1862_s13 = smov %s1864_s15 }
 0x130   :  { %12 = sbr.rel (!%p10_p5) target bundleno = 2 (0x2), region = 76 }

</bundles_post_ra>
